<compile_context>
chip_gen: v6e
topology: v6e:2x2x1
jax: 0.10.0
libtpu: 0.0.40
codegen_flags: <defaults>
</compile_context>

<pallas_src>
import jax
import jax.numpy as jnp
from jax.experimental import pallas as pl
from jax.experimental.pallas import tpu as pltpu

CHANNELS = 3
HEIGHT = 32
WIDTH = 32
HIDDEN = 512
OUT_DIM = CHANNELS * HEIGHT * WIDTH  # 3072


def _generator_kernel(x_ref, w1_ref, b1_ref, w2_ref, b2_ref, o_ref):
    """Fused MLP generator kernel.

    Grid axis 0 tiles the final output dimension (OUT_DIM). The hidden
    activation h = relu(x @ W1 + b1) is recomputed every step (negligible:
    operands are VMEM-resident and tiny), keeping the grid axis
    dependency-free so it can be 'parallel' (v7x megacore).
    """
    # First linear layer + ReLU. bf16 x bf16 on the MXU, f32 accumulation.
    x_bf = x_ref[...].astype(jnp.bfloat16)
    h = jnp.dot(x_bf, w1_ref[...], preferred_element_type=jnp.float32)
    h = jnp.maximum(h + b1_ref[...], 0.0)  # b1 is (1, HIDDEN) -> broadcasts

    # Second linear layer column tile + Tanh. Cast h once to bf16 (not W2).
    y = jnp.dot(h.astype(jnp.bfloat16), w2_ref[...],
                preferred_element_type=jnp.float32)
    y = y + b2_ref[...]  # b2 tile is (1, tn)
    o_ref[...] = jnp.tanh(y).astype(o_ref.dtype)


def _default_tile_n() -> int:
    """Generation-dependent output tile width.

    v7x has 2 TensorCores: 2 parallel grid steps (tn=1536) split the W2 fetch
    across both cores. Single-TC v5e/v6e: one grid step (tn=3072) removes the
    fixed per-step overhead on this purely HBM-bound kernel.
    """
    try:
        kind = jax.devices()[0].device_kind.lower()
    except Exception:  # pragma: no cover - defensive; fallback is correct everywhere
        kind = ""
    if "v7" in kind or "7x" in kind:
        return OUT_DIM // 2  # 1536, grid=(2,)
    return OUT_DIM           # 3072, grid=(1,)


def generator_forward(x, w1, b1, w2, b2, *, tn=None):
    """x: (B, latent) -> (B, OUT_DIM) f32.

    w1: (latent, 512) bf16, w2: (512, 3072) bf16 (bf16 halves the dominant
    W2 HBM fetch; accumulation is f32). b1: (512,), b2: (3072,) f32.
    """
    B, L = x.shape
    assert w1.shape == (L, HIDDEN)
    assert w2.shape == (HIDDEN, OUT_DIM)
    if tn is None:
        tn = _default_tile_n()
    assert OUT_DIM % tn == 0 and tn % 128 == 0

    b1_2d = b1.astype(jnp.float32).reshape(1, HIDDEN)
    b2_2d = b2.astype(jnp.float32).reshape(1, OUT_DIM)

    grid = (OUT_DIM // tn,)

    bytes_accessed = (
        x.size * x.dtype.itemsize
        + w1.size * w1.dtype.itemsize
        + b1_2d.size * 4
        + w2.size * w2.dtype.itemsize
        + b2_2d.size * 4
        + B * OUT_DIM * 4
    )
    cost = pl.CostEstimate(
        flops=2 * B * (L * HIDDEN + HIDDEN * OUT_DIM),
        transcendentals=B * OUT_DIM,
        bytes_accessed=bytes_accessed,
    )

    return pl.pallas_call(
        _generator_kernel,
        out_shape=jax.ShapeDtypeStruct((B, OUT_DIM), jnp.float32),
        grid_spec=pltpu.PrefetchScalarGridSpec(
            num_scalar_prefetch=0,
            grid=grid,
            in_specs=[
                pl.BlockSpec((B, L), lambda j: (0, 0)),        # x (resident)
                pl.BlockSpec((L, HIDDEN), lambda j: (0, 0)),   # W1 (resident)
                pl.BlockSpec((1, HIDDEN), lambda j: (0, 0)),   # b1 (resident)
                pl.BlockSpec((HIDDEN, tn), lambda j: (0, j)),  # W2 column tile
                pl.BlockSpec((1, tn), lambda j: (0, j)),       # b2 tile
            ],
            out_specs=pl.BlockSpec((B, tn), lambda j: (0, j)),  # output tile
        ),
        compiler_params=pltpu.CompilerParams(
            # No cross-iteration state -> the output-tile axis is parallel
            # (lets v7x megacore split the W2 DMAs across both TensorCores).
            dimension_semantics=("parallel",),
            # bf16 W2 double-buffered (~6 MB max) + small residents: a 32 MiB
            # cap leaves ample headroom on every generation (v5e default is
            # only 16 MiB).
            vmem_limit_bytes=32 * 1024 * 1024,
        ),
        cost_estimate=cost,
    )(x, w1, b1_2d, w2, b2_2d)


def init_generator_params(latent_space_size: int, key):
    """Deterministic init mimicking nn.Linear's U(-1/sqrt(fan_in), 1/sqrt(fan_in))."""
    k1, k2, k3, k4 = jax.random.split(key, 4)
    bound1 = 1.0 / jnp.sqrt(latent_space_size)
    bound2 = 1.0 / jnp.sqrt(HIDDEN)
    w1 = jax.random.uniform(k1, (latent_space_size, HIDDEN), jnp.float32,
                            -bound1, bound1)
    b1 = jax.random.uniform(k2, (HIDDEN,), jnp.float32, -bound1, bound1)
    w2 = jax.random.uniform(k3, (HIDDEN, OUT_DIM), jnp.float32, -bound2, bound2)
    b2 = jax.random.uniform(k4, (OUT_DIM,), jnp.float32, -bound2, bound2)
    return w1, b1, w2, b2


def generator_ref(x, w1, b1, w2, b2):
    """Pure-JAX reference of the PyTorch forward pass (f32 math)."""
    h = jnp.maximum(x @ w1 + b1, 0.0)
    return jnp.tanh(h @ w2 + b2)


if __name__ == "__main__":
    latent_space_size = 32
    batch = 16  # multiple of 16 -> full bf16 sublane packing; cost is W2-DMA bound

    key = jax.random.PRNGKey(0)
    kx, kp = jax.random.split(key)

    x = jax.random.normal(kx, (batch, latent_space_size), jnp.float32)
    w1, b1, w2, b2 = init_generator_params(latent_space_size, kp)

    # bf16 weights: halves the dominant W2 HBM fetch; f32 accumulation inside.
    w1_q = w1.astype(jnp.bfloat16)
    w2_q = w2.astype(jnp.bfloat16)

    out = generator_forward(x, w1_q, b1, w2_q, b2)
    out = jax.block_until_ready(out)

    # Reference uses the same bf16-rounded inputs/weights upcast to f32, so the
    # only deltas come from MXU precision and the in-kernel bf16 h cast.
    ref = generator_ref(x.astype(jnp.bfloat16).astype(jnp.float32),
                        w1_q.astype(jnp.float32), b1,
                        w2_q.astype(jnp.float32), b2)
    assert out.shape == (batch, OUT_DIM)
    assert jnp.allclose(out, ref, atol=1e-2, rtol=1e-2), \
        f"max abs err {jnp.max(jnp.abs(out - ref))}"

    print("KERNEL_OK")
</pallas_src>

<mosaic_0001>
module attributes {stable_mosaic.version = 11 : i64} {
  func.func @_generator_kernel(%arg0: i32, %arg1: memref<16x32xf32, #tpu.memory_space<vmem>>, %arg2: memref<32x512xbf16, #tpu.memory_space<vmem>>, %arg3: memref<1x512xf32, #tpu.memory_space<vmem>>, %arg4: memref<512x3072xbf16, #tpu.memory_space<vmem>>, %arg5: memref<1x3072xf32, #tpu.memory_space<vmem>>, %arg6: memref<16x3072xf32, #tpu.memory_space<vmem>>) attributes {dimension_semantics = [#tpu.dimension_semantics<parallel>], iteration_bounds = array<i64: 1>, scalar_prefetch = 0 : i64, scratch_operands = 0 : i64, tpu.core_type = #tpu.core_type<tc>, window_params = [{pipeline_mode = #tpu.pipeline_mode<synchronous>, transform_indices = @transform_0, window_bounds = array<i64: 16, 32>}, {pipeline_mode = #tpu.pipeline_mode<synchronous>, transform_indices = @transform_1, window_bounds = array<i64: 32, 512>}, {pipeline_mode = #tpu.pipeline_mode<synchronous>, transform_indices = @transform_2, window_bounds = array<i64: 1, 512>}, {transform_indices = @transform_3, window_bounds = array<i64: 512, 3072>}, {transform_indices = @transform_4, window_bounds = array<i64: 1, 3072>}, {transform_indices = @transform_5, window_bounds = array<i64: 16, 3072>}]} {
    %c0 = arith.constant 0 : index
    %c0_0 = arith.constant 0 : index
    %0 = vector.load %arg1[%c0, %c0_0] : memref<16x32xf32, #tpu.memory_space<vmem>>, vector<16x32xf32>
    %1 = arith.truncf %0 : vector<16x32xf32> to vector<16x32xbf16>
    %c0_1 = arith.constant 0 : index
    %c0_2 = arith.constant 0 : index
    %2 = vector.load %arg2[%c0_1, %c0_2] : memref<32x512xbf16, #tpu.memory_space<vmem>>, vector<32x512xbf16>
    %cst = arith.constant dense<0.000000e+00> : vector<16x512xf32>
    %3 = tpu.matmul %1, %2, %cst {dimension_numbers = #tpu.dot_dimension_numbers<[1], [0], [0], [1], [0, 0, 1, 1], [], []>} : vector<16x32xbf16>, vector<32x512xbf16>, vector<16x512xf32> -> vector<16x512xf32>
    %c0_3 = arith.constant 0 : index
    %c0_4 = arith.constant 0 : index
    %4 = vector.load %arg3[%c0_3, %c0_4] : memref<1x512xf32, #tpu.memory_space<vmem>>, vector<1x512xf32>
    %5 = vector.broadcast %4 : vector<1x512xf32> to vector<16x512xf32>
    %6 = arith.addf %3, %5 : vector<16x512xf32>
    %cst_5 = arith.constant 0.000000e+00 : f32
    %7 = vector.broadcast %cst_5 : f32 to vector<16x512xf32>
    %8 = arith.maximumf %6, %7 : vector<16x512xf32>
    %9 = arith.truncf %8 : vector<16x512xf32> to vector<16x512xbf16>
    %c0_6 = arith.constant 0 : index
    %c0_7 = arith.constant 0 : index
    %10 = vector.load %arg4[%c0_6, %c0_7] : memref<512x3072xbf16, #tpu.memory_space<vmem>>, vector<512x3072xbf16>
    %cst_8 = arith.constant dense<0.000000e+00> : vector<16x3072xf32>
    %11 = tpu.matmul %9, %10, %cst_8 {dimension_numbers = #tpu.dot_dimension_numbers<[1], [0], [0], [1], [0, 0, 1, 1], [], []>} : vector<16x512xbf16>, vector<512x3072xbf16>, vector<16x3072xf32> -> vector<16x3072xf32>
    %c0_9 = arith.constant 0 : index
    %c0_10 = arith.constant 0 : index
    %12 = vector.load %arg5[%c0_9, %c0_10] : memref<1x3072xf32, #tpu.memory_space<vmem>>, vector<1x3072xf32>
    %13 = vector.broadcast %12 : vector<1x3072xf32> to vector<16x3072xf32>
    %14 = arith.addf %11, %13 : vector<16x3072xf32>
    %15 = math.tanh %14 : vector<16x3072xf32>
    %c0_11 = arith.constant 0 : index
    %c0_12 = arith.constant 0 : index
    %16 = vector.load %arg6[%c0_11, %c0_12] : memref<16x3072xf32, #tpu.memory_space<vmem>>, vector<16x3072xf32>
    tpu.vector_store %arg6[%c0_11, %c0_12], %15 {strides = array<i32>} : memref<16x3072xf32, #tpu.memory_space<vmem>>, vector<16x3072xf32>,
    return
  }
  func.func @transform_0(%arg0: i32) -> (i32, i32) {
    %c0_i32 = arith.constant 0 : i32
    %c0_i32_0 = arith.constant 0 : i32
    %c0_i32_1 = arith.constant 0 : i32
    return %c0_i32, %c0_i32_0 : i32, i32
  }
  func.func @transform_1(%arg0: i32) -> (i32, i32) {
    %c0_i32 = arith.constant 0 : i32
    %c0_i32_0 = arith.constant 0 : i32
    %c0_i32_1 = arith.constant 0 : i32
    return %c0_i32, %c0_i32_0 : i32, i32
  }
  func.func @transform_2(%arg0: i32) -> (i32, i32) {
    %c0_i32 = arith.constant 0 : i32
    %c0_i32_0 = arith.constant 0 : i32
    %c0_i32_1 = arith.constant 0 : i32
    return %c0_i32, %c0_i32_0 : i32, i32
  }
  func.func @transform_3(%arg0: i32) -> (i32, i32) {
    %c0_i32 = arith.constant 0 : i32
    %c0_i32_0 = arith.constant 0 : i32
    return %c0_i32, %arg0 : i32, i32
  }
  func.func @transform_4(%arg0: i32) -> (i32, i32) {
    %c0_i32 = arith.constant 0 : i32
    %c0_i32_0 = arith.constant 0 : i32
    return %c0_i32, %arg0 : i32, i32
  }
  func.func @transform_5(%arg0: i32) -> (i32, i32) {
    %c0_i32 = arith.constant 0 : i32
    %c0_i32_0 = arith.constant 0 : i32
    return %c0_i32, %arg0 : i32, i32
  }
}

</mosaic_0001>

<bundles_post_ra>
// kernel: tpu_custom_call.1
= control target key start
LH: loop header
LB: loop body
LE: loop exit
PB: predicated region body
PF: predicated region fallthrough
CT: control target
= control target key end

     0   :  { %10 = vsyncpa [#allocation3], 0  ;;  %s7384_s0 = inlined_call_operand.hbm [shape: f32[16,32], index: 0, kind: input, shape index: {}]   ;;  %s7385_s1 = inlined_call_operand.hbm [shape: bf16[32,512], index: 1, kind: input, shape index: {}]   ;;  %s7386_s2 = inlined_call_operand.hbm [shape: f32[1,512], index: 2, kind: input, shape index: {}]   ;;  %s7387_s3 = inlined_call_operand.hbm [shape: bf16[512,3072], index: 3, kind: input, shape index: {}]   ;;  %s7388_s4 = inlined_call_operand.hbm [shape: f32[1,3072], index: 4, kind: input, shape index: {}]   ;;  %s7389_s5 = inlined_call_operand.hbm [shape: f32[16,3072], index: 5, kind: output, shape index: {}]  }
   0x1   :  { %11 = vsyncpa [#allocation6], 0 }
   0x2   :  { %12 = vsyncpa [#allocation9], 0 }
   0x3   :  { %13 = vsyncpa [#allocation4], 0  ;;  %s7173_s18 = smov [#allocation5]  }
   0x4   :  { %s31_s19 = sshll.u32 %s7173_s18, 4  ;;  %s32_s19 = int_to_ptr.vmem [resolvable:$true] %s31_s19 }
   0x5   :  { %s7053_s20 = scalar_lea.vmem %s32_s19, 1024  ;;  %p7058_p1 = scmp.lt.s32.totalorder %s32_s19, %s32_s19 }
   0x6   :  { %p7054_p0 = scmp.ne.s32.totalorder %s32_s19, %s7053_s20  ;;  %p7059_p2 = scmp.lt.s32.totalorder %s7053_s20, %s7053_s20 }
   0x8   :  { %p7060_p3 = por %p7059_p2, %p7058_p1 }
   0xa   :  { %p7061_p4 = pnand %p7060_p3, %p7054_p0 }
   0xc   :  { %7064 = shalt.err (!%p7061_p4)
}
   0xd   :  { %s7174_s21 = smov 256   ;;  %s7175_s22 = smov 16  }
   0xe   :  { %37 = dma.hbm_to_vmem [thread:$0]  %s7385_s1, 1024, %s32_s19, [#allocation6], %s7174_s21, %s7174_s21, %s7175_s22  }
   0xf   :  { %s7176_s25 = smov [#allocation8]  }
  0x10   :  { %s53_s26 = sshll.u32 %s7176_s25, 4  ;;  %s54_s26 = int_to_ptr.vmem [resolvable:$true] %s53_s26 }
  0x11   :  { %s7073_s27 = scalar_lea.vmem %s54_s26, 98304  ;;  %p7078_p6 = scmp.lt.s32.totalorder %s54_s26, %s54_s26 }
  0x12   :  { %p7074_p5 = scmp.ne.s32.totalorder %s54_s26, %s7073_s27  ;;  %p7079_p7 = scmp.lt.s32.totalorder %s7073_s27, %s7073_s27 }
  0x14   :  { %p7080_p8 = por %p7079_p7, %p7078_p6 }
  0x16   :  { %p7081_p9 = pnand %p7080_p8, %p7074_p5 }
  0x18   :  { %7084 = shalt.err (!%p7081_p9)
}
  0x19   :  { %s7177_s28 = smov 1536   ;;  %s7178_s29 = smov 96  }
  0x1a   :  { %59 = dma.hbm_to_vmem [thread:$0]  %s7387_s3, 98304, %s54_s26, [#allocation9], %s7177_s28, %s7177_s28, %s7178_s29  }
  0x1b   :  { %s7179_s7 = smov [#allocation2]  }
  0x1c   :  { %s19_s8 = sshll.u32 %s7179_s7, 4  ;;  %s20_s8 = int_to_ptr.vmem [resolvable:$true] %s19_s8 }
  0x1d   :  { %s7093_s1 = scalar_lea.vmem %s20_s8, 256  ;;  %p7098_p11 = scmp.lt.s32.totalorder %s20_s8, %s20_s8 }
  0x1e   :  { %p7094_p10 = scmp.ne.s32.totalorder %s20_s8, %s7093_s1  ;;  %p7099_p12 = scmp.lt.s32.totalorder %s7093_s1, %s7093_s1 }
  0x20   :  { %p7100_p13 = por %p7099_p12, %p7098_p11 }
  0x22   :  { %p7101_p0 = pnand %p7100_p13, %p7094_p10 }
  0x24   :  { %7104 = shalt.err (!%p7101_p0)
}
  0x25   :  { %s7180_s9 = smov 128   ;;  %s7181_s10 = smov 8  }
  0x26   :  { %25 = dma.hbm_to_vmem [thread:$0]  %s7384_s0, 256, %s20_s8, [#allocation3], %s7180_s9, %s7180_s9, %s7181_s10  }
  0x27   :  { %s7182_s13 = smov [#allocation7]   ;;  %s7183_s3 = smov [#allocation10]  }
  0x28   :  { %s44_s14 = sshll.u32 %s7182_s13, 4  ;;  %s66_s15 = sshll.u32 %s7183_s3, 4  ;;  %s45_s14 = int_to_ptr.vmem [resolvable:$true] %s44_s14  ;;  %s67_s15 = int_to_ptr.vmem [resolvable:$true] %s66_s15 }
  0x29   :  { %s7113_s16 = scalar_lea.vmem %s45_s14, 64  ;;  %p7118_p2 = scmp.lt.s32.totalorder %s45_s14, %s45_s14 }
  0x2a   :  { %p7114_p1 = scmp.ne.s32.totalorder %s45_s14, %s7113_s16  ;;  %p7119_p3 = scmp.lt.s32.totalorder %s7113_s16, %s7113_s16 }
  0x2c   :  { %p7120_p4 = por %p7119_p3, %p7118_p2 }
  0x2e   :  { %p7121_p5 = pnand %p7120_p4, %p7114_p1 }
  0x30   :  { %7124 = shalt.err (!%p7121_p5)
}
  0x31   :  { %47 = dma.hbm_to_vmem [thread:$0]  %s7386_s2, 64, %s45_s14, [#allocation6]  }
  0x32   :  { %s7133_s19 = scalar_lea.vmem %s67_s15, 384  ;;  %p7138_p7 = scmp.lt.s32.totalorder %s67_s15, %s67_s15 }
  0x33   :  { %p7134_p6 = scmp.ne.s32.totalorder %s67_s15, %s7133_s19  ;;  %p7139_p8 = scmp.lt.s32.totalorder %s7133_s19, %s7133_s19 }
  0x35   :  { %p7140_p9 = por %p7139_p8, %p7138_p7 }
  0x37   :  { %p7141_p10 = pnand %p7140_p9, %p7134_p6 }
  0x39   :  { %7144 = shalt.err (!%p7141_p10)
}
  0x3a   :  { %69 = dma.hbm_to_vmem [thread:$0]  %s7388_s4, 384, %s67_s15, [#allocation9]  }
  0x3b   :  { %7165 = dma.done.wait [#allocation3], 256  }
  0x3c   :  { %7166 = vsyncadd [#allocation3], 4294967040 }
  0x3d   :  { %7167 = dma.done.wait [#allocation6], 1088  }
  0x3e   :  { %7168 = vsyncadd [#allocation6], 4294966208 }
  0x3f   :  { %7169 = dma.done.wait [#allocation9], 98688  }
  0x40   :  { %7170 = vsyncadd [#allocation9], 4294868608  ;;  %v7184_v0 = vmov 0   ;;  %v6935_v1 = vld [vmem:[#allocation5 + $0x24] ss:$16 sps:$4 sm:$0xff]   ;;  %v87_v10 = vld [vmem:[#allocation2 + $0x8] sm:$0xff] }
  0x41   :  { %195 = vmatprep.mubr.bf16.mxu0 %v7184_v0  ;;  %238 = vmatprep.mubr.bf16.mxu1 %v7184_v0  ;;  %v6937_v2 = vld [vmem:[#allocation5 + $0x2c] ss:$16 sps:$4 sm:$0xff]   ;;  %v6939_v3 = vld [vmem:[#allocation5 + $0x20] ss:$16 sps:$4 sm:$0xff]   ;;  %v6940_v4 = vld [vmem:[#allocation5 + $0x28] ss:$16 sps:$4 sm:$0xff]  }
  0x42   :  { %175 = vmatprep.subr.bf16.mxu0 %v6935_v1  ;;  %218 = vmatprep.subr.bf16.mxu1 %v6937_v2  ;;  %v6941_v5 = vld [vmem:[#allocation5 + $0x4] ss:$16 sps:$4 sm:$0xff]   ;;  %v6943_v6 = vld [vmem:[#allocation5 + $0xc] ss:$16 sps:$4 sm:$0xff]   ;;  %v6945_v7 = vld [vmem:[#allocation5] ss:$16 sps:$4 sm:$0xff]  }
  0x43   :  { %176 = vmatpush1.bf16.msra.mxu0 %v6939_v3  ;;  %219 = vmatpush1.bf16.msra.mxu1 %v6940_v4  ;;  %v6946_v8 = vld [vmem:[#allocation5 + $0x8] ss:$16 sps:$4 sm:$0xff]   ;;  %v86_v9 = vld [vmem:[#allocation2] sm:$0xff]  ;;  %vm159_vm0 = vcmask 261120   ;;  %s7185_s2 = smov [#allocation11]  }
  0x44   :  { %177 = vmatprep.subr.bf16.mxu0 %v6941_v5  ;;  %220 = vmatprep.subr.bf16.mxu1 %v6943_v6  ;;  %v429_v11 = vld [vmem:[#allocation8 + $0x540] sm:$0xff]  ;;  %v88_v14 = vpack.c.bf16 %v87_v10, %v86_v9  ;;  %s6128_s4 = sshll.u32 %s7185_s2, 4  ;;  %s6129_s4 = int_to_ptr.vmem [resolvable:$true] %s6128_s4 }
  0x45   :  { %v441_v12 = vld [vmem:[#allocation8 + $0x5a0] sm:$0xff]  ;;  %s7145_s21 = scalar_lea.vmem %s6129_s4, 6144  ;;  %p7150_p12 = scmp.lt.s32.totalorder %s6129_s4, %s6129_s4 }
  0x46   :  { %v813_v13 = vld [vmem:[#allocation8 + $0x1140] sm:$0xff]  ;;  %v6321_v15 = vcombine.high %v429_v11, %v441_v12  ;;  %v6320_v19 = vcombine.low %v429_v11, %v441_v12  ;;  %p7146_p11 = scmp.ne.s32.totalorder %s6129_s4, %s7145_s21  ;;  %p7151_p13 = scmp.lt.s32.totalorder %s7145_s21, %s7145_s21 }
  0x47   :  { %v825_v16 = vld [vmem:[#allocation8 + $0x11a0] sm:$0xff]  ;;  %178 = vmatpush1.bf16.msra.mxu0 %v6945_v7  ;;  %221 = vmatpush1.bf16.msra.mxu1 %v6946_v8 }
  0x48   :  { %v405_v17 = vld [vmem:[#allocation8 + $0x480] sm:$0xff]  ;;  %v6704_v20 = vcombine.low %v813_v13, %v825_v16  ;;  %v6705_v21 = vcombine.high %v813_v13, %v825_v16  ;;  %4995 = vmatprep.subr.bf16.mxu0 %v6321_v15  ;;  %p7152_p0 = por %p7151_p13, %p7150_p12 }
  0x49   :  { %v417_v18 = vld [vmem:[#allocation8 + $0x4e0] sm:$0xff] }
  0x4a   :  { %v789_v22 = vld [vmem:[#allocation8 + $0x1080] sm:$0xff]  ;;  %v6297_v24 = vcombine.high %v405_v17, %v417_v18  ;;  %5038 = vmatprep.subr.bf16.mxu1 %v6705_v21  ;;  %6150 = vmatmul.mubr.msk.bf16.vlgmr.msra.gmra.mxu0 %vm159_vm0, %v88_v14  ;;  %v6296_v30 = vcombine.low %v405_v17, %v417_v18  ;;  %p7153_p1 = pnand %p7152_p0, %p7146_p11 }
  0x4b   :  { %v801_v23 = vld [vmem:[#allocation8 + $0x10e0] sm:$0xff]  ;;  %6151 = vmatmul.mubr.msk.bf16.vlgmr.msra.gmra.mxu1 %vm159_vm0, %v88_v14  ;;  %4996 = vmatpush1.bf16.msra.mxu0 %v6320_v19 }
  0x4c   :  { %v6681_v25 = vcombine.high %v789_v22, %v801_v23  ;;  %v381_v26 = vld [vmem:[#allocation8 + $0x3c0] sm:$0xff]  ;;  %5039 = vmatpush1.bf16.msra.mxu1 %v6704_v20  ;;  %v6680_v31 = vcombine.low %v789_v22, %v801_v23  ;;  %4997 = vmatprep.subr.bf16.mxu0 %v6297_v24 }
  0x4d   :  { %v393_v27 = vld [vmem:[#allocation8 + $0x420] sm:$0xff] }
  0x4e   :  { %v765_v28 = vld [vmem:[#allocation8 + $0xfc0] sm:$0xff]  ;;  %5040 = vmatprep.subr.bf16.mxu1 %v6681_v25  ;;  %v6273_v32 = vcombine.high %v381_v26, %v393_v27  ;;  %v6272_v38 = vcombine.low %v381_v26, %v393_v27 }
  0x4f   :  { %v777_v29 = vld [vmem:[#allocation8 + $0x1020] sm:$0xff]  ;;  %4998 = vmatpush1.bf16.msra.mxu0 %v6296_v30 }
  0x50   :  { %v6657_v33 = vcombine.high %v765_v28, %v777_v29  ;;  %v357_v34 = vld [vmem:[#allocation8 + $0x300] sm:$0xff]  ;;  %5041 = vmatpush1.bf16.msra.mxu1 %v6680_v31  ;;  %v6656_v39 = vcombine.low %v765_v28, %v777_v29  ;;  %4999 = vmatprep.subr.bf16.mxu0 %v6273_v32 }
  0x51   :  { %v369_v35 = vld [vmem:[#allocation8 + $0x360] sm:$0xff] }
  0x52   :  { %v741_v36 = vld [vmem:[#allocation8 + $0xf00] sm:$0xff]  ;;  %5042 = vmatprep.subr.bf16.mxu1 %v6657_v33  ;;  %v6249_v40 = vcombine.high %v357_v34, %v369_v35  ;;  %v6248_v46 = vcombine.low %v357_v34, %v369_v35 }
  0x53   :  { %v753_v37 = vld [vmem:[#allocation8 + $0xf60] sm:$0xff]  ;;  %5000 = vmatpush1.bf16.msra.mxu0 %v6272_v38 }
  0x54   :  { %v6633_v41 = vcombine.high %v741_v36, %v753_v37  ;;  %v333_v42 = vld [vmem:[#allocation8 + $0x240] sm:$0xff]  ;;  %5043 = vmatpush1.bf16.msra.mxu1 %v6656_v39  ;;  %v6632_v47 = vcombine.low %v741_v36, %v753_v37  ;;  %5001 = vmatprep.subr.bf16.mxu0 %v6249_v40 }
  0x55   :  { %v345_v43 = vld [vmem:[#allocation8 + $0x2a0] sm:$0xff] }
  0x56   :  { %v717_v44 = vld [vmem:[#allocation8 + $0xe40] sm:$0xff]  ;;  %5044 = vmatprep.subr.bf16.mxu1 %v6633_v41  ;;  %v6225_v48 = vcombine.high %v333_v42, %v345_v43  ;;  %v6224_v54 = vcombine.low %v333_v42, %v345_v43 }
  0x57   :  { %v729_v45 = vld [vmem:[#allocation8 + $0xea0] sm:$0xff]  ;;  %5002 = vmatpush1.bf16.msra.mxu0 %v6248_v46 }
  0x58   :  { %v6609_v49 = vcombine.high %v717_v44, %v729_v45  ;;  %v309_v50 = vld [vmem:[#allocation8 + $0x180] sm:$0xff]  ;;  %5045 = vmatpush1.bf16.msra.mxu1 %v6632_v47  ;;  %v6608_v55 = vcombine.low %v717_v44, %v729_v45  ;;  %5003 = vmatprep.subr.bf16.mxu0 %v6225_v48 }
  0x59   :  { %v321_v51 = vld [vmem:[#allocation8 + $0x1e0] sm:$0xff] }
  0x5a   :  { %v693_v52 = vld [vmem:[#allocation8 + $0xd80] sm:$0xff]  ;;  %5046 = vmatprep.subr.bf16.mxu1 %v6609_v49  ;;  %v6201_v56 = vcombine.high %v309_v50, %v321_v51  ;;  %v6200_v62 = vcombine.low %v309_v50, %v321_v51 }
  0x5b   :  { %v705_v53 = vld [vmem:[#allocation8 + $0xde0] sm:$0xff]  ;;  %5004 = vmatpush1.bf16.msra.mxu0 %v6224_v54 }
  0x5c   :  { %v6585_v57 = vcombine.high %v693_v52, %v705_v53  ;;  %v285_v58 = vld [vmem:[#allocation8 + $0xc0] sm:$0xff]  ;;  %5047 = vmatpush1.bf16.msra.mxu1 %v6608_v55  ;;  %v6584_v63 = vcombine.low %v693_v52, %v705_v53  ;;  %5005 = vmatprep.subr.bf16.mxu0 %v6201_v56 }
  0x5d   :  { %v297_v59 = vld [vmem:[#allocation8 + $0x120] sm:$0xff] }
  0x5e   :  { %v669_v60 = vld [vmem:[#allocation8 + $0xcc0] sm:$0xff]  ;;  %5048 = vmatprep.subr.bf16.mxu1 %v6585_v57  ;;  %v6177_v0 = vcombine.high %v285_v58, %v297_v59  ;;  %v6176_v6 = vcombine.low %v285_v58, %v297_v59 }
  0x5f   :  { %v681_v61 = vld [vmem:[#allocation8 + $0xd20] sm:$0xff]  ;;  %5006 = vmatpush1.bf16.msra.mxu0 %v6200_v62 }
  0x60   :  { %v6561_v1 = vcombine.high %v669_v60, %v681_v61  ;;  %v261_v2 = vld [vmem:[#allocation8] sm:$0xff]  ;;  %5049 = vmatpush1.bf16.msra.mxu1 %v6584_v63  ;;  %v6560_v7 = vcombine.low %v669_v60, %v681_v61  ;;  %5007 = vmatprep.subr.bf16.mxu0 %v6177_v0 }
  0x61   :  { %v273_v3 = vld [vmem:[#allocation8 + $0x60] sm:$0xff] }
  0x62   :  { %v645_v4 = vld [vmem:[#allocation8 + $0xc00] sm:$0xff]  ;;  %5050 = vmatprep.subr.bf16.mxu1 %v6561_v1  ;;  %v6153_v8 = vcombine.high %v261_v2, %v273_v3  ;;  %v6152_v14 = vcombine.low %v261_v2, %v273_v3 }
  0x63   :  { %v657_v5 = vld [vmem:[#allocation8 + $0xc60] sm:$0xff]  ;;  %5008 = vmatpush1.bf16.msra.mxu0 %v6176_v6 }
  0x64   :  { %v6537_v9 = vcombine.high %v645_v4, %v657_v5  ;;  %v621_v10 = vld [vmem:[#allocation8 + $0xb40] sm:$0xff]  ;;  %5051 = vmatpush1.bf16.msra.mxu1 %v6560_v7  ;;  %v6536_v15 = vcombine.low %v645_v4, %v657_v5  ;;  %5009 = vmatprep.subr.bf16.mxu0 %v6153_v8 }
  0x65   :  { %v633_v11 = vld [vmem:[#allocation8 + $0xba0] sm:$0xff] }
  0x66   :  { %v1005_v12 = vld [vmem:[#allocation8 + $0x1740] sm:$0xff]  ;;  %5052 = vmatprep.subr.bf16.mxu1 %v6537_v9  ;;  %v6513_v16 = vcombine.high %v621_v10, %v633_v11  ;;  %v6512_v22 = vcombine.low %v621_v10, %v633_v11 }
  0x67   :  { %v1017_v13 = vld [vmem:[#allocation8 + $0x17a0] sm:$0xff]  ;;  %5010 = vmatpush1.bf16.msra.mxu0 %v6152_v14  ;;  %v7237_v14 = vld [vmem:[#allocation8 + $0x1148] sm:$0xff] }
  0x68   :  { %v6897_v17 = vcombine.high %v1005_v12, %v1017_v13  ;;  %v597_v18 = vld [vmem:[#allocation8 + $0xa80] sm:$0xff]  ;;  %5053 = vmatpush1.bf16.msra.mxu1 %v6536_v15  ;;  %v6896_v23 = vcombine.low %v1005_v12, %v1017_v13  ;;  %5011 = vmatprep.subr.bf16.mxu0 %v6513_v16  ;;  %v7233_v12 = vld [vmem:[#allocation8 + $0x548] sm:$0xff] }
  0x69   :  { %v609_v19 = vld [vmem:[#allocation8 + $0xae0] sm:$0xff]  ;;  %v7235_v13 = vld [vmem:[#allocation8 + $0x5a8] sm:$0xff] }
  0x6a   :  { %v981_v20 = vld [vmem:[#allocation8 + $0x1680] sm:$0xff]  ;;  %5054 = vmatprep.subr.bf16.mxu1 %v6897_v17  ;;  %v6489_v24 = vcombine.high %v597_v18, %v609_v19  ;;  %v6488_v30 = vcombine.low %v597_v18, %v609_v19  ;;  %v6323_v15 = vcombine.high %v7233_v12, %v7235_v13  ;;  %v826_v16 = vld [vmem:[#allocation8 + $0x11a8] sm:$0xff]  ;;  %v6322_v17 = vcombine.low %v7233_v12, %v7235_v13 }
  0x6b   :  { %v993_v21 = vld [vmem:[#allocation8 + $0x16e0] sm:$0xff]  ;;  %5012 = vmatpush2.bf16.msra.mxu0 %v6512_v22  ;;  %v6706_v18 = vcombine.low %v7237_v14, %v826_v16  ;;  %v6707_v19 = vcombine.high %v7237_v14, %v826_v16  ;;  %v754_v12 = vld [vmem:[#allocation8 + $0xf68] sm:$0xff] }
  0x6c   :  { %v6873_v25 = vcombine.high %v981_v20, %v993_v21  ;;  %v573_v26 = vld [vmem:[#allocation8 + $0x9c0] sm:$0xff]  ;;  %5055 = vmatpush2.bf16.msra.mxu1 %v6896_v23  ;;  %v6872_v31 = vcombine.low %v981_v20, %v993_v21  ;;  %5013 = vmatprep.subr.bf16.mxu0 %v6489_v24  ;;  %v99_v20 = vlaneseq }
  0x6d   :  { %v585_v27 = vld [vmem:[#allocation8 + $0xa20] sm:$0xff] }
  0x6e   :  { %v957_v28 = vld [vmem:[#allocation8 + $0x15c0] sm:$0xff]  ;;  %5056 = vmatprep.subr.bf16.mxu1 %v6873_v25  ;;  %v6465_v32 = vcombine.high %v573_v26, %v585_v27  ;;  %v6464_v38 = vcombine.low %v573_v26, %v585_v27  ;;  %v7245_v21 = vshrl.u32 %v99_v20, 7  ;;  %v97_v26 = vld [vmem:[#allocation7] sm:$0xf]  ;;  %v730_v20 = vld [vmem:[#allocation8 + $0xea8] sm:$0xff] }
  0x6f   :  { %v969_v29 = vld [vmem:[#allocation8 + $0x1620] sm:$0xff]  ;;  %5014 = vmatpush2.bf16.msra.mxu0 %v6488_v30 }
  0x70   :  { %v6849_v33 = vcombine.high %v957_v28, %v969_v29  ;;  %v549_v34 = vld [vmem:[#allocation8 + $0x900] sm:$0xff]  ;;  %5057 = vmatpush2.bf16.msra.mxu1 %v6872_v31  ;;  %v6848_v39 = vcombine.low %v957_v28, %v969_v29  ;;  %5015 = vmatprep.subr.bf16.mxu0 %v6465_v32  ;;  %v7248_v22 = vsub.s32 1, %v7245_v21  ;;  %v7251_v23 = vsub.s32 3, %v7245_v21 }
  0x71   :  { %v561_v35 = vld [vmem:[#allocation8 + $0x960] sm:$0xff]  ;;  %v7254_v24 = vsub.s32 0, %v7245_v21  ;;  %v7257_v25 = vsub.s32 2, %v7245_v21 }
  0x72   :  { %v933_v36 = vld [vmem:[#allocation8 + $0x1500] sm:$0xff]  ;;  %5058 = vmatprep.subr.bf16.mxu1 %v6849_v33  ;;  %v6441_v40 = vcombine.high %v549_v34, %v561_v35  ;;  %v6440_v46 = vcombine.low %v549_v34, %v561_v35  ;;  %v106_v29 = vrot.slane %v97_v26, %v7248_v22  ;;  %v114_v30 = vrot.slane %v97_v26, %v7251_v23 }
  0x73   :  { %v945_v37 = vld [vmem:[#allocation8 + $0x1560] sm:$0xff]  ;;  %5016 = vmatpush2.bf16.msra.mxu0 %v6464_v38  ;;  %v102_v31 = vrot.slane %v97_v26, %v7254_v24  ;;  %v110_v32 = vrot.slane %v97_v26, %v7257_v25 }
  0x74   :  { %v6825_v41 = vcombine.high %v933_v36, %v945_v37  ;;  %v525_v42 = vld [vmem:[#allocation8 + $0x840] sm:$0xff]  ;;  %5059 = vmatpush2.bf16.msra.mxu1 %v6848_v39  ;;  %v6824_v47 = vcombine.low %v933_v36, %v945_v37  ;;  %5017 = vmatprep.subr.bf16.mxu0 %v6441_v40 }
  0x75   :  { %v537_v43 = vld [vmem:[#allocation8 + $0x8a0] sm:$0xff] }
  0x76   :  { %v909_v44 = vld [vmem:[#allocation8 + $0x1440] sm:$0xff]  ;;  %5060 = vmatprep.subr.bf16.mxu1 %v6825_v41  ;;  %v6417_v48 = vcombine.high %v525_v42, %v537_v43  ;;  %v6416_v50 = vcombine.low %v525_v42, %v537_v43 }
  0x77   :  { %v921_v45 = vld [vmem:[#allocation8 + $0x14a0] sm:$0xff]  ;;  %5018 = vmatpush2.bf16.msra.mxu0 %v6440_v46 }
  0x78   :  { %v6801_v49 = vcombine.high %v909_v44, %v921_v45  ;;  %5061 = vmatpush2.bf16.msra.mxu1 %v6824_v47  ;;  %v6800_v51 = vcombine.low %v909_v44, %v921_v45  ;;  %5019 = vmatprep.subr.bf16.mxu0 %v6417_v48  ;;  %v501_v52 = vld [vmem:[#allocation8 + $0x780] sm:$0xff] }
  0x79   :  { %v513_v53 = vld [vmem:[#allocation8 + $0x7e0] sm:$0xff] }
  0x7a   :  { %5062 = vmatprep.subr.bf16.mxu1 %v6801_v49  ;;  %v885_v54 = vld [vmem:[#allocation8 + $0x1380] sm:$0xff]  ;;  %v6393_v55 = vcombine.high %v501_v52, %v513_v53  ;;  %v6392_v57 = vcombine.low %v501_v52, %v513_v53  ;;  %v406_v53 = vld [vmem:[#allocation8 + $0x488] sm:$0xff] }
  0x7b   :  { %5020 = vmatpush2.bf16.msra.mxu0 %v6416_v50  ;;  %v897_v56 = vld [vmem:[#allocation8 + $0x13e0] sm:$0xff] }
  0x7c   :  { %5063 = vmatpush2.bf16.msra.mxu1 %v6800_v51  ;;  %v6776_v58 = vcombine.low %v885_v54, %v897_v56  ;;  %v6777_v59 = vcombine.high %v885_v54, %v897_v56  ;;  %5021 = vmatprep.subr.bf16.mxu0 %v6393_v55  ;;  %v477_v60 = vld [vmem:[#allocation8 + $0x6c0] sm:$0xff]  ;;  %v418_v56 = vld [vmem:[#allocation8 + $0x4e8] sm:$0xff] }
  0x7d   :  { %v489_v61 = vld [vmem:[#allocation8 + $0x720] sm:$0xff] }
  0x7e   :  { %5064 = vmatprep.subr.bf16.mxu1 %v6777_v59  ;;  %v861_v62 = vld [vmem:[#allocation8 + $0x12c0] sm:$0xff]  ;;  %v6369_v63 = vcombine.high %v477_v60, %v489_v61  ;;  %v6368_v1 = vcombine.low %v477_v60, %v489_v61 }
  0x7f   :  { %5022 = vmatpush2.bf16.msra.mxu0 %v6392_v57  ;;  %v873_v0 = vld [vmem:[#allocation8 + $0x1320] sm:$0xff]  ;;  %v790_v57 = vld [vmem:[#allocation8 + $0x1088] sm:$0xff] }
  0x80   :  { %5065 = vmatpush2.bf16.msra.mxu1 %v6776_v58  ;;  %v6752_v2 = vcombine.low %v861_v62, %v873_v0  ;;  %v6753_v3 = vcombine.high %v861_v62, %v873_v0  ;;  %5023 = vmatprep.subr.bf16.mxu0 %v6369_v63  ;;  %v453_v4 = vld [vmem:[#allocation8 + $0x600] sm:$0xff]  ;;  %v802_v58 = vld [vmem:[#allocation8 + $0x10e8] sm:$0xff]  ;;  %v6299_v0 = vcombine.high %v406_v53, %v418_v56 }
  0x81   :  { %v465_v5 = vld [vmem:[#allocation8 + $0x660] sm:$0xff]  ;;  %v382_v63 = vld [vmem:[#allocation8 + $0x3c8] sm:$0xff] }
  0x82   :  { %5066 = vmatprep.subr.bf16.mxu1 %v6753_v3  ;;  %v837_v6 = vld [vmem:[#allocation8 + $0x1200] sm:$0xff]  ;;  %v6345_v7 = vcombine.high %v453_v4, %v465_v5  ;;  %v6344_v9 = vcombine.low %v453_v4, %v465_v5  ;;  %v766_v3 = vld [vmem:[#allocation8 + $0xfc8] sm:$0xff]  ;;  %v6298_v5 = vcombine.low %v406_v53, %v418_v56 }
  0x83   :  { %5024 = vmatpush2.bf16.msra.mxu0 %v6368_v1  ;;  %v849_v8 = vld [vmem:[#allocation8 + $0x1260] sm:$0xff]  ;;  %v6683_v1 = vcombine.high %v790_v57, %v802_v58  ;;  %v778_v4 = vld [vmem:[#allocation8 + $0x1028] sm:$0xff] }
  0x84   :  { %5067 = vmatpush2.bf16.msra.mxu1 %v6752_v2  ;;  %v6728_v10 = vcombine.low %v837_v6, %v849_v8  ;;  %v6729_v11 = vcombine.high %v837_v6, %v849_v8  ;;  %5025 = vmatprep.subr.bf16.mxu0 %v6345_v7  ;;  %v394_v2 = vld [vmem:[#allocation8 + $0x428] sm:$0xff]  ;;  %v6682_v6 = vcombine.low %v790_v57, %v802_v58 }
  0x85   :  { %v6275_v7 = vcombine.high %v382_v63, %v394_v2  ;;  %v6659_v8 = vcombine.high %v766_v3, %v778_v4  ;;  %v6274_v13 = vcombine.low %v382_v63, %v394_v2  ;;  %v6658_v14 = vcombine.low %v766_v3, %v778_v4  ;;  %v1006_v56 = vld [vmem:[#allocation8 + $0x1748] sm:$0xff] }
  0x86   :  { %5068 = vmatprep.subr.bf16.mxu1 %v6729_v11  ;;  %v742_v11 = vld [vmem:[#allocation8 + $0xf08] sm:$0xff] }
  0x87   :  { %5026 = vmatpush2.bf16.msra.mxu0 %v6344_v9  ;;  %v358_v9 = vld [vmem:[#allocation8 + $0x308] sm:$0xff]  ;;  %v6635_v16 = vcombine.high %v742_v11, %v754_v12 }
  0x88   :  { %5069 = vmatpush2.bf16.msra.mxu1 %v6728_v10  ;;  %5081 = vmatprep.subr.bf16.mxu0 %v6323_v15  ;;  %v370_v10 = vld [vmem:[#allocation8 + $0x368] sm:$0xff] }
  0x89   :  { %5124 = vmatprep.subr.bf16.mxu1 %v6707_v19  ;;  %v6251_v15 = vcombine.high %v358_v9, %v370_v10  ;;  %v718_v19 = vld [vmem:[#allocation8 + $0xe48] sm:$0xff]  ;;  %v6250_v26 = vcombine.low %v358_v9, %v370_v10 }
  0x8a   :  { %v1018_v57 = vld [vmem:[#allocation8 + $0x17a8] sm:$0xff] }
  0x8b   :  { %v598_v2 = vld [vmem:[#allocation8 + $0xa88] sm:$0xff] }
  0x8c   :  { %v610_v3 = vld [vmem:[#allocation8 + $0xae8] sm:$0xff] }
  0x8d   :  { %v982_v4 = vld [vmem:[#allocation8 + $0x1688] sm:$0xff] }
  0x8e   :  { %v574_v10 = vld [vmem:[#allocation8 + $0x9c8] sm:$0xff] }
 0x10a   :  { %v197_v27 = vpop.f32.mrf.mxu0 }
 0x10b   :  { %v240_v28 = vpop.f32.mrf.mxu1  ;;  %v198_v41 = vadd.f32 %v197_v27, %v102_v31  ;;  %v6634_v27 = vcombine.low %v742_v11, %v754_v12  ;;  %v586_v11 = vld [vmem:[#allocation8 + $0xa28] sm:$0xff] }
 0x10c   :  { %v199_v33 = vpop.f32.mrf.mxu0  ;;  %v241_v42 = vadd.f32 %v240_v28, %v110_v32  ;;  %v958_v12 = vld [vmem:[#allocation8 + $0x15c8] sm:$0xff] }
 0x10d   :  { %v242_v34 = vpop.f32.mrf.mxu1  ;;  %v200_v37 = vadd.f32 %v199_v33, %v106_v29  ;;  %v249_v54 = vmax.f32 %v198_v41, 0.0  ;;  %v706_v33 = vld [vmem:[#allocation8 + $0xde8] sm:$0xff] }
 0x10e   :  { %v201_v35 = vpop.f32.mrf.mxu0  ;;  %v243_v38 = vadd.f32 %v242_v34, %v114_v30  ;;  %v251_v55 = vmax.f32 %v241_v42, 0.0  ;;  %v682_v41 = vld [vmem:[#allocation8 + $0xd28] sm:$0xff] }
 0x10f   :  { %v244_v36 = vpop.f32.mrf.mxu1  ;;  %v202_v39 = vadd.f32 %v201_v35, %v102_v31  ;;  %v250_v49 = vmax.f32 %v200_v37, 0.0  ;;  %v322_v31 = vld [vmem:[#allocation8 + $0x1e8] sm:$0xff]  ;;  %v6610_v35 = vcombine.low %v718_v19, %v730_v20 }
 0x110   :  { %v245_v40 = vadd.f32 %v244_v36, %v110_v32  ;;  %v203_v43 = vpop.f32.mrf.mxu0  ;;  %v252_v50 = vmax.f32 %v243_v38, 0.0  ;;  %v694_v32 = vld [vmem:[#allocation8 + $0xd88] sm:$0xff] }
 0x111   :  { %v246_v44 = vpop.f32.mrf.mxu1  ;;  %v204_v45 = vadd.f32 %v203_v43, %v106_v29  ;;  %v253_v47 = vmax.f32 %v202_v39, 0.0  ;;  %v6611_v29 = vcombine.high %v718_v19, %v730_v20  ;;  %v6587_v37 = vcombine.high %v694_v32, %v706_v33  ;;  %v286_v38 = vld [vmem:[#allocation8 + $0xc8] sm:$0xff] }
 0x112   :  { %v247_v46 = vadd.f32 %v246_v44, %v114_v30  ;;  %v255_v48 = vmax.f32 %v245_v40, 0.0  ;;  %v310_v30 = vld [vmem:[#allocation8 + $0x188] sm:$0xff]  ;;  %v6586_v43 = vcombine.low %v694_v32, %v706_v33 }
 0x113   :  { %v254_v51 = vmax.f32 %v204_v45, 0.0  ;;  %v7267_v61 = vpack.c.bf16 %v253_v47, %v249_v54  ;;  %v6203_v36 = vcombine.high %v310_v30, %v322_v31  ;;  %v298_v39 = vld [vmem:[#allocation8 + $0x128] sm:$0xff]  ;;  %v6202_v42 = vcombine.low %v310_v30, %v322_v31 }
 0x114   :  { %v256_v52 = vmax.f32 %v247_v46, 0.0  ;;  %v7269_v62 = vpack.c.bf16 %v255_v48, %v251_v55  ;;  %v670_v40 = vld [vmem:[#allocation8 + $0xcc8] sm:$0xff]  ;;  %v6179_v44 = vcombine.high %v286_v38, %v298_v39 }
 0x115   :  { %v7263_v59 = vpack.c.bf16 %v254_v51, %v250_v49  ;;  %v6563_v45 = vcombine.high %v670_v40, %v682_v41  ;;  %v262_v46 = vld [vmem:[#allocation8 + $0x8] sm:$0xff]  ;;  %v6562_v51 = vcombine.low %v670_v40, %v682_v41 }
 0x116   :  { %v7265_v60 = vpack.c.bf16 %v256_v52, %v252_v50  ;;  %v274_v47 = vld [vmem:[#allocation8 + $0x68] sm:$0xff]  ;;  %v6178_v50 = vcombine.low %v286_v38, %v298_v39 }
 0x117   :  { %5027 = vmatprep.mubr.bf16.mxu0 %v7263_v59  ;;  %v646_v48 = vld [vmem:[#allocation8 + $0xc08] sm:$0xff]  ;;  %v6155_v52 = vcombine.high %v262_v46, %v274_v47  ;;  %v6154_v58 = vcombine.low %v262_v46, %v274_v47 }
 0x118   :  { %5070 = vmatprep.mubr.bf16.mxu1 %v7265_v60  ;;  %5028 = vmatmul.mubr.bf16.vlgmr.msra.gmra.mxu0 %v7267_v61  ;;  %v658_v49 = vld [vmem:[#allocation8 + $0xc68] sm:$0xff] }
 0x119   :  { %5071 = vmatmul.mubr.bf16.vlgmr.msra.gmra.mxu1 %v7269_v62  ;;  %5082 = vmatpush1.bf16.msra.mxu0 %v6322_v17  ;;  %v334_v17 = vld [vmem:[#allocation8 + $0x248] sm:$0xff]  ;;  %v6539_v53 = vcombine.high %v646_v48, %v658_v49  ;;  %v6538_v63 = vcombine.low %v646_v48, %v658_v49 }
 0x11a   :  { %5125 = vmatpush1.bf16.msra.mxu1 %v6706_v18  ;;  %5113 = vmatprep.mubr.bf16.mxu0 %v7263_v59  ;;  %v346_v18 = vld [vmem:[#allocation8 + $0x2a8] sm:$0xff] }
 0x11b   :  { %5156 = vmatprep.mubr.bf16.mxu1 %v7265_v60  ;;  %5083 = vmatprep.subr.bf16.mxu0 %v6299_v0  ;;  %v6227_v28 = vcombine.high %v334_v17, %v346_v18  ;;  %v6226_v34 = vcombine.low %v334_v17, %v346_v18  ;;  %v622_v54 = vld [vmem:[#allocation8 + $0xb48] sm:$0xff] }
 0x11c   :  { %5126 = vmatprep.subr.bf16.mxu1 %v6683_v1  ;;  %v634_v55 = vld [vmem:[#allocation8 + $0xba8] sm:$0xff]  ;;  %v6899_v1 = vcombine.high %v1006_v56, %v1018_v57 }
 0x11d   :  { %5084 = vmatpush1.bf16.msra.mxu0 %v6298_v5  ;;  %v6515_v0 = vcombine.high %v622_v54, %v634_v55  ;;  %v994_v5 = vld [vmem:[#allocation8 + $0x16e8] sm:$0xff] }
 0x11e   :  { %5127 = vmatpush1.bf16.msra.mxu1 %v6682_v6  ;;  %5085 = vmatprep.subr.bf16.mxu0 %v6275_v7  ;;  %v6514_v6 = vcombine.low %v622_v54, %v634_v55  ;;  %v6898_v7 = vcombine.low %v1006_v56, %v1018_v57  ;;  %v6875_v9 = vcombine.high %v982_v4, %v994_v5  ;;  %v550_v18 = vld [vmem:[#allocation8 + $0x908] sm:$0xff] }
 0x11f   :  { %5128 = vmatprep.subr.bf16.mxu1 %v6659_v8  ;;  %v6491_v8 = vcombine.high %v598_v2, %v610_v3  ;;  %v562_v19 = vld [vmem:[#allocation8 + $0x968] sm:$0xff] }
 0x120   :  { %v934_v20 = vld [vmem:[#allocation8 + $0x1508] sm:$0xff] }
 0x121   :  { %5086 = vmatpush1.bf16.msra.mxu0 %v6274_v13  ;;  %v970_v13 = vld [vmem:[#allocation8 + $0x1628] sm:$0xff] }
 0x122   :  { %5129 = vmatpush1.bf16.msra.mxu1 %v6658_v14  ;;  %5087 = vmatprep.subr.bf16.mxu0 %v6251_v15  ;;  %v6490_v14 = vcombine.low %v598_v2, %v610_v3  ;;  %v6874_v15 = vcombine.low %v982_v4, %v994_v5  ;;  %v6851_v17 = vcombine.high %v958_v12, %v970_v13  ;;  %v526_v31 = vld [vmem:[#allocation8 + $0x848] sm:$0xff]  ;;  %v431_v3 = vld [vmem:[#allocation8 + $0x550] sm:$0xff] }
 0x123   :  { %5130 = vmatprep.subr.bf16.mxu1 %v6635_v16  ;;  %v6467_v16 = vcombine.high %v574_v10, %v586_v11  ;;  %v538_v32 = vld [vmem:[#allocation8 + $0x8a8] sm:$0xff]  ;;  %v443_v4 = vld [vmem:[#allocation8 + $0x5b0] sm:$0xff] }
 0x124   :  { %v910_v33 = vld [vmem:[#allocation8 + $0x1448] sm:$0xff]  ;;  %v815_v5 = vld [vmem:[#allocation8 + $0x1150] sm:$0xff] }
 0x125   :  { %5088 = vmatpush1.bf16.msra.mxu0 %v6250_v26  ;;  %v946_v26 = vld [vmem:[#allocation8 + $0x1568] sm:$0xff] }
 0x126   :  { %5131 = vmatpush1.bf16.msra.mxu1 %v6634_v27  ;;  %5089 = vmatprep.subr.bf16.mxu0 %v6227_v28  ;;  %v6466_v27 = vcombine.low %v574_v10, %v586_v11  ;;  %v6850_v28 = vcombine.low %v958_v12, %v970_v13  ;;  %v6827_v30 = vcombine.high %v934_v20, %v946_v26  ;;  %v502_v39 = vld [vmem:[#allocation8 + $0x788] sm:$0xff]  ;;  %v407_v11 = vld [vmem:[#allocation8 + $0x490] sm:$0xff] }
 0x127   :  { %5132 = vmatprep.subr.bf16.mxu1 %v6611_v29  ;;  %v6443_v29 = vcombine.high %v550_v18, %v562_v19  ;;  %v514_v40 = vld [vmem:[#allocation8 + $0x7e8] sm:$0xff]  ;;  %v419_v12 = vld [vmem:[#allocation8 + $0x4f0] sm:$0xff] }
 0x128   :  { %v886_v41 = vld [vmem:[#allocation8 + $0x1388] sm:$0xff]  ;;  %v791_v13 = vld [vmem:[#allocation8 + $0x1090] sm:$0xff] }
 0x129   :  { %5090 = vmatpush1.bf16.msra.mxu0 %v6226_v34  ;;  %v922_v34 = vld [vmem:[#allocation8 + $0x14a8] sm:$0xff] }
 0x12a   :  { %5133 = vmatpush1.bf16.msra.mxu1 %v6610_v35  ;;  %5091 = vmatprep.subr.bf16.mxu0 %v6203_v36  ;;  %v6442_v35 = vcombine.low %v550_v18, %v562_v19  ;;  %v6826_v36 = vcombine.low %v934_v20, %v946_v26  ;;  %v6803_v38 = vcombine.high %v910_v33, %v922_v34  ;;  %v478_v47 = vld [vmem:[#allocation8 + $0x6c8] sm:$0xff]  ;;  %v383_v19 = vld [vmem:[#allocation8 + $0x3d0] sm:$0xff] }
 0x12b   :  { %5134 = vmatprep.subr.bf16.mxu1 %v6587_v37  ;;  %v6419_v37 = vcombine.high %v526_v31, %v538_v32  ;;  %v490_v48 = vld [vmem:[#allocation8 + $0x728] sm:$0xff]  ;;  %v395_v20 = vld [vmem:[#allocation8 + $0x430] sm:$0xff] }
 0x12c   :  { %v862_v49 = vld [vmem:[#allocation8 + $0x12c8] sm:$0xff]  ;;  %v767_v26 = vld [vmem:[#allocation8 + $0xfd0] sm:$0xff] }
 0x12d   :  { %5092 = vmatpush1.bf16.msra.mxu0 %v6202_v42  ;;  %v898_v42 = vld [vmem:[#allocation8 + $0x13e8] sm:$0xff] }
 0x12e   :  { %5135 = vmatpush1.bf16.msra.mxu1 %v6586_v43  ;;  %5093 = vmatprep.subr.bf16.mxu0 %v6179_v44  ;;  %v6418_v43 = vcombine.low %v526_v31, %v538_v32  ;;  %v6802_v44 = vcombine.low %v910_v33, %v922_v34  ;;  %v6779_v46 = vcombine.high %v886_v41, %v898_v42  ;;  %v454_v55 = vld [vmem:[#allocation8 + $0x608] sm:$0xff]  ;;  %v359_v32 = vld [vmem:[#allocation8 + $0x310] sm:$0xff] }
 0x12f   :  { %5136 = vmatprep.subr.bf16.mxu1 %v6563_v45  ;;  %v6395_v45 = vcombine.high %v502_v39, %v514_v40  ;;  %v466_v56 = vld [vmem:[#allocation8 + $0x668] sm:$0xff]  ;;  %v371_v33 = vld [vmem:[#allocation8 + $0x370] sm:$0xff] }
 0x130   :  { %v838_v57 = vld [vmem:[#allocation8 + $0x1208] sm:$0xff]  ;;  %v743_v34 = vld [vmem:[#allocation8 + $0xf10] sm:$0xff] }
 0x131   :  { %5094 = vmatpush1.bf16.msra.mxu0 %v6178_v50  ;;  %v874_v50 = vld [vmem:[#allocation8 + $0x1328] sm:$0xff] }
 0x132   :  { %5137 = vmatpush1.bf16.msra.mxu1 %v6562_v51  ;;  %5095 = vmatprep.subr.bf16.mxu0 %v6155_v52  ;;  %v6394_v51 = vcombine.low %v502_v39, %v514_v40  ;;  %v6778_v52 = vcombine.low %v886_v41, %v898_v42  ;;  %v6755_v54 = vcombine.high %v862_v49, %v874_v50  ;;  %v335_v40 = vld [vmem:[#allocation8 + $0x250] sm:$0xff] }
 0x133   :  { %5138 = vmatprep.subr.bf16.mxu1 %v6539_v53  ;;  %v6371_v53 = vcombine.high %v478_v47, %v490_v48  ;;  %v347_v41 = vld [vmem:[#allocation8 + $0x2b0] sm:$0xff] }
 0x134   :  { %v719_v42 = vld [vmem:[#allocation8 + $0xe50] sm:$0xff] }
 0x135   :  { %5096 = vmatpush1.bf16.msra.mxu0 %v6154_v58  ;;  %v850_v58 = vld [vmem:[#allocation8 + $0x1268] sm:$0xff] }
 0x136   :  { %5139 = vmatpush1.bf16.msra.mxu1 %v6538_v63  ;;  %5097 = vmatprep.subr.bf16.mxu0 %v6515_v0  ;;  %v6370_v63 = vcombine.low %v478_v47, %v490_v48  ;;  %v6754_v0 = vcombine.low %v862_v49, %v874_v50  ;;  %v6731_v2 = vcombine.high %v838_v57, %v850_v58  ;;  %v311_v48 = vld [vmem:[#allocation8 + $0x190] sm:$0xff] }
 0x137   :  { %5140 = vmatprep.subr.bf16.mxu1 %v6899_v1  ;;  %v6347_v1 = vcombine.high %v454_v55, %v466_v56  ;;  %v323_v49 = vld [vmem:[#allocation8 + $0x1f0] sm:$0xff] }
 0x138   :  { %v695_v50 = vld [vmem:[#allocation8 + $0xd90] sm:$0xff] }
 0x139   :  { %5098 = vmatpush2.bf16.msra.mxu0 %v6514_v6  ;;  %v827_v6 = vld [vmem:[#allocation8 + $0x11b0] sm:$0xff] }
 0x13a   :  { %5141 = vmatpush2.bf16.msra.mxu1 %v6898_v7  ;;  %5099 = vmatprep.subr.bf16.mxu0 %v6491_v8  ;;  %v6346_v7 = vcombine.low %v454_v55, %v466_v56  ;;  %v6730_v8 = vcombine.low %v838_v57, %v850_v58  ;;  %v6709_v10 = vcombine.high %v815_v5, %v827_v6  ;;  %v287_v56 = vld [vmem:[#allocation8 + $0xd0] sm:$0xff] }
 0x13b   :  { %5142 = vmatprep.subr.bf16.mxu1 %v6875_v9  ;;  %v6325_v9 = vcombine.high %v431_v3, %v443_v4  ;;  %v299_v57 = vld [vmem:[#allocation8 + $0x130] sm:$0xff] }
 0x13c   :  { %v671_v58 = vld [vmem:[#allocation8 + $0xcd0] sm:$0xff] }
 0x13d   :  { %5100 = vmatpush2.bf16.msra.mxu0 %v6490_v14  ;;  %v803_v14 = vld [vmem:[#allocation8 + $0x10f0] sm:$0xff] }
 0x13e   :  { %5143 = vmatpush2.bf16.msra.mxu1 %v6874_v15  ;;  %5101 = vmatprep.subr.bf16.mxu0 %v6467_v16  ;;  %v6324_v15 = vcombine.low %v431_v3, %v443_v4  ;;  %v6708_v16 = vcombine.low %v815_v5, %v827_v6  ;;  %v6685_v18 = vcombine.high %v791_v13, %v803_v14  ;;  %v263_v4 = vld [vmem:[#allocation8 + $0x10] sm:$0xff] }
 0x13f   :  { %5144 = vmatprep.subr.bf16.mxu1 %v6851_v17  ;;  %v6301_v17 = vcombine.high %v407_v11, %v419_v12  ;;  %v275_v5 = vld [vmem:[#allocation8 + $0x70] sm:$0xff] }
 0x140   :  { %v647_v6 = vld [vmem:[#allocation8 + $0xc10] sm:$0xff] }
 0x141   :  { %5102 = vmatpush2.bf16.msra.mxu0 %v6466_v27  ;;  %v779_v27 = vld [vmem:[#allocation8 + $0x1030] sm:$0xff] }
 0x142   :  { %5145 = vmatpush2.bf16.msra.mxu1 %v6850_v28  ;;  %5103 = vmatprep.subr.bf16.mxu0 %v6443_v29  ;;  %v6300_v28 = vcombine.low %v407_v11, %v419_v12  ;;  %v6684_v29 = vcombine.low %v791_v13, %v803_v14  ;;  %v6661_v31 = vcombine.high %v767_v26, %v779_v27  ;;  %v623_v12 = vld [vmem:[#allocation8 + $0xb50] sm:$0xff] }
 0x143   :  { %5146 = vmatprep.subr.bf16.mxu1 %v6827_v30  ;;  %v6277_v30 = vcombine.high %v383_v19, %v395_v20  ;;  %v635_v13 = vld [vmem:[#allocation8 + $0xbb0] sm:$0xff] }
 0x144   :  { %v1007_v14 = vld [vmem:[#allocation8 + $0x1750] sm:$0xff] }
 0x145   :  { %5104 = vmatpush2.bf16.msra.mxu0 %v6442_v35  ;;  %v755_v35 = vld [vmem:[#allocation8 + $0xf70] sm:$0xff] }
 0x146   :  { %5147 = vmatpush2.bf16.msra.mxu1 %v6826_v36  ;;  %5105 = vmatprep.subr.bf16.mxu0 %v6419_v37  ;;  %v6276_v36 = vcombine.low %v383_v19, %v395_v20  ;;  %v6660_v37 = vcombine.low %v767_v26, %v779_v27  ;;  %v6637_v39 = vcombine.high %v743_v34, %v755_v35  ;;  %v599_v20 = vld [vmem:[#allocation8 + $0xa90] sm:$0xff] }
 0x147   :  { %5148 = vmatprep.subr.bf16.mxu1 %v6803_v38  ;;  %v6253_v38 = vcombine.high %v359_v32, %v371_v33  ;;  %v611_v26 = vld [vmem:[#allocation8 + $0xaf0] sm:$0xff] }
 0x148   :  { %v983_v27 = vld [vmem:[#allocation8 + $0x1690] sm:$0xff] }
 0x149   :  { %5106 = vmatpush2.bf16.msra.mxu0 %v6418_v43  ;;  %v731_v43 = vld [vmem:[#allocation8 + $0xeb0] sm:$0xff] }
 0x14a   :  { %5149 = vmatpush2.bf16.msra.mxu1 %v6802_v44  ;;  %5107 = vmatprep.subr.bf16.mxu0 %v6395_v45  ;;  %v6252_v44 = vcombine.low %v359_v32, %v371_v33  ;;  %v6636_v45 = vcombine.low %v743_v34, %v755_v35  ;;  %v6613_v47 = vcombine.high %v719_v42, %v731_v43  ;;  %v575_v33 = vld [vmem:[#allocation8 + $0x9d0] sm:$0xff] }
 0x14b   :  { %5150 = vmatprep.subr.bf16.mxu1 %v6779_v46  ;;  %v6229_v46 = vcombine.high %v335_v40, %v347_v41  ;;  %v587_v34 = vld [vmem:[#allocation8 + $0xa30] sm:$0xff] }
 0x14c   :  { %v959_v35 = vld [vmem:[#allocation8 + $0x15d0] sm:$0xff] }
 0x14d   :  { %5108 = vmatpush2.bf16.msra.mxu0 %v6394_v51  ;;  %v707_v51 = vld [vmem:[#allocation8 + $0xdf0] sm:$0xff] }
 0x14e   :  { %5151 = vmatpush2.bf16.msra.mxu1 %v6778_v52  ;;  %5109 = vmatprep.subr.bf16.mxu0 %v6371_v53  ;;  %v6228_v52 = vcombine.low %v335_v40, %v347_v41  ;;  %v6612_v53 = vcombine.low %v719_v42, %v731_v43  ;;  %v6589_v55 = vcombine.high %v695_v50, %v707_v51  ;;  %v551_v41 = vld [vmem:[#allocation8 + $0x910] sm:$0xff] }
 0x14f   :  { %5152 = vmatprep.subr.bf16.mxu1 %v6755_v54  ;;  %v6205_v54 = vcombine.high %v311_v48, %v323_v49  ;;  %v563_v42 = vld [vmem:[#allocation8 + $0x970] sm:$0xff] }
 0x150   :  { %v935_v43 = vld [vmem:[#allocation8 + $0x1510] sm:$0xff] }
 0x151   :  { %5110 = vmatpush2.bf16.msra.mxu0 %v6370_v63  ;;  %v683_v63 = vld [vmem:[#allocation8 + $0xd30] sm:$0xff] }
 0x152   :  { %5153 = vmatpush2.bf16.msra.mxu1 %v6754_v0  ;;  %5111 = vmatprep.subr.bf16.mxu0 %v6347_v1  ;;  %v6204_v0 = vcombine.low %v311_v48, %v323_v49  ;;  %v6588_v1 = vcombine.low %v695_v50, %v707_v51  ;;  %v6565_v3 = vcombine.high %v671_v58, %v683_v63  ;;  %v527_v49 = vld [vmem:[#allocation8 + $0x850] sm:$0xff] }
 0x153   :  { %5154 = vmatprep.subr.bf16.mxu1 %v6731_v2  ;;  %v6181_v2 = vcombine.high %v287_v56, %v299_v57  ;;  %v539_v50 = vld [vmem:[#allocation8 + $0x8b0] sm:$0xff] }
 0x154   :  { %v911_v51 = vld [vmem:[#allocation8 + $0x1450] sm:$0xff] }
 0x155   :  { %5112 = vmatpush2.bf16.msra.mxu0 %v6346_v7  ;;  %v659_v7 = vld [vmem:[#allocation8 + $0xc70] sm:$0xff] }
 0x156   :  { %5155 = vmatpush2.bf16.msra.mxu1 %v6730_v8  ;;  %5167 = vmatprep.subr.bf16.mxu0 %v6325_v9  ;;  %v6180_v8 = vcombine.low %v287_v56, %v299_v57  ;;  %v6564_v9 = vcombine.low %v671_v58, %v683_v63  ;;  %v6541_v11 = vcombine.high %v647_v6, %v659_v7  ;;  %v503_v57 = vld [vmem:[#allocation8 + $0x790] sm:$0xff] }
 0x157   :  { %5210 = vmatprep.subr.bf16.mxu1 %v6709_v10  ;;  %v6157_v10 = vcombine.high %v263_v4, %v275_v5  ;;  %v515_v58 = vld [vmem:[#allocation8 + $0x7f0] sm:$0xff] }
 0x158   :  { %5114 = vmatmul.mubr.bf16.vlgmr.msra.gmra.mxu0 %v7267_v61  ;;  %v887_v63 = vld [vmem:[#allocation8 + $0x1390] sm:$0xff] }
 0x159   :  { %5157 = vmatmul.mubr.bf16.vlgmr.msra.gmra.mxu1 %v7269_v62  ;;  %5168 = vmatpush1.bf16.msra.mxu0 %v6324_v15  ;;  %v1019_v15 = vld [vmem:[#allocation8 + $0x17b0] sm:$0xff] }
 0x15a   :  { %5199 = vmatprep.mubr.bf16.mxu0 %v7263_v59  ;;  %5211 = vmatpush1.bf16.msra.mxu1 %v6708_v16  ;;  %v6156_v16 = vcombine.low %v263_v4, %v275_v5  ;;  %v6901_v19 = vcombine.high %v1007_v14, %v1019_v15  ;;  %v479_v5 = vld [vmem:[#allocation8 + $0x6d0] sm:$0xff] }
 0x15b   :  { %5242 = vmatprep.mubr.bf16.mxu1 %v7265_v60  ;;  %5169 = vmatprep.subr.bf16.mxu0 %v6301_v17  ;;  %v6540_v17 = vcombine.low %v647_v6, %v659_v7  ;;  %v491_v6 = vld [vmem:[#allocation8 + $0x730] sm:$0xff] }
 0x15c   :  { %5212 = vmatprep.subr.bf16.mxu1 %v6685_v18  ;;  %v6517_v18 = vcombine.high %v623_v12, %v635_v13  ;;  %v863_v7 = vld [vmem:[#allocation8 + $0x12d0] sm:$0xff] }
 0x15d   :  { %5170 = vmatpush1.bf16.msra.mxu0 %v6300_v28  ;;  %v995_v28 = vld [vmem:[#allocation8 + $0x16f0] sm:$0xff] }
 0x15e   :  { %5213 = vmatpush1.bf16.msra.mxu1 %v6684_v29  ;;  %5171 = vmatprep.subr.bf16.mxu0 %v6277_v30  ;;  %v6516_v29 = vcombine.low %v623_v12, %v635_v13  ;;  %v6900_v30 = vcombine.low %v1007_v14, %v1019_v15  ;;  %v6877_v32 = vcombine.high %v983_v27, %v995_v28  ;;  %v455_v13 = vld [vmem:[#allocation8 + $0x610] sm:$0xff] }
 0x15f   :  { %5214 = vmatprep.subr.bf16.mxu1 %v6661_v31  ;;  %v6493_v31 = vcombine.high %v599_v20, %v611_v26  ;;  %v467_v14 = vld [vmem:[#allocation8 + $0x670] sm:$0xff] }
 0x160   :  { %v839_v15 = vld [vmem:[#allocation8 + $0x1210] sm:$0xff] }
 0x161   :  { %5172 = vmatpush1.bf16.msra.mxu0 %v6276_v36  ;;  %v971_v36 = vld [vmem:[#allocation8 + $0x1630] sm:$0xff] }
 0x162   :  { %5215 = vmatpush1.bf16.msra.mxu1 %v6660_v37  ;;  %5173 = vmatprep.subr.bf16.mxu0 %v6253_v38  ;;  %v6492_v37 = vcombine.low %v599_v20, %v611_v26  ;;  %v6876_v38 = vcombine.low %v983_v27, %v995_v28  ;;  %v6853_v40 = vcombine.high %v959_v35, %v971_v36  ;;  %v432_v26 = vld [vmem:[#allocation8 + $0x558] sm:$0xff] }
 0x163   :  { %5216 = vmatprep.subr.bf16.mxu1 %v6637_v39  ;;  %v6469_v39 = vcombine.high %v575_v33, %v587_v34  ;;  %v444_v27 = vld [vmem:[#allocation8 + $0x5b8] sm:$0xff] }
 0x164   :  { %v816_v28 = vld [vmem:[#allocation8 + $0x1158] sm:$0xff] }
 0x165   :  { %5174 = vmatpush1.bf16.msra.mxu0 %v6252_v44  ;;  %v947_v44 = vld [vmem:[#allocation8 + $0x1570] sm:$0xff] }
 0x166   :  { %5217 = vmatpush1.bf16.msra.mxu1 %v6636_v45  ;;  %5175 = vmatprep.subr.bf16.mxu0 %v6229_v46  ;;  %v6468_v45 = vcombine.low %v575_v33, %v587_v34  ;;  %v6852_v46 = vcombine.low %v959_v35, %v971_v36  ;;  %v6829_v48 = vcombine.high %v935_v43, %v947_v44  ;;  %v408_v34 = vld [vmem:[#allocation8 + $0x498] sm:$0xff] }
 0x167   :  { %5218 = vmatprep.subr.bf16.mxu1 %v6613_v47  ;;  %v6445_v47 = vcombine.high %v551_v41, %v563_v42  ;;  %v420_v35 = vld [vmem:[#allocation8 + $0x4f8] sm:$0xff]  ;;  %v6326_v36 = vcombine.low %v432_v26, %v444_v27 }
 0x169   :  { %5176 = vmatpush1.bf16.msra.mxu0 %v6228_v52  ;;  %v923_v52 = vld [vmem:[#allocation8 + $0x14b0] sm:$0xff] }
 0x16a   :  { %5219 = vmatpush1.bf16.msra.mxu1 %v6612_v53  ;;  %5177 = vmatprep.subr.bf16.mxu0 %v6205_v54  ;;  %v6444_v53 = vcombine.low %v551_v41, %v563_v42  ;;  %v6828_v54 = vcombine.low %v935_v43, %v947_v44  ;;  %v6805_v56 = vcombine.high %v911_v51, %v923_v52  ;;  %v384_v41 = vld [vmem:[#allocation8 + $0x3d8] sm:$0xff] }
 0x16b   :  { %5220 = vmatprep.subr.bf16.mxu1 %v6589_v55  ;;  %v6421_v55 = vcombine.high %v527_v49, %v539_v50  ;;  %v396_v42 = vld [vmem:[#allocation8 + $0x438] sm:$0xff] }
 0x16c   :  { %v768_v44 = vld [vmem:[#allocation8 + $0xfd8] sm:$0xff] }
 0x16d   :  { %5178 = vmatpush1.bf16.msra.mxu0 %v6204_v0  ;;  %v899_v0 = vld [vmem:[#allocation8 + $0x13f0] sm:$0xff] }
 0x16e   :  { %5221 = vmatpush1.bf16.msra.mxu1 %v6588_v1  ;;  %5179 = vmatprep.subr.bf16.mxu0 %v6181_v2  ;;  %v6420_v1 = vcombine.low %v527_v49, %v539_v50  ;;  %v6804_v2 = vcombine.low %v911_v51, %v923_v52  ;;  %v6781_v4 = vcombine.high %v887_v63, %v899_v0  ;;  %v360_v50 = vld [vmem:[#allocation8 + $0x318] sm:$0xff] }
 0x16f   :  { %5222 = vmatprep.subr.bf16.mxu1 %v6565_v3  ;;  %v6397_v3 = vcombine.high %v503_v57, %v515_v58  ;;  %v372_v51 = vld [vmem:[#allocation8 + $0x378] sm:$0xff] }
 0x170   :  { %v744_v52 = vld [vmem:[#allocation8 + $0xf18] sm:$0xff] }
 0x171   :  { %5180 = vmatpush1.bf16.msra.mxu0 %v6180_v8  ;;  %v875_v8 = vld [vmem:[#allocation8 + $0x1330] sm:$0xff] }
 0x172   :  { %5223 = vmatpush1.bf16.msra.mxu1 %v6564_v9  ;;  %5181 = vmatprep.subr.bf16.mxu0 %v6157_v10  ;;  %v6396_v9 = vcombine.low %v503_v57, %v515_v58  ;;  %v6780_v10 = vcombine.low %v887_v63, %v899_v0  ;;  %v6757_v12 = vcombine.high %v863_v7, %v875_v8  ;;  %v336_v58 = vld [vmem:[#allocation8 + $0x258] sm:$0xff] }
 0x173   :  { %5224 = vmatprep.subr.bf16.mxu1 %v6541_v11  ;;  %v6373_v11 = vcombine.high %v479_v5, %v491_v6  ;;  %v348_v63 = vld [vmem:[#allocation8 + $0x2b8] sm:$0xff] }
 0x174   :  { %v720_v0 = vld [vmem:[#allocation8 + $0xe58] sm:$0xff] }
 0x175   :  { %5182 = vmatpush1.bf16.msra.mxu0 %v6156_v16  ;;  %v851_v16 = vld [vmem:[#allocation8 + $0x1270] sm:$0xff] }
 0x176   :  { %5225 = vmatpush1.bf16.msra.mxu1 %v6540_v17  ;;  %5183 = vmatprep.subr.bf16.mxu0 %v6517_v18  ;;  %v6372_v17 = vcombine.low %v479_v5, %v491_v6  ;;  %v6756_v18 = vcombine.low %v863_v7, %v875_v8  ;;  %v6733_v20 = vcombine.high %v839_v15, %v851_v16  ;;  %v312_v6 = vld [vmem:[#allocation8 + $0x198] sm:$0xff] }
 0x177   :  { %5226 = vmatprep.subr.bf16.mxu1 %v6901_v19  ;;  %v6349_v19 = vcombine.high %v455_v13, %v467_v14  ;;  %v324_v7 = vld [vmem:[#allocation8 + $0x1f8] sm:$0xff] }
 0x178   :  { %v696_v8 = vld [vmem:[#allocation8 + $0xd98] sm:$0xff] }
 0x179   :  { %5184 = vmatpush2.bf16.msra.mxu0 %v6516_v29  ;;  %v828_v29 = vld [vmem:[#allocation8 + $0x11b8] sm:$0xff] }
 0x17a   :  { %5227 = vmatpush2.bf16.msra.mxu1 %v6900_v30  ;;  %5185 = vmatprep.subr.bf16.mxu0 %v6493_v31  ;;  %v6348_v30 = vcombine.low %v455_v13, %v467_v14  ;;  %v6732_v31 = vcombine.low %v839_v15, %v851_v16  ;;  %v6711_v33 = vcombine.high %v816_v28, %v828_v29  ;;  %v288_v14 = vld [vmem:[#allocation8 + $0xd8] sm:$0xff] }
 0x17b   :  { %5228 = vmatprep.subr.bf16.mxu1 %v6877_v32  ;;  %v6327_v32 = vcombine.high %v432_v26, %v444_v27  ;;  %v300_v15 = vld [vmem:[#allocation8 + $0x138] sm:$0xff] }
 0x17c   :  { %v672_v16 = vld [vmem:[#allocation8 + $0xcd8] sm:$0xff] }
 0x17d   :  { %5186 = vmatpush2.bf16.msra.mxu0 %v6492_v37  ;;  %v792_v37 = vld [vmem:[#allocation8 + $0x1098] sm:$0xff] }
 0x17e   :  { %5229 = vmatpush2.bf16.msra.mxu1 %v6876_v38  ;;  %5187 = vmatprep.subr.bf16.mxu0 %v6469_v39  ;;  %v804_v38 = vld [vmem:[#allocation8 + $0x10f8] sm:$0xff]  ;;  %v6710_v39 = vcombine.low %v816_v28, %v828_v29 }
 0x17f   :  { %5230 = vmatprep.subr.bf16.mxu1 %v6853_v40  ;;  %v6303_v40 = vcombine.high %v408_v34, %v420_v35  ;;  %v6687_v43 = vcombine.high %v792_v37, %v804_v38  ;;  %v264_v27 = vld [vmem:[#allocation8 + $0x18] sm:$0xff] }
 0x180   :  { %v276_v28 = vld [vmem:[#allocation8 + $0x78] sm:$0xff] }
 0x181   :  { %5188 = vmatpush2.bf16.msra.mxu0 %v6468_v45  ;;  %v780_v45 = vld [vmem:[#allocation8 + $0x1038] sm:$0xff] }
 0x182   :  { %5231 = vmatpush2.bf16.msra.mxu1 %v6852_v46  ;;  %5189 = vmatprep.subr.bf16.mxu0 %v6445_v47  ;;  %v6302_v46 = vcombine.low %v408_v34, %v420_v35  ;;  %v6686_v47 = vcombine.low %v792_v37, %v804_v38  ;;  %v6663_v49 = vcombine.high %v768_v44, %v780_v45  ;;  %v648_v29 = vld [vmem:[#allocation8 + $0xc18] sm:$0xff] }
 0x183   :  { %5232 = vmatprep.subr.bf16.mxu1 %v6829_v48  ;;  %v6279_v48 = vcombine.high %v384_v41, %v396_v42  ;;  %v624_v35 = vld [vmem:[#allocation8 + $0xb58] sm:$0xff] }
 0x184   :  { %v1008_v37 = vld [vmem:[#allocation8 + $0x1758] sm:$0xff] }
 0x185   :  { %5190 = vmatpush2.bf16.msra.mxu0 %v6444_v53  ;;  %v756_v53 = vld [vmem:[#allocation8 + $0xf78] sm:$0xff] }
 0x186   :  { %5233 = vmatpush2.bf16.msra.mxu1 %v6828_v54  ;;  %5191 = vmatprep.subr.bf16.mxu0 %v6421_v55  ;;  %v6278_v54 = vcombine.low %v384_v41, %v396_v42  ;;  %v6662_v55 = vcombine.low %v768_v44, %v780_v45  ;;  %v6639_v57 = vcombine.high %v744_v52, %v756_v53  ;;  %v1020_v38 = vld [vmem:[#allocation8 + $0x17b8] sm:$0xff] }
 0x187   :  { %5234 = vmatprep.subr.bf16.mxu1 %v6805_v56  ;;  %v6255_v56 = vcombine.high %v360_v50, %v372_v51  ;;  %v6903_v42 = vcombine.high %v1008_v37, %v1020_v38  ;;  %v612_v44 = vld [vmem:[#allocation8 + $0xaf8] sm:$0xff] }
 0x188   :  { %v984_v45 = vld [vmem:[#allocation8 + $0x1698] sm:$0xff] }
 0x189   :  { %5192 = vmatpush2.bf16.msra.mxu0 %v6420_v1  ;;  %v732_v1 = vld [vmem:[#allocation8 + $0xeb8] sm:$0xff] }
 0x18a   :  { %5235 = vmatpush2.bf16.msra.mxu1 %v6804_v2  ;;  %5193 = vmatprep.subr.bf16.mxu0 %v6397_v3  ;;  %v6254_v2 = vcombine.low %v360_v50, %v372_v51  ;;  %v6638_v3 = vcombine.low %v744_v52, %v756_v53  ;;  %v6615_v5 = vcombine.high %v720_v0, %v732_v1  ;;  %v576_v51 = vld [vmem:[#allocation8 + $0x9d8] sm:$0xff] }
 0x18b   :  { %5236 = vmatprep.subr.bf16.mxu1 %v6781_v4  ;;  %v6231_v4 = vcombine.high %v336_v58, %v348_v63  ;;  %v588_v52 = vld [vmem:[#allocation8 + $0xa38] sm:$0xff] }
 0x18c   :  { %v960_v53 = vld [vmem:[#allocation8 + $0x15d8] sm:$0xff] }
 0x18d   :  { %5194 = vmatpush2.bf16.msra.mxu0 %v6396_v9  ;;  %v708_v9 = vld [vmem:[#allocation8 + $0xdf8] sm:$0xff] }
 0x18e   :  { %5237 = vmatpush2.bf16.msra.mxu1 %v6780_v10  ;;  %5195 = vmatprep.subr.bf16.mxu0 %v6373_v11  ;;  %v6230_v10 = vcombine.low %v336_v58, %v348_v63  ;;  %v6614_v11 = vcombine.low %v720_v0, %v732_v1  ;;  %v6591_v13 = vcombine.high %v696_v8, %v708_v9  ;;  %v552_v63 = vld [vmem:[#allocation8 + $0x918] sm:$0xff] }
 0x18f   :  { %5238 = vmatprep.subr.bf16.mxu1 %v6757_v12  ;;  %v6207_v12 = vcombine.high %v312_v6, %v324_v7  ;;  %v564_v0 = vld [vmem:[#allocation8 + $0x978] sm:$0xff] }
 0x190   :  { %v936_v1 = vld [vmem:[#allocation8 + $0x1518] sm:$0xff] }
 0x191   :  { %5196 = vmatpush2.bf16.msra.mxu0 %v6372_v17  ;;  %v684_v17 = vld [vmem:[#allocation8 + $0xd38] sm:$0xff] }
 0x192   :  { %5239 = vmatpush2.bf16.msra.mxu1 %v6756_v18  ;;  %5197 = vmatprep.subr.bf16.mxu0 %v6349_v19  ;;  %v6206_v18 = vcombine.low %v312_v6, %v324_v7  ;;  %v6590_v19 = vcombine.low %v696_v8, %v708_v9  ;;  %v6567_v26 = vcombine.high %v672_v16, %v684_v17  ;;  %v528_v7 = vld [vmem:[#allocation8 + $0x858] sm:$0xff] }
 0x193   :  { %5240 = vmatprep.subr.bf16.mxu1 %v6733_v20  ;;  %v6183_v20 = vcombine.high %v288_v14, %v300_v15  ;;  %v540_v8 = vld [vmem:[#allocation8 + $0x8b8] sm:$0xff] }
 0x194   :  { %v912_v9 = vld [vmem:[#allocation8 + $0x1458] sm:$0xff] }
 0x195   :  { %5198 = vmatpush2.bf16.msra.mxu0 %v6348_v30  ;;  %v660_v30 = vld [vmem:[#allocation8 + $0xc78] sm:$0xff] }
 0x196   :  { %5241 = vmatpush2.bf16.msra.mxu1 %v6732_v31  ;;  %5253 = vmatprep.subr.bf16.mxu0 %v6327_v32  ;;  %v6182_v31 = vcombine.low %v288_v14, %v300_v15  ;;  %v6566_v32 = vcombine.low %v672_v16, %v684_v17  ;;  %v6543_v34 = vcombine.high %v648_v29, %v660_v30  ;;  %v504_v15 = vld [vmem:[#allocation8 + $0x798] sm:$0xff] }
 0x197   :  { %5296 = vmatprep.subr.bf16.mxu1 %v6711_v33  ;;  %v6159_v33 = vcombine.high %v264_v27, %v276_v28  ;;  %v516_v16 = vld [vmem:[#allocation8 + $0x7f8] sm:$0xff] }
 0x198   :  { %5200 = vmatmul.mubr.bf16.vlgmr.msra.gmra.mxu0 %v7267_v61  ;;  %v888_v17 = vld [vmem:[#allocation8 + $0x1398] sm:$0xff] }
 0x199   :  { %5243 = vmatmul.mubr.bf16.vlgmr.msra.gmra.mxu1 %v7269_v62  ;;  %5254 = vmatpush1.bf16.msra.mxu0 %v6326_v36  ;;  %v636_v36 = vld [vmem:[#allocation8 + $0xbb8] sm:$0xff] }
 0x19a   :  { %5285 = vmatprep.mubr.bf16.mxu0 %v7263_v59  ;;  %5297 = vmatpush1.bf16.msra.mxu1 %v6710_v39  ;;  %v6158_v39 = vcombine.low %v264_v27, %v276_v28  ;;  %v6519_v41 = vcombine.high %v624_v35, %v636_v36  ;;  %v480_v28 = vld [vmem:[#allocation8 + $0x6d8] sm:$0xff] }
 0x19b   :  { %5328 = vmatprep.mubr.bf16.mxu1 %v7265_v60  ;;  %5255 = vmatprep.subr.bf16.mxu0 %v6303_v40  ;;  %v6542_v40 = vcombine.low %v648_v29, %v660_v30  ;;  %v492_v29 = vld [vmem:[#allocation8 + $0x738] sm:$0xff] }
 0x19c   :  { %5298 = vmatprep.subr.bf16.mxu1 %v6687_v43  ;;  %v600_v43 = vld [vmem:[#allocation8 + $0xa98] sm:$0xff] }
 0x19d   :  { %5256 = vmatpush1.bf16.msra.mxu0 %v6302_v46  ;;  %v996_v46 = vld [vmem:[#allocation8 + $0x16f8] sm:$0xff] }
 0x19e   :  { %5299 = vmatpush1.bf16.msra.mxu1 %v6686_v47  ;;  %5257 = vmatprep.subr.bf16.mxu0 %v6279_v48  ;;  %v6518_v47 = vcombine.low %v624_v35, %v636_v36  ;;  %v6902_v48 = vcombine.low %v1008_v37, %v1020_v38  ;;  %v6879_v50 = vcombine.high %v984_v45, %v996_v46  ;;  %v864_v30 = vld [vmem:[#allocation8 + $0x12d8] sm:$0xff] }
 0x19f   :  { %5300 = vmatprep.subr.bf16.mxu1 %v6663_v49  ;;  %v6495_v49 = vcombine.high %v600_v43, %v612_v44  ;;  %v456_v36 = vld [vmem:[#allocation8 + $0x618] sm:$0xff] }
 0x1a0   :  { %v468_v37 = vld [vmem:[#allocation8 + $0x678] sm:$0xff] }
 0x1a1   :  { %5258 = vmatpush1.bf16.msra.mxu0 %v6278_v54  ;;  %v972_v54 = vld [vmem:[#allocation8 + $0x1638] sm:$0xff] }
 0x1a2   :  { %5301 = vmatpush1.bf16.msra.mxu1 %v6662_v55  ;;  %5259 = vmatprep.subr.bf16.mxu0 %v6255_v56  ;;  %v6494_v55 = vcombine.low %v600_v43, %v612_v44  ;;  %v6878_v56 = vcombine.low %v984_v45, %v996_v46  ;;  %v6855_v58 = vcombine.high %v960_v53, %v972_v54  ;;  %v840_v38 = vld [vmem:[#allocation8 + $0x1218] sm:$0xff]  ;;  %v433_v44 = vld [vmem:[#allocation8 + $0x560] sm:$0xff] }
 0x1a3   :  { %5302 = vmatprep.subr.bf16.mxu1 %v6639_v57  ;;  %v6471_v57 = vcombine.high %v576_v51, %v588_v52  ;;  %v445_v45 = vld [vmem:[#allocation8 + $0x5c0] sm:$0xff] }
 0x1a4   :  { %v817_v46 = vld [vmem:[#allocation8 + $0x1160] sm:$0xff] }
 0x1a5   :  { %5260 = vmatpush1.bf16.msra.mxu0 %v6254_v2  ;;  %v948_v2 = vld [vmem:[#allocation8 + $0x1578] sm:$0xff] }
 0x1a6   :  { %5303 = vmatpush1.bf16.msra.mxu1 %v6638_v3  ;;  %5261 = vmatprep.subr.bf16.mxu0 %v6231_v4  ;;  %v6470_v3 = vcombine.low %v576_v51, %v588_v52  ;;  %v6854_v4 = vcombine.low %v960_v53, %v972_v54  ;;  %v6831_v6 = vcombine.high %v936_v1, %v948_v2  ;;  %v7285_v51 = vld [vmem:[#allocation10] sm:$0xff] }
 0x1a7   :  { %5304 = vmatprep.subr.bf16.mxu1 %v6615_v5  ;;  %v6447_v5 = vcombine.high %v552_v63, %v564_v0  ;;  %v409_v53 = vld [vmem:[#allocation8 + $0x4a0] sm:$0xff] }
 0x1a8   :  { %v421_v54 = vld [vmem:[#allocation8 + $0x500] sm:$0xff] }
 0x1a9   :  { %5262 = vmatpush1.bf16.msra.mxu0 %v6230_v10  ;;  %v924_v10 = vld [vmem:[#allocation8 + $0x14b8] sm:$0xff] }
 0x1aa   :  { %5305 = vmatpush1.bf16.msra.mxu1 %v6614_v11  ;;  %5263 = vmatprep.subr.bf16.mxu0 %v6207_v12  ;;  %v6446_v11 = vcombine.low %v552_v63, %v564_v0  ;;  %v6830_v12 = vcombine.low %v936_v1, %v948_v2  ;;  %v6807_v14 = vcombine.high %v912_v9, %v924_v10  ;;  %v385_v2 = vld [vmem:[#allocation8 + $0x3e0] sm:$0xff] }
 0x1ab   :  { %5306 = vmatprep.subr.bf16.mxu1 %v6591_v13  ;;  %v6423_v13 = vcombine.high %v528_v7, %v540_v8  ;;  %v1042_v0 = vrot.slane %v7285_v51, %v7248_v22  ;;  %v6305_v1 = vcombine.high %v409_v53, %v421_v54 }
 0x1ad   :  { %5264 = vmatpush1.bf16.msra.mxu0 %v6206_v18  ;;  %v900_v18 = vld [vmem:[#allocation8 + $0x13f8] sm:$0xff] }
 0x1ae   :  { %5307 = vmatpush1.bf16.msra.mxu1 %v6590_v19  ;;  %5265 = vmatprep.subr.bf16.mxu0 %v6183_v20  ;;  %v6422_v19 = vcombine.low %v528_v7, %v540_v8  ;;  %v6806_v20 = vcombine.low %v912_v9, %v924_v10  ;;  %v6783_v27 = vcombine.high %v888_v17, %v900_v18  ;;  %v769_v7 = vld [vmem:[#allocation8 + $0xfe0] sm:$0xff] }
 0x1af   :  { %5308 = vmatprep.subr.bf16.mxu1 %v6567_v26  ;;  %v6399_v26 = vcombine.high %v504_v15, %v516_v16  ;;  %v781_v8 = vld [vmem:[#allocation8 + $0x1040] sm:$0xff]  ;;  %v6304_v10 = vcombine.low %v409_v53, %v421_v54 }
 0x1b1   :  { %5266 = vmatpush1.bf16.msra.mxu0 %v6182_v31  ;;  %v876_v31 = vld [vmem:[#allocation8 + $0x1338] sm:$0xff] }
 0x1b2   :  { %5309 = vmatpush1.bf16.msra.mxu1 %v6566_v32  ;;  %5267 = vmatprep.subr.bf16.mxu0 %v6159_v33  ;;  %v6398_v32 = vcombine.low %v504_v15, %v516_v16  ;;  %v6782_v33 = vcombine.low %v888_v17, %v900_v18  ;;  %v6759_v35 = vcombine.high %v864_v30, %v876_v31  ;;  %v361_v18 = vld [vmem:[#allocation8 + $0x320] sm:$0xff] }
 0x1b3   :  { %5310 = vmatprep.subr.bf16.mxu1 %v6543_v34  ;;  %v6375_v34 = vcombine.high %v480_v28, %v492_v29  ;;  %v6665_v17 = vcombine.high %v769_v7, %v781_v8 }
 0x1b5   :  { %5268 = vmatpush1.bf16.msra.mxu0 %v6158_v39  ;;  %v852_v39 = vld [vmem:[#allocation8 + $0x1278] sm:$0xff] }
 0x1b6   :  { %5311 = vmatpush1.bf16.msra.mxu1 %v6542_v40  ;;  %5269 = vmatprep.subr.bf16.mxu0 %v6519_v41  ;;  %v6374_v40 = vcombine.low %v480_v28, %v492_v29  ;;  %v6758_v41 = vcombine.low %v864_v30, %v876_v31  ;;  %v6735_v43 = vcombine.high %v840_v38, %v852_v39  ;;  %v757_v28 = vld [vmem:[#allocation8 + $0xf80] sm:$0xff] }
 0x1b7   :  { %5312 = vmatprep.subr.bf16.mxu1 %v6903_v42  ;;  %v6351_v42 = vcombine.high %v456_v36, %v468_v37 }
 0x1b9   :  { %5270 = vmatpush2.bf16.msra.mxu0 %v6518_v47  ;;  %v829_v47 = vld [vmem:[#allocation8 + $0x11c0] sm:$0xff] }
 0x1ba   :  { %5313 = vmatpush2.bf16.msra.mxu1 %v6902_v48  ;;  %5271 = vmatprep.subr.bf16.mxu0 %v6495_v49  ;;  %v6350_v48 = vcombine.low %v456_v36, %v468_v37  ;;  %v6734_v49 = vcombine.low %v840_v38, %v852_v39  ;;  %v6713_v52 = vcombine.high %v817_v46, %v829_v47  ;;  %v337_v38 = vld [vmem:[#allocation8 + $0x260] sm:$0xff] }
 0x1bb   :  { %5314 = vmatprep.subr.bf16.mxu1 %v6879_v50  ;;  %v6329_v50 = vcombine.high %v433_v44, %v445_v45  ;;  %v6712_v63 = vcombine.low %v817_v46, %v829_v47  ;;  %v349_v39 = vld [vmem:[#allocation8 + $0x2c0] sm:$0xff] }
 0x1bc   :  { %v6233_v46 = vcombine.high %v337_v38, %v349_v39  ;;  %v6232_v53 = vcombine.low %v337_v38, %v349_v39  ;;  %v577_v38 = vld [vmem:[#allocation8 + $0x9e0] sm:$0xff] }
 0x1bd   :  { %5272 = vmatpush2.bf16.msra.mxu0 %v6494_v55  ;;  %v6328_v55 = vcombine.low %v433_v44, %v445_v45  ;;  %v589_v39 = vld [vmem:[#allocation8 + $0xa40] sm:$0xff] }
 0x1be   :  { %5315 = vmatpush2.bf16.msra.mxu1 %v6878_v56  ;;  %5273 = vmatprep.subr.bf16.mxu0 %v6471_v57  ;;  %v1038_v56 = vrot.slane %v7285_v51, %v7254_v24  ;;  %v793_v57 = vld [vmem:[#allocation8 + $0x10a0] sm:$0xff] }
 0x1bf   :  { %5316 = vmatprep.subr.bf16.mxu1 %v6855_v58  ;;  %v805_v58 = vld [vmem:[#allocation8 + $0x1100] sm:$0xff] }
 0x1c1   :  { %5274 = vmatpush2.bf16.msra.mxu0 %v6470_v3  ;;  %v397_v3 = vld [vmem:[#allocation8 + $0x440] sm:$0xff] }
 0x1c2   :  { %5317 = vmatpush2.bf16.msra.mxu1 %v6854_v4  ;;  %5275 = vmatprep.subr.bf16.mxu0 %v6447_v5  ;;  %v6280_v31 = vcombine.low %v385_v2, %v397_v3 }
 0x1c3   :  { %5318 = vmatprep.subr.bf16.mxu1 %v6831_v6  ;;  %v6689_v6 = vcombine.high %v793_v57, %v805_v58 }
 0x1c5   :  { %5276 = vmatpush2.bf16.msra.mxu0 %v6446_v11 }
 0x1c6   :  { %5319 = vmatpush2.bf16.msra.mxu1 %v6830_v12  ;;  %5277 = vmatprep.subr.bf16.mxu0 %v6423_v13  ;;  %v6688_v13 = vcombine.low %v793_v57, %v805_v58  ;;  %v289_v57 = vld [vmem:[#allocation8 + $0xe0] sm:$0xff] }
 0x1c7   :  { %5320 = vmatprep.subr.bf16.mxu1 %v6807_v14  ;;  %v6281_v14 = vcombine.high %v385_v2, %v397_v3  ;;  %v301_v58 = vld [vmem:[#allocation8 + $0x140] sm:$0xff] }
 0x1c9   :  { %5278 = vmatpush2.bf16.msra.mxu0 %v6422_v19  ;;  %v373_v19 = vld [vmem:[#allocation8 + $0x380] sm:$0xff] }
 0x1ca   :  { %5321 = vmatpush2.bf16.msra.mxu1 %v6806_v20  ;;  %5279 = vmatprep.subr.bf16.mxu0 %v6399_v26  ;;  %v6256_v44 = vcombine.low %v361_v18, %v373_v19 }
 0x1cb   :  { %5322 = vmatprep.subr.bf16.mxu1 %v6783_v27  ;;  %v745_v27 = vld [vmem:[#allocation8 + $0xf20] sm:$0xff] }
 0x1cc   :  { %v6641_v37 = vcombine.high %v745_v27, %v757_v28  ;;  %v6640_v45 = vcombine.low %v745_v27, %v757_v28 }
 0x1cd   :  { %5280 = vmatpush2.bf16.msra.mxu0 %v6398_v32 }
 0x1ce   :  { %5323 = vmatpush2.bf16.msra.mxu1 %v6782_v33  ;;  %5281 = vmatprep.subr.bf16.mxu0 %v6375_v34  ;;  %v6664_v33 = vcombine.low %v769_v7, %v781_v8  ;;  %v6257_v34 = vcombine.high %v361_v18, %v373_v19  ;;  %v277_v7 = vld [vmem:[#allocation8 + $0x80] sm:$0xff] }
 0x1cf   :  { %5324 = vmatprep.subr.bf16.mxu1 %v6759_v35  ;;  %v1009_v19 = vld [vmem:[#allocation8 + $0x1760] sm:$0xff] }
 0x1d1   :  { %5282 = vmatpush2.bf16.msra.mxu0 %v6374_v40 }
 0x1d2   :  { %5325 = vmatpush2.bf16.msra.mxu1 %v6758_v41  ;;  %5283 = vmatprep.subr.bf16.mxu0 %v6351_v42  ;;  %v721_v41 = vld [vmem:[#allocation8 + $0xe60] sm:$0xff] }
 0x1d3   :  { %5326 = vmatprep.subr.bf16.mxu1 %v6735_v43  ;;  %v733_v42 = vld [vmem:[#allocation8 + $0xec0] sm:$0xff] }
 0x1d4   :  { %v6617_v47 = vcombine.high %v721_v41, %v733_v42  ;;  %v6616_v54 = vcombine.low %v721_v41, %v733_v42  ;;  %v973_v41 = vld [vmem:[#allocation8 + $0x1640] sm:$0xff] }
 0x1d5   :  { %5284 = vmatpush2.bf16.msra.mxu0 %v6350_v48  ;;  %v313_v48 = vld [vmem:[#allocation8 + $0x1a0] sm:$0xff] }
 0x1d6   :  { %5327 = vmatpush2.bf16.msra.mxu1 %v6734_v49  ;;  %5339 = vmatprep.subr.bf16.mxu0 %v6329_v50  ;;  %v325_v49 = vld [vmem:[#allocation8 + $0x200] sm:$0xff] }
 0x1d7   :  { %5382 = vmatprep.subr.bf16.mxu1 %v6713_v52  ;;  %v697_v50 = vld [vmem:[#allocation8 + $0xda0] sm:$0xff] }
 0x1d8   :  { %5286 = vmatmul.mubr.bf16.vlgmr.msra.gmra.mxu0 %v7267_v61  ;;  %v5029_v4 = vpop.f32.mrf.mxu0  ;;  %v709_v52 = vld [vmem:[#allocation8 + $0xe00] sm:$0xff] }
 0x1d9   :  { %v5072_v5 = vpop.f32.mrf.mxu1  ;;  %5329 = vmatmul.mubr.bf16.vlgmr.msra.gmra.mxu1 %v7269_v62  ;;  %v5030_v9 = vadd.f32 %v5029_v4, %v1038_v56  ;;  %5340 = vmatpush1.bf16.msra.mxu0 %v6328_v55  ;;  %v6209_v55 = vcombine.high %v313_v48, %v325_v49  ;;  %v6592_v3 = vcombine.low %v697_v50, %v709_v52 }
 0x1da   :  { %5371 = vmatprep.mubr.bf16.mxu0 %v7263_v59  ;;  %5383 = vmatpush1.bf16.msra.mxu1 %v6712_v63  ;;  %v5031_v11 = vpop.f32.mrf.mxu0  ;;  %v673_v63 = vld [vmem:[#allocation8 + $0xce0] sm:$0xff]  ;;  %v6185_v4 = vcombine.high %v289_v57, %v301_v58 }
 0x1db   :  { %v5074_v12 = vpop.f32.mrf.mxu1  ;;  %v5073_v15 = vadd.f32 %v5072_v5, %v5030_v9  ;;  %5414 = vmatprep.mubr.bf16.mxu1 %v7265_v60  ;;  %v5032_v16 = vadd.f32 %v5031_v11, %v1042_v0  ;;  %5341 = vmatprep.subr.bf16.mxu0 %v6305_v1  ;;  %v6208_v1 = vcombine.low %v313_v48, %v325_v49  ;;  %v649_v9 = vld [vmem:[#allocation8 + $0xc20] sm:$0xff] }
 0x1dc   :  { %5384 = vmatprep.subr.bf16.mxu1 %v6689_v6  ;;  %v5033_v20 = vpop.f32.mrf.mxu0  ;;  %v265_v6 = vld [vmem:[#allocation8 + $0x20] sm:$0xff]  ;;  %v6184_v11 = vcombine.low %v289_v57, %v301_v58 }
 0x1dd   :  { %v5076_v26 = vpop.f32.mrf.mxu1  ;;  %6947 = vtanh.f32 %v5073_v15  ;;  %v5075_v29 = vadd.f32 %v5074_v12, %v5032_v16  ;;  %v5034_v30 = vadd.f32 %v5033_v20, %v1038_v56  ;;  %5342 = vmatpush1.bf16.msra.mxu0 %v6304_v10  ;;  %v6593_v56 = vcombine.high %v697_v50, %v709_v52  ;;  %v661_v10 = vld [vmem:[#allocation8 + $0xc80] sm:$0xff] }
 0x1de   :  { %5385 = vmatpush1.bf16.msra.mxu1 %v6688_v13  ;;  %v5035_v32 = vpop.f32.mrf.mxu0  ;;  %5343 = vmatprep.subr.bf16.mxu0 %v6281_v14  ;;  %v6161_v14 = vcombine.high %v265_v6, %v277_v7  ;;  %v6545_v15 = vcombine.high %v649_v9, %v661_v10  ;;  %v625_v16 = vld [vmem:[#allocation8 + $0xb60] sm:$0xff]  ;;  %v6544_v27 = vcombine.low %v649_v9, %v661_v10 }
 0x1df   :  { %6949 = vtanh.f32 %v5075_v29  ;;  %v5077_v35 = vadd.f32 %v5076_v26, %v5034_v30  ;;  %v5036_v36 = vadd.f32 %v5035_v32, %v1042_v0  ;;  %5386 = vmatprep.subr.bf16.mxu1 %v6665_v17  ;;  %v5078_v40 = vpop.f32.mrf.mxu1  ;;  %v685_v0 = vld [vmem:[#allocation8 + $0xd40] sm:$0xff]  ;;  %v6160_v26 = vcombine.low %v265_v6, %v277_v7 }
 0x1e0   :  { %v6569_v5 = vcombine.high %v673_v63, %v685_v0  ;;  %v6568_v13 = vcombine.low %v673_v63, %v685_v0  ;;  %v637_v17 = vld [vmem:[#allocation8 + $0xbc0] sm:$0xff]  ;;  %v6472_v50 = vcombine.low %v577_v38, %v589_v39 }
 0x1e1   :  { %6951 = vtanh.f32 %v5077_v35  ;;  %v5079_v43 = vadd.f32 %v5078_v40, %v5036_v36  ;;  %5344 = vmatpush1.bf16.msra.mxu0 %v6280_v31  ;;  %v1021_v20 = vld [vmem:[#allocation8 + $0x17c0] sm:$0xff]  ;;  %v6521_v28 = vcombine.high %v625_v16, %v637_v17 }
 0x1e2   :  { %5387 = vmatpush1.bf16.msra.mxu1 %v6664_v33  ;;  %5345 = vmatprep.subr.bf16.mxu0 %v6257_v34  ;;  %v6905_v29 = vcombine.high %v1009_v19, %v1021_v20  ;;  %v601_v30 = vld [vmem:[#allocation8 + $0xaa0] sm:$0xff]  ;;  %v6520_v34 = vcombine.low %v625_v16, %v637_v17  ;;  %v6904_v35 = vcombine.low %v1009_v19, %v1021_v20 }
 0x1e3   :  { %6953 = vtanh.f32 %v5079_v43  ;;  %5388 = vmatprep.subr.bf16.mxu1 %v6641_v37  ;;  %v613_v31 = vld [vmem:[#allocation8 + $0xb00] sm:$0xff] }
 0x1e4   :  { %v985_v32 = vld [vmem:[#allocation8 + $0x16a0] sm:$0xff]  ;;  %v6497_v36 = vcombine.high %v601_v30, %v613_v31  ;;  %v6496_v42 = vcombine.low %v601_v30, %v613_v31 }
 0x1e5   :  { %5346 = vmatpush1.bf16.msra.mxu0 %v6256_v44  ;;  %v997_v33 = vld [vmem:[#allocation8 + $0x1700] sm:$0xff]  ;;  %v6473_v44 = vcombine.high %v577_v38, %v589_v39 }
 0x1e6   :  { %5389 = vmatpush1.bf16.msra.mxu1 %v6640_v45  ;;  %5347 = vmatprep.subr.bf16.mxu0 %v6233_v46  ;;  %v6881_v37 = vcombine.high %v985_v32, %v997_v33  ;;  %v961_v40 = vld [vmem:[#allocation8 + $0x15e0] sm:$0xff]  ;;  %v6880_v43 = vcombine.low %v985_v32, %v997_v33  ;;  %v434_v32 = vld [vmem:[#allocation8 + $0x568] sm:$0xff] }
 0x1e7   :  { %5390 = vmatprep.subr.bf16.mxu1 %v6617_v47  ;;  %v6857_v45 = vcombine.high %v961_v40, %v973_v41  ;;  %v553_v46 = vld [vmem:[#allocation8 + $0x920] sm:$0xff]  ;;  %v6856_v52 = vcombine.low %v961_v40, %v973_v41  ;;  %v446_v33 = vld [vmem:[#allocation8 + $0x5c8] sm:$0xff] }
 0x1e8   :  { %v565_v47 = vld [vmem:[#allocation8 + $0x980] sm:$0xff]  ;;  %v6331_v38 = vcombine.high %v434_v32, %v446_v33  ;;  %v410_v40 = vld [vmem:[#allocation8 + $0x4a8] sm:$0xff] }
 0x1e9   :  { %5348 = vmatpush1.bf16.msra.mxu0 %v6232_v53  ;;  %v937_v48 = vld [vmem:[#allocation8 + $0x1520] sm:$0xff]  ;;  %v6449_v53 = vcombine.high %v553_v46, %v565_v47  ;;  %v6448_v63 = vcombine.low %v553_v46, %v565_v47  ;;  %v422_v41 = vld [vmem:[#allocation8 + $0x508] sm:$0xff]  ;;  %v1050_v47 = vrot.slane %v7285_v51, %v7251_v23 }
 0x1ea   :  { %v6948_v2 = vpop.eup %6947  ;;  %5391 = vmatpush1.bf16.msra.mxu1 %v6616_v54  ;;  %5349 = vmatprep.subr.bf16.mxu0 %v6209_v55  ;;  %v949_v49 = vld [vmem:[#allocation8 + $0x1580] sm:$0xff] }
 0x1eb   :  { %6075 = vst [vmem:[#allocation11] sm:$0xff] %v6948_v2  ;;  %5392 = vmatprep.subr.bf16.mxu1 %v6593_v56  ;;  %v6833_v54 = vcombine.high %v937_v48, %v949_v49  ;;  %v529_v55 = vld [vmem:[#allocation8 + $0x860] sm:$0xff]  ;;  %v6832_v0 = vcombine.low %v937_v48, %v949_v49  ;;  %v6307_v48 = vcombine.high %v410_v40, %v422_v41  ;;  %v386_v49 = vld [vmem:[#allocation8 + $0x3e8] sm:$0xff] }
 0x1ec   :  { %v6950_v8 = vpop.eup %6949  ;;  %v541_v56 = vld [vmem:[#allocation8 + $0x8c0] sm:$0xff] }
 0x1ed   :  { %6076 = vst [vmem:[#allocation11 + $0x8] sm:$0xff] %v6950_v8  ;;  %5350 = vmatpush1.bf16.msra.mxu0 %v6208_v1  ;;  %v913_v57 = vld [vmem:[#allocation8 + $0x1460] sm:$0xff]  ;;  %v6425_v1 = vcombine.high %v529_v55, %v541_v56  ;;  %v6424_v7 = vcombine.low %v529_v55, %v541_v56  ;;  %v770_v55 = vld [vmem:[#allocation8 + $0xfe8] sm:$0xff] }
 0x1ee   :  { %v6952_v12 = vpop.eup %6951  ;;  %5393 = vmatpush1.bf16.msra.mxu1 %v6592_v3  ;;  %5351 = vmatprep.subr.bf16.mxu0 %v6185_v4  ;;  %v925_v58 = vld [vmem:[#allocation8 + $0x14c0] sm:$0xff]  ;;  %v782_v56 = vld [vmem:[#allocation8 + $0x1048] sm:$0xff] }
 0x1ef   :  { %6099 = vst [vmem:[#allocation11 + $0xc0] sm:$0xff] %v6952_v12  ;;  %5394 = vmatprep.subr.bf16.mxu1 %v6569_v5  ;;  %v6809_v2 = vcombine.high %v913_v57, %v925_v58  ;;  %v505_v3 = vld [vmem:[#allocation8 + $0x7a0] sm:$0xff]  ;;  %v6808_v8 = vcombine.low %v913_v57, %v925_v58  ;;  %v6306_v58 = vcombine.low %v410_v40, %v422_v41 }
 0x1f0   :  { %v6954_v18 = vpop.eup %6953  ;;  %v517_v4 = vld [vmem:[#allocation8 + $0x800] sm:$0xff] }
 0x1f1   :  { %6100 = vst [vmem:[#allocation11 + $0xc8] sm:$0xff] %v6954_v18  ;;  %5352 = vmatpush1.bf16.msra.mxu0 %v6184_v11  ;;  %v889_v5 = vld [vmem:[#allocation8 + $0x13a0] sm:$0xff]  ;;  %v6401_v9 = vcombine.high %v505_v3, %v517_v4 }
 0x1f2   :  { %5395 = vmatpush1.bf16.msra.mxu1 %v6568_v13  ;;  %5353 = vmatprep.subr.bf16.mxu0 %v6161_v14  ;;  %v901_v6 = vld [vmem:[#allocation8 + $0x1400] sm:$0xff] }
 0x1f3   :  { %5396 = vmatprep.subr.bf16.mxu1 %v6545_v15  ;;  %v6785_v10 = vcombine.high %v889_v5, %v901_v6  ;;  %v481_v11 = vld [vmem:[#allocation8 + $0x6e0] sm:$0xff]  ;;  %v6400_v15 = vcombine.low %v505_v3, %v517_v4  ;;  %v6784_v16 = vcombine.low %v889_v5, %v901_v6  ;;  %v6667_v5 = vcombine.high %v770_v55, %v782_v56  ;;  %v362_v6 = vld [vmem:[#allocation8 + $0x328] sm:$0xff] }
 0x1f4   :  { %v493_v12 = vld [vmem:[#allocation8 + $0x740] sm:$0xff] }
 0x1f5   :  { %5354 = vmatpush1.bf16.msra.mxu0 %v6160_v26  ;;  %v865_v13 = vld [vmem:[#allocation8 + $0x12e0] sm:$0xff]  ;;  %v6377_v17 = vcombine.high %v481_v11, %v493_v12 }
 0x1f6   :  { %5397 = vmatpush1.bf16.msra.mxu1 %v6544_v27  ;;  %5355 = vmatprep.subr.bf16.mxu0 %v6521_v28  ;;  %v877_v14 = vld [vmem:[#allocation8 + $0x1340] sm:$0xff]  ;;  %v6376_v28 = vcombine.low %v481_v11, %v493_v12  ;;  %v758_v11 = vld [vmem:[#allocation8 + $0xf88] sm:$0xff] }
 0x1f7   :  { %5398 = vmatprep.subr.bf16.mxu1 %v6905_v29  ;;  %v6761_v18 = vcombine.high %v865_v13, %v877_v14  ;;  %v457_v19 = vld [vmem:[#allocation8 + $0x620] sm:$0xff]  ;;  %v6760_v29 = vcombine.low %v865_v13, %v877_v14 }
 0x1f8   :  { %v469_v20 = vld [vmem:[#allocation8 + $0x680] sm:$0xff] }
 0x1f9   :  { %5356 = vmatpush2.bf16.msra.mxu0 %v6520_v34  ;;  %v841_v26 = vld [vmem:[#allocation8 + $0x1220] sm:$0xff]  ;;  %v6353_v30 = vcombine.high %v457_v19, %v469_v20  ;;  %v818_v34 = vld [vmem:[#allocation8 + $0x1168] sm:$0xff] }
 0x1fa   :  { %5399 = vmatpush2.bf16.msra.mxu1 %v6904_v35  ;;  %5357 = vmatprep.subr.bf16.mxu0 %v6497_v36  ;;  %v853_v27 = vld [vmem:[#allocation8 + $0x1280] sm:$0xff]  ;;  %v830_v35 = vld [vmem:[#allocation8 + $0x11c8] sm:$0xff]  ;;  %v6352_v36 = vcombine.low %v457_v19, %v469_v20 }
 0x1fb   :  { %5400 = vmatprep.subr.bf16.mxu1 %v6881_v37  ;;  %v6737_v31 = vcombine.high %v841_v26, %v853_v27  ;;  %v6736_v37 = vcombine.low %v841_v26, %v853_v27  ;;  %v6715_v39 = vcombine.high %v818_v34, %v830_v35  ;;  %v6714_v46 = vcombine.low %v818_v34, %v830_v35  ;;  %v338_v26 = vld [vmem:[#allocation8 + $0x268] sm:$0xff] }
 0x1fc   :  { %v350_v27 = vld [vmem:[#allocation8 + $0x2c8] sm:$0xff] }
 0x1fd   :  { %5358 = vmatpush2.bf16.msra.mxu0 %v6496_v42  ;;  %v1046_v42 = vrot.slane %v7285_v51, %v7257_v25  ;;  %v6235_v34 = vcombine.high %v338_v26, %v350_v27  ;;  %v6234_v40 = vcombine.low %v338_v26, %v350_v27  ;;  %v578_v26 = vld [vmem:[#allocation8 + $0x9e8] sm:$0xff] }
 0x1fe   :  { %5401 = vmatpush2.bf16.msra.mxu1 %v6880_v43  ;;  %5359 = vmatprep.subr.bf16.mxu0 %v6473_v44  ;;  %v6330_v43 = vcombine.low %v434_v32, %v446_v33  ;;  %v794_v44 = vld [vmem:[#allocation8 + $0x10a8] sm:$0xff] }
 0x1ff   :  { %5402 = vmatprep.subr.bf16.mxu1 %v6857_v45  ;;  %v806_v45 = vld [vmem:[#allocation8 + $0x1108] sm:$0xff] }
 0x200   :  { %v590_v27 = vld [vmem:[#allocation8 + $0xa48] sm:$0xff] }
 0x201   :  { %5360 = vmatpush2.bf16.msra.mxu0 %v6472_v50  ;;  %v398_v50 = vld [vmem:[#allocation8 + $0x448] sm:$0xff] }
 0x202   :  { %5403 = vmatpush2.bf16.msra.mxu1 %v6856_v52  ;;  %5361 = vmatprep.subr.bf16.mxu0 %v6449_v53  ;;  %v6282_v14 = vcombine.low %v386_v49, %v398_v50 }
 0x203   :  { %5404 = vmatprep.subr.bf16.mxu1 %v6833_v54  ;;  %v6691_v54 = vcombine.high %v794_v44, %v806_v45 }
 0x205   :  { %5362 = vmatpush2.bf16.msra.mxu0 %v6448_v63 }
 0x206   :  { %5405 = vmatpush2.bf16.msra.mxu1 %v6832_v0  ;;  %5363 = vmatprep.subr.bf16.mxu0 %v6425_v1  ;;  %v6690_v1 = vcombine.low %v794_v44, %v806_v45  ;;  %v290_v44 = vld [vmem:[#allocation8 + $0xe8] sm:$0xff] }
 0x207   :  { %5406 = vmatprep.subr.bf16.mxu1 %v6809_v2  ;;  %v6283_v2 = vcombine.high %v386_v49, %v398_v50  ;;  %v302_v45 = vld [vmem:[#allocation8 + $0x148] sm:$0xff] }
 0x209   :  { %5364 = vmatpush2.bf16.msra.mxu0 %v6424_v7  ;;  %v374_v7 = vld [vmem:[#allocation8 + $0x388] sm:$0xff] }
 0x20a   :  { %5407 = vmatpush2.bf16.msra.mxu1 %v6808_v8  ;;  %5365 = vmatprep.subr.bf16.mxu0 %v6401_v9  ;;  %v6258_v32 = vcombine.low %v362_v6, %v374_v7 }
 0x20b   :  { %5408 = vmatprep.subr.bf16.mxu1 %v6785_v10  ;;  %v746_v10 = vld [vmem:[#allocation8 + $0xf28] sm:$0xff] }
 0x20c   :  { %v6643_v20 = vcombine.high %v746_v10, %v758_v11  ;;  %v6642_v33 = vcombine.low %v746_v10, %v758_v11 }
 0x20d   :  { %5366 = vmatpush2.bf16.msra.mxu0 %v6400_v15 }
 0x20e   :  { %5409 = vmatpush2.bf16.msra.mxu1 %v6784_v16  ;;  %5367 = vmatprep.subr.bf16.mxu0 %v6377_v17  ;;  %v6666_v16 = vcombine.low %v770_v55, %v782_v56  ;;  %v6259_v17 = vcombine.high %v362_v6, %v374_v7  ;;  %v278_v55 = vld [vmem:[#allocation8 + $0x88] sm:$0xff] }
 0x20f   :  { %5410 = vmatprep.subr.bf16.mxu1 %v6761_v18  ;;  %v1010_v7 = vld [vmem:[#allocation8 + $0x1768] sm:$0xff] }
 0x211   :  { %5368 = vmatpush2.bf16.msra.mxu0 %v6376_v28 }
 0x212   :  { %5411 = vmatpush2.bf16.msra.mxu1 %v6760_v29  ;;  %5369 = vmatprep.subr.bf16.mxu0 %v6353_v30  ;;  %v722_v29 = vld [vmem:[#allocation8 + $0xe68] sm:$0xff] }
 0x213   :  { %5412 = vmatprep.subr.bf16.mxu1 %v6737_v31  ;;  %v734_v30 = vld [vmem:[#allocation8 + $0xec8] sm:$0xff] }
 0x214   :  { %v6619_v35 = vcombine.high %v722_v29, %v734_v30  ;;  %v6618_v41 = vcombine.low %v722_v29, %v734_v30  ;;  %v974_v29 = vld [vmem:[#allocation8 + $0x1648] sm:$0xff] }
 0x215   :  { %5370 = vmatpush2.bf16.msra.mxu0 %v6352_v36  ;;  %v314_v36 = vld [vmem:[#allocation8 + $0x1a8] sm:$0xff] }
 0x216   :  { %5413 = vmatpush2.bf16.msra.mxu1 %v6736_v37  ;;  %5425 = vmatprep.subr.bf16.mxu0 %v6331_v38  ;;  %v326_v37 = vld [vmem:[#allocation8 + $0x208] sm:$0xff] }
 0x217   :  { %5468 = vmatprep.subr.bf16.mxu1 %v6715_v39  ;;  %v698_v38 = vld [vmem:[#allocation8 + $0xda8] sm:$0xff] }
 0x218   :  { %v5115_v52 = vpop.f32.mrf.mxu0  ;;  %5372 = vmatmul.mubr.bf16.vlgmr.msra.gmra.mxu0 %v7267_v61  ;;  %v710_v39 = vld [vmem:[#allocation8 + $0xe08] sm:$0xff] }
 0x219   :  { %v5158_v53 = vpop.f32.mrf.mxu1  ;;  %v5116_v57 = vadd.f32 %v5115_v52, %v1046_v42  ;;  %5415 = vmatmul.mubr.bf16.vlgmr.msra.gmra.mxu1 %v7269_v62  ;;  %5426 = vmatpush1.bf16.msra.mxu0 %v6330_v43  ;;  %v6595_v43 = vcombine.high %v698_v38, %v710_v39  ;;  %v6594_v50 = vcombine.low %v698_v38, %v710_v39 }
 0x21a   :  { %5457 = vmatprep.mubr.bf16.mxu0 %v7263_v59  ;;  %5469 = vmatpush1.bf16.msra.mxu1 %v6714_v46  ;;  %v5117_v63 = vpop.f32.mrf.mxu0  ;;  %v674_v46 = vld [vmem:[#allocation8 + $0xce8] sm:$0xff]  ;;  %v6187_v52 = vcombine.high %v290_v44, %v302_v45  ;;  %v6474_v38 = vcombine.low %v578_v26, %v590_v27 }
 0x21b   :  { %v5160_v0 = vpop.f32.mrf.mxu1  ;;  %v5159_v3 = vadd.f32 %v5158_v53, %v5116_v57  ;;  %5500 = vmatprep.mubr.bf16.mxu1 %v7265_v60  ;;  %v5118_v4 = vadd.f32 %v5117_v63, %v1050_v47  ;;  %5427 = vmatprep.subr.bf16.mxu0 %v6307_v48  ;;  %v6210_v48 = vcombine.low %v314_v36, %v326_v37  ;;  %v650_v57 = vld [vmem:[#allocation8 + $0xc28] sm:$0xff] }
 0x21c   :  { %v5119_v8 = vpop.f32.mrf.mxu0  ;;  %5470 = vmatprep.subr.bf16.mxu1 %v6691_v54  ;;  %v266_v54 = vld [vmem:[#allocation8 + $0x28] sm:$0xff]  ;;  %v6186_v63 = vcombine.low %v290_v44, %v302_v45 }
 0x21d   :  { %v5162_v9 = vpop.f32.mrf.mxu1  ;;  %6955 = vtanh.f32 %v5159_v3  ;;  %v5161_v12 = vadd.f32 %v5160_v0, %v5118_v4  ;;  %v5120_v13 = vadd.f32 %v5119_v8, %v1046_v42  ;;  %5428 = vmatpush1.bf16.msra.mxu0 %v6306_v58  ;;  %v6211_v42 = vcombine.high %v314_v36, %v326_v37  ;;  %v662_v58 = vld [vmem:[#allocation8 + $0xc88] sm:$0xff] }
 0x21e   :  { %5471 = vmatpush1.bf16.msra.mxu1 %v6690_v1  ;;  %v5121_v15 = vpop.f32.mrf.mxu0  ;;  %5429 = vmatprep.subr.bf16.mxu0 %v6283_v2  ;;  %v6163_v2 = vcombine.high %v266_v54, %v278_v55  ;;  %v6547_v3 = vcombine.high %v650_v57, %v662_v58  ;;  %v626_v4 = vld [vmem:[#allocation8 + $0xb68] sm:$0xff]  ;;  %v6546_v10 = vcombine.low %v650_v57, %v662_v58 }
 0x21f   :  { %6957 = vtanh.f32 %v5161_v12  ;;  %v5163_v18 = vadd.f32 %v5162_v9, %v5120_v13  ;;  %v5122_v19 = vadd.f32 %v5121_v15, %v1050_v47  ;;  %5472 = vmatprep.subr.bf16.mxu1 %v6667_v5  ;;  %v5164_v28 = vpop.f32.mrf.mxu1  ;;  %v686_v47 = vld [vmem:[#allocation8 + $0xd48] sm:$0xff]  ;;  %v6162_v9 = vcombine.low %v266_v54, %v278_v55 }
 0x220   :  { %v6571_v53 = vcombine.high %v674_v46, %v686_v47  ;;  %v6570_v1 = vcombine.low %v674_v46, %v686_v47  ;;  %v638_v5 = vld [vmem:[#allocation8 + $0xbc8] sm:$0xff] }
 0x221   :  { %6959 = vtanh.f32 %v5163_v18  ;;  %v5165_v31 = vadd.f32 %v5164_v28, %v5122_v19  ;;  %5430 = vmatpush1.bf16.msra.mxu0 %v6282_v14  ;;  %v1022_v8 = vld [vmem:[#allocation8 + $0x17c8] sm:$0xff]  ;;  %v6523_v11 = vcombine.high %v626_v4, %v638_v5 }
 0x222   :  { %5473 = vmatpush1.bf16.msra.mxu1 %v6666_v16  ;;  %5431 = vmatprep.subr.bf16.mxu0 %v6259_v17  ;;  %v6907_v12 = vcombine.high %v1010_v7, %v1022_v8  ;;  %v602_v13 = vld [vmem:[#allocation8 + $0xaa8] sm:$0xff]  ;;  %v6522_v17 = vcombine.low %v626_v4, %v638_v5  ;;  %v6906_v18 = vcombine.low %v1010_v7, %v1022_v8 }
 0x223   :  { %6961 = vtanh.f32 %v5165_v31  ;;  %5474 = vmatprep.subr.bf16.mxu1 %v6643_v20  ;;  %v614_v14 = vld [vmem:[#allocation8 + $0xb08] sm:$0xff] }
 0x224   :  { %v986_v15 = vld [vmem:[#allocation8 + $0x16a8] sm:$0xff]  ;;  %v6499_v19 = vcombine.high %v602_v13, %v614_v14  ;;  %v6498_v30 = vcombine.low %v602_v13, %v614_v14 }
 0x225   :  { %5432 = vmatpush1.bf16.msra.mxu0 %v6258_v32  ;;  %v998_v16 = vld [vmem:[#allocation8 + $0x1708] sm:$0xff]  ;;  %v6475_v32 = vcombine.high %v578_v26, %v590_v27 }
 0x226   :  { %5475 = vmatpush1.bf16.msra.mxu1 %v6642_v33  ;;  %5433 = vmatprep.subr.bf16.mxu0 %v6235_v34  ;;  %v6883_v20 = vcombine.high %v986_v15, %v998_v16  ;;  %v962_v28 = vld [vmem:[#allocation8 + $0x15e8] sm:$0xff]  ;;  %v6882_v31 = vcombine.low %v986_v15, %v998_v16  ;;  %v435_v15 = vld [vmem:[#allocation8 + $0x570] sm:$0xff] }
 0x227   :  { %5476 = vmatprep.subr.bf16.mxu1 %v6619_v35  ;;  %v6859_v33 = vcombine.high %v962_v28, %v974_v29  ;;  %v554_v34 = vld [vmem:[#allocation8 + $0x928] sm:$0xff]  ;;  %v6858_v39 = vcombine.low %v962_v28, %v974_v29  ;;  %v447_v16 = vld [vmem:[#allocation8 + $0x5d0] sm:$0xff]  ;;  %v7307_v29 = vsub.s32 5, %v7245_v21 }
 0x228   :  { %v566_v35 = vld [vmem:[#allocation8 + $0x988] sm:$0xff]  ;;  %v6333_v27 = vcombine.high %v435_v15, %v447_v16 }
 0x229   :  { %5434 = vmatpush1.bf16.msra.mxu0 %v6234_v40  ;;  %v938_v36 = vld [vmem:[#allocation8 + $0x1528] sm:$0xff]  ;;  %v6451_v40 = vcombine.high %v554_v34, %v566_v35  ;;  %v6450_v46 = vcombine.low %v554_v34, %v566_v35  ;;  %v795_v34 = vld [vmem:[#allocation8 + $0x10b0] sm:$0xff] }
 0x22a   :  { %v6956_v49 = vpop.eup %6955  ;;  %5477 = vmatpush1.bf16.msra.mxu1 %v6618_v41  ;;  %5435 = vmatprep.subr.bf16.mxu0 %v6211_v42  ;;  %v950_v37 = vld [vmem:[#allocation8 + $0x1588] sm:$0xff]  ;;  %v807_v35 = vld [vmem:[#allocation8 + $0x1110] sm:$0xff] }
 0x22b   :  { %6077 = vst [vmem:[#allocation11 + $0x10] sm:$0xff] %v6956_v49  ;;  %5478 = vmatprep.subr.bf16.mxu1 %v6595_v43  ;;  %v6835_v41 = vcombine.high %v938_v36, %v950_v37  ;;  %v530_v42 = vld [vmem:[#allocation8 + $0x868] sm:$0xff]  ;;  %v6834_v47 = vcombine.low %v938_v36, %v950_v37  ;;  %v1058_v37 = vrot.slane %v7285_v51, %v7307_v29 }
 0x22c   :  { %v6958_v56 = vpop.eup %6957  ;;  %v542_v43 = vld [vmem:[#allocation8 + $0x8c8] sm:$0xff] }
 0x22d   :  { %6078 = vst [vmem:[#allocation11 + $0x18] sm:$0xff] %v6958_v56  ;;  %5436 = vmatpush1.bf16.msra.mxu0 %v6210_v48  ;;  %v914_v44 = vld [vmem:[#allocation8 + $0x1468] sm:$0xff]  ;;  %v6427_v48 = vcombine.high %v530_v42, %v542_v43  ;;  %v6426_v55 = vcombine.low %v530_v42, %v542_v43  ;;  %v6693_v42 = vcombine.high %v795_v34, %v807_v35  ;;  %v771_v43 = vld [vmem:[#allocation8 + $0xff0] sm:$0xff] }
 0x22e   :  { %v6960_v0 = vpop.eup %6959  ;;  %5479 = vmatpush1.bf16.msra.mxu1 %v6594_v50  ;;  %5437 = vmatprep.subr.bf16.mxu0 %v6187_v52  ;;  %v926_v45 = vld [vmem:[#allocation8 + $0x14c8] sm:$0xff] }
 0x22f   :  { %6101 = vst [vmem:[#allocation11 + $0xd0] sm:$0xff] %v6960_v0  ;;  %5480 = vmatprep.subr.bf16.mxu1 %v6571_v53  ;;  %v6811_v49 = vcombine.high %v914_v44, %v926_v45  ;;  %v506_v50 = vld [vmem:[#allocation8 + $0x7a8] sm:$0xff]  ;;  %v6810_v56 = vcombine.low %v914_v44, %v926_v45  ;;  %v783_v44 = vld [vmem:[#allocation8 + $0x1050] sm:$0xff] }
 0x230   :  { %v6962_v6 = vpop.eup %6961  ;;  %v518_v52 = vld [vmem:[#allocation8 + $0x808] sm:$0xff] }
 0x231   :  { %6102 = vst [vmem:[#allocation11 + $0xd8] sm:$0xff] %v6962_v6  ;;  %5438 = vmatpush1.bf16.msra.mxu0 %v6186_v63  ;;  %v890_v53 = vld [vmem:[#allocation8 + $0x13a8] sm:$0xff]  ;;  %v6403_v57 = vcombine.high %v506_v50, %v518_v52 }
 0x232   :  { %5481 = vmatpush1.bf16.msra.mxu1 %v6570_v1  ;;  %5439 = vmatprep.subr.bf16.mxu0 %v6163_v2  ;;  %v902_v54 = vld [vmem:[#allocation8 + $0x1408] sm:$0xff] }
 0x233   :  { %5482 = vmatprep.subr.bf16.mxu1 %v6547_v3  ;;  %v6787_v58 = vcombine.high %v890_v53, %v902_v54  ;;  %v482_v63 = vld [vmem:[#allocation8 + $0x6e8] sm:$0xff]  ;;  %v6402_v3 = vcombine.low %v506_v50, %v518_v52  ;;  %v6786_v4 = vcombine.low %v890_v53, %v902_v54  ;;  %v6669_v54 = vcombine.high %v771_v43, %v783_v44 }
 0x234   :  { %v494_v0 = vld [vmem:[#allocation8 + $0x748] sm:$0xff] }
 0x235   :  { %5440 = vmatpush1.bf16.msra.mxu0 %v6162_v9  ;;  %v866_v1 = vld [vmem:[#allocation8 + $0x12e8] sm:$0xff]  ;;  %v6379_v5 = vcombine.high %v482_v63, %v494_v0 }
 0x236   :  { %5483 = vmatpush1.bf16.msra.mxu1 %v6546_v10  ;;  %5441 = vmatprep.subr.bf16.mxu0 %v6523_v11  ;;  %v878_v2 = vld [vmem:[#allocation8 + $0x1348] sm:$0xff]  ;;  %v6378_v11 = vcombine.low %v482_v63, %v494_v0  ;;  %v759_v63 = vld [vmem:[#allocation8 + $0xf90] sm:$0xff] }
 0x237   :  { %5484 = vmatprep.subr.bf16.mxu1 %v6907_v12  ;;  %v6763_v6 = vcombine.high %v866_v1, %v878_v2  ;;  %v458_v7 = vld [vmem:[#allocation8 + $0x628] sm:$0xff]  ;;  %v6762_v12 = vcombine.low %v866_v1, %v878_v2 }
 0x238   :  { %v470_v8 = vld [vmem:[#allocation8 + $0x688] sm:$0xff] }
 0x239   :  { %5442 = vmatpush2.bf16.msra.mxu0 %v6522_v17  ;;  %v842_v9 = vld [vmem:[#allocation8 + $0x1228] sm:$0xff]  ;;  %v6355_v13 = vcombine.high %v458_v7, %v470_v8  ;;  %v819_v17 = vld [vmem:[#allocation8 + $0x1170] sm:$0xff] }
 0x23a   :  { %5485 = vmatpush2.bf16.msra.mxu1 %v6906_v18  ;;  %5443 = vmatprep.subr.bf16.mxu0 %v6499_v19  ;;  %v854_v10 = vld [vmem:[#allocation8 + $0x1288] sm:$0xff]  ;;  %v831_v18 = vld [vmem:[#allocation8 + $0x11d0] sm:$0xff]  ;;  %v6354_v19 = vcombine.low %v458_v7, %v470_v8 }
 0x23b   :  { %5486 = vmatprep.subr.bf16.mxu1 %v6883_v20  ;;  %v6739_v14 = vcombine.high %v842_v9, %v854_v10  ;;  %v7304_v20 = vsub.s32 4, %v7245_v21  ;;  %v6738_v26 = vcombine.low %v842_v9, %v854_v10  ;;  %v6717_v28 = vcombine.high %v819_v17, %v831_v18  ;;  %v339_v10 = vld [vmem:[#allocation8 + $0x270] sm:$0xff] }
 0x23c   :  { %v6716_v36 = vcombine.low %v819_v17, %v831_v18 }
 0x23d   :  { %5444 = vmatpush2.bf16.msra.mxu0 %v6498_v30  ;;  %v411_v30 = vld [vmem:[#allocation8 + $0x4b0] sm:$0xff] }
 0x23e   :  { %5487 = vmatpush2.bf16.msra.mxu1 %v6882_v31  ;;  %5445 = vmatprep.subr.bf16.mxu0 %v6475_v32  ;;  %v423_v31 = vld [vmem:[#allocation8 + $0x510] sm:$0xff]  ;;  %v1054_v32 = vrot.slane %v7285_v51, %v7304_v20  ;;  %v6692_v51 = vcombine.low %v795_v34, %v807_v35 }
 0x23f   :  { %5488 = vmatprep.subr.bf16.mxu1 %v6859_v33  ;;  %v6332_v33 = vcombine.low %v435_v15, %v447_v16  ;;  %v291_v35 = vld [vmem:[#allocation8 + $0xf0] sm:$0xff] }
 0x241   :  { %5446 = vmatpush2.bf16.msra.mxu0 %v6474_v38  ;;  %v6309_v38 = vcombine.high %v411_v30, %v423_v31 }
 0x242   :  { %5489 = vmatpush2.bf16.msra.mxu1 %v6858_v39  ;;  %5447 = vmatprep.subr.bf16.mxu0 %v6451_v40  ;;  %v387_v39 = vld [vmem:[#allocation8 + $0x3f0] sm:$0xff] }
 0x243   :  { %5490 = vmatprep.subr.bf16.mxu1 %v6835_v41  ;;  %v399_v40 = vld [vmem:[#allocation8 + $0x450] sm:$0xff] }
 0x245   :  { %5448 = vmatpush2.bf16.msra.mxu0 %v6450_v46 }
 0x246   :  { %5491 = vmatpush2.bf16.msra.mxu1 %v6834_v47  ;;  %5449 = vmatprep.subr.bf16.mxu0 %v6427_v48  ;;  %v6308_v47 = vcombine.low %v411_v30, %v423_v31  ;;  %v711_v30 = vld [vmem:[#allocation8 + $0xe10] sm:$0xff] }
 0x247   :  { %5492 = vmatprep.subr.bf16.mxu1 %v6811_v49  ;;  %v6285_v49 = vcombine.high %v387_v39, %v399_v40 }
 0x249   :  { %5450 = vmatpush2.bf16.msra.mxu0 %v6426_v55  ;;  %v363_v55 = vld [vmem:[#allocation8 + $0x330] sm:$0xff] }
 0x24a   :  { %5493 = vmatpush2.bf16.msra.mxu1 %v6810_v56  ;;  %5451 = vmatprep.subr.bf16.mxu0 %v6403_v57  ;;  %v375_v56 = vld [vmem:[#allocation8 + $0x390] sm:$0xff] }
 0x24b   :  { %5494 = vmatprep.subr.bf16.mxu1 %v6787_v58  ;;  %v747_v58 = vld [vmem:[#allocation8 + $0xf30] sm:$0xff]  ;;  %v6260_v16 = vcombine.low %v363_v55, %v375_v56 }
 0x24c   :  { %v6645_v9 = vcombine.high %v747_v58, %v759_v63  ;;  %v6644_v17 = vcombine.low %v747_v58, %v759_v63  ;;  %v1023_v58 = vld [vmem:[#allocation8 + $0x17d0] sm:$0xff] }
 0x24d   :  { %5452 = vmatpush2.bf16.msra.mxu0 %v6402_v3  ;;  %v6284_v3 = vcombine.low %v387_v39, %v399_v40 }
 0x24e   :  { %5495 = vmatpush2.bf16.msra.mxu1 %v6786_v4  ;;  %5453 = vmatprep.subr.bf16.mxu0 %v6379_v5  ;;  %v6668_v5 = vcombine.low %v771_v43, %v783_v44  ;;  %v267_v44 = vld [vmem:[#allocation8 + $0x30] sm:$0xff] }
 0x24f   :  { %5496 = vmatprep.subr.bf16.mxu1 %v6763_v6  ;;  %v6261_v6 = vcombine.high %v363_v55, %v375_v56  ;;  %v639_v55 = vld [vmem:[#allocation8 + $0xbd0] sm:$0xff] }
 0x251   :  { %5454 = vmatpush2.bf16.msra.mxu0 %v6378_v11  ;;  %v351_v11 = vld [vmem:[#allocation8 + $0x2d0] sm:$0xff] }
 0x252   :  { %5497 = vmatpush2.bf16.msra.mxu1 %v6762_v12  ;;  %5455 = vmatprep.subr.bf16.mxu0 %v6355_v13  ;;  %v723_v13 = vld [vmem:[#allocation8 + $0xe70] sm:$0xff]  ;;  %v6237_v18 = vcombine.high %v339_v10, %v351_v11  ;;  %v6236_v31 = vcombine.low %v339_v10, %v351_v11 }
 0x253   :  { %5498 = vmatprep.subr.bf16.mxu1 %v6739_v14  ;;  %v735_v14 = vld [vmem:[#allocation8 + $0xed0] sm:$0xff] }
 0x254   :  { %v579_v11 = vld [vmem:[#allocation8 + $0x9f0] sm:$0xff] }
 0x255   :  { %5456 = vmatpush2.bf16.msra.mxu0 %v6354_v19  ;;  %v6621_v19 = vcombine.high %v723_v13, %v735_v14 }
 0x256   :  { %5499 = vmatpush2.bf16.msra.mxu1 %v6738_v26  ;;  %5511 = vmatprep.subr.bf16.mxu0 %v6333_v27  ;;  %v315_v26 = vld [vmem:[#allocation8 + $0x1b0] sm:$0xff] }
 0x257   :  { %5554 = vmatprep.subr.bf16.mxu1 %v6717_v28  ;;  %v327_v27 = vld [vmem:[#allocation8 + $0x210] sm:$0xff] }
 0x258   :  { %v5201_v41 = vpop.f32.mrf.mxu0  ;;  %5458 = vmatmul.mubr.bf16.vlgmr.msra.gmra.mxu0 %v7267_v61  ;;  %v699_v28 = vld [vmem:[#allocation8 + $0xdb0] sm:$0xff]  ;;  %v6212_v39 = vcombine.low %v315_v26, %v327_v27 }
 0x259   :  { %v5202_v45 = vadd.f32 %v5201_v41, %v1054_v32  ;;  %v5244_v46 = vpop.f32.mrf.mxu1  ;;  %5501 = vmatmul.mubr.bf16.vlgmr.msra.gmra.mxu1 %v7269_v62  ;;  %5512 = vmatpush1.bf16.msra.mxu0 %v6332_v33  ;;  %v6213_v33 = vcombine.high %v315_v26, %v327_v27  ;;  %v6597_v34 = vcombine.high %v699_v28, %v711_v30  ;;  %v567_v26 = vld [vmem:[#allocation8 + $0x990] sm:$0xff] }
 0x25a   :  { %5543 = vmatprep.mubr.bf16.mxu0 %v7263_v59  ;;  %5555 = vmatpush1.bf16.msra.mxu1 %v6716_v36  ;;  %v5203_v48 = vpop.f32.mrf.mxu0  ;;  %v303_v36 = vld [vmem:[#allocation8 + $0x150] sm:$0xff]  ;;  %v6596_v41 = vcombine.low %v699_v28, %v711_v30 }
 0x25b   :  { %v5245_v50 = vadd.f32 %v5244_v46, %v5202_v45  ;;  %5586 = vmatprep.mubr.bf16.mxu1 %v7265_v60  ;;  %v5204_v52 = vadd.f32 %v5203_v48, %v1058_v37  ;;  %v5246_v53 = vpop.f32.mrf.mxu1  ;;  %5513 = vmatprep.subr.bf16.mxu0 %v6309_v38  ;;  %v687_v38 = vld [vmem:[#allocation8 + $0xd50] sm:$0xff] }
 0x25c   :  { %v5205_v57 = vpop.f32.mrf.mxu0  ;;  %5556 = vmatprep.subr.bf16.mxu1 %v6693_v42  ;;  %v6189_v42 = vcombine.high %v291_v35, %v303_v36  ;;  %v279_v45 = vld [vmem:[#allocation8 + $0x90] sm:$0xff] }
 0x25d   :  { %6963 = vtanh.f32 %v5245_v50  ;;  %v5247_v0 = vadd.f32 %v5246_v53, %v5204_v52  ;;  %v5206_v1 = vadd.f32 %v5205_v57, %v1054_v32  ;;  %v5248_v2 = vpop.f32.mrf.mxu1  ;;  %5514 = vmatpush1.bf16.msra.mxu0 %v6308_v47  ;;  %v6620_v32 = vcombine.low %v723_v13, %v735_v14  ;;  %v651_v47 = vld [vmem:[#allocation8 + $0xc30] sm:$0xff] }
 0x25e   :  { %5557 = vmatpush1.bf16.msra.mxu1 %v6692_v51  ;;  %v5207_v4 = vpop.f32.mrf.mxu0  ;;  %5515 = vmatprep.subr.bf16.mxu0 %v6285_v49  ;;  %v663_v48 = vld [vmem:[#allocation8 + $0xc90] sm:$0xff]  ;;  %v6188_v51 = vcombine.low %v291_v35, %v303_v36  ;;  %v6165_v52 = vcombine.high %v267_v44, %v279_v45  ;;  %v6164_v63 = vcombine.low %v267_v44, %v279_v45 }
 0x25f   :  { %6965 = vtanh.f32 %v5247_v0  ;;  %v5249_v7 = vadd.f32 %v5248_v2, %v5206_v1  ;;  %v5208_v8 = vadd.f32 %v5207_v4, %v1058_v37  ;;  %5558 = vmatprep.subr.bf16.mxu1 %v6669_v54  ;;  %v5250_v12 = vpop.f32.mrf.mxu1  ;;  %v675_v37 = vld [vmem:[#allocation8 + $0xcf0] sm:$0xff]  ;;  %v6549_v53 = vcombine.high %v651_v47, %v663_v48 }
 0x260   :  { %v6573_v43 = vcombine.high %v675_v37, %v687_v38  ;;  %v6572_v50 = vcombine.low %v675_v37, %v687_v38  ;;  %v627_v54 = vld [vmem:[#allocation8 + $0xb70] sm:$0xff]  ;;  %v6548_v0 = vcombine.low %v651_v47, %v663_v48 }
 0x261   :  { %6967 = vtanh.f32 %v5249_v7  ;;  %v5251_v15 = vadd.f32 %v5250_v12, %v5208_v8  ;;  %5516 = vmatpush1.bf16.msra.mxu0 %v6284_v3  ;;  %v1011_v57 = vld [vmem:[#allocation8 + $0x1770] sm:$0xff]  ;;  %v6525_v1 = vcombine.high %v627_v54, %v639_v55  ;;  %v6524_v7 = vcombine.low %v627_v54, %v639_v55 }
 0x262   :  { %5559 = vmatpush1.bf16.msra.mxu1 %v6668_v5  ;;  %5517 = vmatprep.subr.bf16.mxu0 %v6261_v6  ;;  %v6909_v2 = vcombine.high %v1011_v57, %v1023_v58  ;;  %v603_v3 = vld [vmem:[#allocation8 + $0xab0] sm:$0xff]  ;;  %v6908_v8 = vcombine.low %v1011_v57, %v1023_v58 }
 0x263   :  { %6969 = vtanh.f32 %v5251_v15  ;;  %5560 = vmatprep.subr.bf16.mxu1 %v6645_v9  ;;  %v615_v4 = vld [vmem:[#allocation8 + $0xb10] sm:$0xff] }
 0x264   :  { %v987_v5 = vld [vmem:[#allocation8 + $0x16b0] sm:$0xff]  ;;  %v6501_v9 = vcombine.high %v603_v3, %v615_v4  ;;  %v6500_v15 = vcombine.low %v603_v3, %v615_v4 }
 0x265   :  { %5518 = vmatpush1.bf16.msra.mxu0 %v6260_v16  ;;  %v999_v6 = vld [vmem:[#allocation8 + $0x1710] sm:$0xff] }
 0x266   :  { %5561 = vmatpush1.bf16.msra.mxu1 %v6644_v17  ;;  %5519 = vmatprep.subr.bf16.mxu0 %v6237_v18  ;;  %v6885_v10 = vcombine.high %v987_v5, %v999_v6  ;;  %v591_v12 = vld [vmem:[#allocation8 + $0xa50] sm:$0xff]  ;;  %v6884_v16 = vcombine.low %v987_v5, %v999_v6  ;;  %v436_v6 = vld [vmem:[#allocation8 + $0x578] sm:$0xff] }
 0x267   :  { %5562 = vmatprep.subr.bf16.mxu1 %v6621_v19  ;;  %v963_v13 = vld [vmem:[#allocation8 + $0x15f0] sm:$0xff]  ;;  %v6477_v17 = vcombine.high %v579_v11, %v591_v12  ;;  %v6476_v30 = vcombine.low %v579_v11, %v591_v12  ;;  %v7318_v11 = vsub.s32 6, %v7245_v21 }
 0x268   :  { %v975_v14 = vld [vmem:[#allocation8 + $0x1650] sm:$0xff] }
 0x269   :  { %5520 = vmatpush1.bf16.msra.mxu0 %v6236_v31  ;;  %v6861_v18 = vcombine.high %v963_v13, %v975_v14  ;;  %v555_v19 = vld [vmem:[#allocation8 + $0x930] sm:$0xff]  ;;  %v6860_v31 = vcombine.low %v963_v13, %v975_v14 }
 0x26a   :  { %v6964_v40 = vpop.eup %6963  ;;  %5563 = vmatpush1.bf16.msra.mxu1 %v6620_v32  ;;  %5521 = vmatprep.subr.bf16.mxu0 %v6213_v33  ;;  %v939_v27 = vld [vmem:[#allocation8 + $0x1530] sm:$0xff]  ;;  %v6453_v32 = vcombine.high %v555_v19, %v567_v26  ;;  %v6452_v38 = vcombine.low %v555_v19, %v567_v26 }
 0x26b   :  { %6079 = vst [vmem:[#allocation11 + $0x20] sm:$0xff] %v6964_v40  ;;  %5564 = vmatprep.subr.bf16.mxu1 %v6597_v34  ;;  %v951_v28 = vld [vmem:[#allocation8 + $0x1590] sm:$0xff] }
 0x26c   :  { %v6966_v46 = vpop.eup %6965  ;;  %v6837_v33 = vcombine.high %v939_v27, %v951_v28  ;;  %v531_v34 = vld [vmem:[#allocation8 + $0x870] sm:$0xff] }
 0x26d   :  { %6080 = vst [vmem:[#allocation11 + $0x28] sm:$0xff] %v6966_v46  ;;  %5522 = vmatpush1.bf16.msra.mxu0 %v6212_v39  ;;  %v543_v35 = vld [vmem:[#allocation8 + $0x8d0] sm:$0xff]  ;;  %v6836_v39 = vcombine.low %v939_v27, %v951_v28  ;;  %v796_v27 = vld [vmem:[#allocation8 + $0x10b8] sm:$0xff] }
 0x26e   :  { %v6968_v49 = vpop.eup %6967  ;;  %5565 = vmatpush1.bf16.msra.mxu1 %v6596_v41  ;;  %5523 = vmatprep.subr.bf16.mxu0 %v6189_v42  ;;  %v915_v36 = vld [vmem:[#allocation8 + $0x1470] sm:$0xff]  ;;  %v6429_v40 = vcombine.high %v531_v34, %v543_v35  ;;  %v6428_v46 = vcombine.low %v531_v34, %v543_v35  ;;  %v808_v28 = vld [vmem:[#allocation8 + $0x1118] sm:$0xff] }
 0x26f   :  { %6103 = vst [vmem:[#allocation11 + $0xe0] sm:$0xff] %v6968_v49  ;;  %5566 = vmatprep.subr.bf16.mxu1 %v6573_v43  ;;  %v927_v37 = vld [vmem:[#allocation8 + $0x14d0] sm:$0xff]  ;;  %v400_v34 = vld [vmem:[#allocation8 + $0x458] sm:$0xff]  ;;  %v6695_v35 = vcombine.high %v796_v27, %v808_v28 }
 0x270   :  { %v6970_v56 = vpop.eup %6969  ;;  %v6813_v41 = vcombine.high %v915_v36, %v927_v37  ;;  %v507_v42 = vld [vmem:[#allocation8 + $0x7b0] sm:$0xff]  ;;  %v6812_v47 = vcombine.low %v915_v36, %v927_v37  ;;  %v772_v36 = vld [vmem:[#allocation8 + $0xff8] sm:$0xff] }
 0x271   :  { %6104 = vst [vmem:[#allocation11 + $0xe8] sm:$0xff] %v6970_v56  ;;  %5524 = vmatpush1.bf16.msra.mxu0 %v6188_v51  ;;  %v519_v43 = vld [vmem:[#allocation8 + $0x810] sm:$0xff]  ;;  %v784_v37 = vld [vmem:[#allocation8 + $0x1058] sm:$0xff] }
 0x272   :  { %5567 = vmatpush1.bf16.msra.mxu1 %v6572_v50  ;;  %5525 = vmatprep.subr.bf16.mxu0 %v6165_v52  ;;  %v891_v44 = vld [vmem:[#allocation8 + $0x13b0] sm:$0xff]  ;;  %v6405_v48 = vcombine.high %v507_v42, %v519_v43  ;;  %v6404_v54 = vcombine.low %v507_v42, %v519_v43  ;;  %v6694_v42 = vcombine.low %v796_v27, %v808_v28 }
 0x273   :  { %5568 = vmatprep.subr.bf16.mxu1 %v6549_v53  ;;  %v903_v45 = vld [vmem:[#allocation8 + $0x1410] sm:$0xff] }
 0x274   :  { %v6789_v51 = vcombine.high %v891_v44, %v903_v45  ;;  %v483_v49 = vld [vmem:[#allocation8 + $0x6f0] sm:$0xff]  ;;  %v6788_v55 = vcombine.low %v891_v44, %v903_v45 }
 0x275   :  { %5526 = vmatpush1.bf16.msra.mxu0 %v6164_v63  ;;  %v495_v50 = vld [vmem:[#allocation8 + $0x750] sm:$0xff] }
 0x276   :  { %5569 = vmatpush1.bf16.msra.mxu1 %v6548_v0  ;;  %5527 = vmatprep.subr.bf16.mxu0 %v6525_v1  ;;  %v867_v52 = vld [vmem:[#allocation8 + $0x12f0] sm:$0xff]  ;;  %v6381_v56 = vcombine.high %v483_v49, %v495_v50 }
 0x277   :  { %5570 = vmatprep.subr.bf16.mxu1 %v6909_v2  ;;  %v879_v53 = vld [vmem:[#allocation8 + $0x1350] sm:$0xff]  ;;  %v6380_v2 = vcombine.low %v483_v49, %v495_v50  ;;  %v748_v50 = vld [vmem:[#allocation8 + $0xf38] sm:$0xff] }
 0x278   :  { %v6765_v57 = vcombine.high %v867_v52, %v879_v53  ;;  %v459_v58 = vld [vmem:[#allocation8 + $0x630] sm:$0xff]  ;;  %v6764_v3 = vcombine.low %v867_v52, %v879_v53  ;;  %v760_v52 = vld [vmem:[#allocation8 + $0xf98] sm:$0xff] }
 0x279   :  { %5528 = vmatpush2.bf16.msra.mxu0 %v6524_v7  ;;  %v471_v63 = vld [vmem:[#allocation8 + $0x690] sm:$0xff]  ;;  %v448_v7 = vld [vmem:[#allocation8 + $0x5d8] sm:$0xff] }
 0x27a   :  { %5571 = vmatpush2.bf16.msra.mxu1 %v6908_v8  ;;  %5529 = vmatprep.subr.bf16.mxu0 %v6501_v9  ;;  %v843_v0 = vld [vmem:[#allocation8 + $0x1230] sm:$0xff]  ;;  %v6357_v4 = vcombine.high %v459_v58, %v471_v63  ;;  %v820_v8 = vld [vmem:[#allocation8 + $0x1178] sm:$0xff]  ;;  %v6335_v13 = vcombine.high %v436_v6, %v448_v7  ;;  %v6334_v26 = vcombine.low %v436_v6, %v448_v7 }
 0x27b   :  { %5572 = vmatprep.subr.bf16.mxu1 %v6885_v10  ;;  %v855_v1 = vld [vmem:[#allocation8 + $0x1290] sm:$0xff]  ;;  %v832_v9 = vld [vmem:[#allocation8 + $0x11d8] sm:$0xff]  ;;  %v6356_v10 = vcombine.low %v459_v58, %v471_v63  ;;  %v6670_v58 = vcombine.low %v772_v36, %v784_v37 }
 0x27c   :  { %v6741_v5 = vcombine.high %v843_v0, %v855_v1  ;;  %v6740_v12 = vcombine.low %v843_v0, %v855_v1  ;;  %v6719_v14 = vcombine.high %v820_v8, %v832_v9  ;;  %v724_v6 = vld [vmem:[#allocation8 + $0xe78] sm:$0xff] }
 0x27d   :  { %5530 = vmatpush2.bf16.msra.mxu0 %v6500_v15  ;;  %v7321_v15 = vsub.s32 7, %v7245_v21  ;;  %v736_v7 = vld [vmem:[#allocation8 + $0xed8] sm:$0xff] }
 0x27e   :  { %5573 = vmatpush2.bf16.msra.mxu1 %v6884_v16  ;;  %5531 = vmatprep.subr.bf16.mxu0 %v6477_v17  ;;  %v412_v16 = vld [vmem:[#allocation8 + $0x4b8] sm:$0xff] }
 0x27f   :  { %5574 = vmatprep.subr.bf16.mxu1 %v6861_v18  ;;  %v424_v17 = vld [vmem:[#allocation8 + $0x518] sm:$0xff]  ;;  %v7043_v18 = vld [vmem:[#allocation10] sm:$0xff] }
 0x280   :  { %v1062_v19 = vrot.slane %v7043_v18, %v7318_v11 }
 0x281   :  { %5532 = vmatpush2.bf16.msra.mxu0 %v6476_v30  ;;  %v6718_v30 = vcombine.low %v820_v8, %v832_v9 }
 0x282   :  { %5575 = vmatpush2.bf16.msra.mxu1 %v6860_v31  ;;  %5533 = vmatprep.subr.bf16.mxu0 %v6453_v32  ;;  %v1066_v31 = vrot.slane %v7043_v18, %v7321_v15  ;;  %v6311_v32 = vcombine.high %v412_v16, %v424_v17  ;;  %v712_v18 = vld [vmem:[#allocation8 + $0xe18] sm:$0xff] }
 0x283   :  { %5576 = vmatprep.subr.bf16.mxu1 %v6837_v33  ;;  %v388_v33 = vld [vmem:[#allocation8 + $0x3f8] sm:$0xff] }
 0x284   :  { %v6287_v43 = vcombine.high %v388_v33, %v400_v34 }
 0x285   :  { %5534 = vmatpush2.bf16.msra.mxu0 %v6452_v38 }
 0x286   :  { %5577 = vmatpush2.bf16.msra.mxu1 %v6836_v39  ;;  %5535 = vmatprep.subr.bf16.mxu0 %v6429_v40  ;;  %v6310_v40 = vcombine.low %v412_v16, %v424_v17  ;;  %v328_v16 = vld [vmem:[#allocation8 + $0x218] sm:$0xff] }
 0x287   :  { %5578 = vmatprep.subr.bf16.mxu1 %v6813_v41  ;;  %v700_v17 = vld [vmem:[#allocation8 + $0xdb8] sm:$0xff] }
 0x288   :  { %v6599_v28 = vcombine.high %v700_v17, %v712_v18 }
 0x289   :  { %5536 = vmatpush2.bf16.msra.mxu0 %v6428_v46 }
 0x28a   :  { %5579 = vmatpush2.bf16.msra.mxu1 %v6812_v47  ;;  %5537 = vmatprep.subr.bf16.mxu0 %v6405_v48  ;;  %v6671_v47 = vcombine.high %v772_v36, %v784_v37  ;;  %v364_v48 = vld [vmem:[#allocation8 + $0x338] sm:$0xff] }
 0x28b   :  { %5580 = vmatprep.subr.bf16.mxu1 %v6789_v51  ;;  %v376_v51 = vld [vmem:[#allocation8 + $0x398] sm:$0xff] }
 0x28c   :  { %v6263_v63 = vcombine.high %v364_v48, %v376_v51  ;;  %v6262_v9 = vcombine.low %v364_v48, %v376_v51  ;;  %v628_v48 = vld [vmem:[#allocation8 + $0xb78] sm:$0xff] }
 0x28d   :  { %5538 = vmatpush2.bf16.msra.mxu0 %v6404_v54  ;;  %v640_v51 = vld [vmem:[#allocation8 + $0xbd8] sm:$0xff] }
 0x28e   :  { %5581 = vmatpush2.bf16.msra.mxu1 %v6788_v55  ;;  %5539 = vmatprep.subr.bf16.mxu0 %v6381_v56  ;;  %v6286_v56 = vcombine.low %v388_v33, %v400_v34  ;;  %v688_v33 = vld [vmem:[#allocation8 + $0xd58] sm:$0xff] }
 0x28f   :  { %5582 = vmatprep.subr.bf16.mxu1 %v6765_v57 }
 0x291   :  { %5540 = vmatpush2.bf16.msra.mxu0 %v6380_v2  ;;  %v6647_v2 = vcombine.high %v748_v50, %v760_v52 }
 0x292   :  { %5583 = vmatpush2.bf16.msra.mxu1 %v6764_v3  ;;  %5541 = vmatprep.subr.bf16.mxu0 %v6357_v4  ;;  %v340_v3 = vld [vmem:[#allocation8 + $0x278] sm:$0xff] }
 0x293   :  { %5584 = vmatprep.subr.bf16.mxu1 %v6741_v5  ;;  %v352_v4 = vld [vmem:[#allocation8 + $0x2d8] sm:$0xff] }
 0x295   :  { %5542 = vmatpush2.bf16.msra.mxu0 %v6356_v10  ;;  %v6646_v10 = vcombine.low %v748_v50, %v760_v52  ;;  %v1012_v50 = vld [vmem:[#allocation8 + $0x1778] sm:$0xff] }
 0x296   :  { %5585 = vmatpush2.bf16.msra.mxu1 %v6740_v12  ;;  %5597 = vmatprep.subr.bf16.mxu0 %v6335_v13  ;;  %v6239_v12 = vcombine.high %v340_v3, %v352_v4  ;;  %v6623_v13 = vcombine.high %v724_v6, %v736_v7  ;;  %v1024_v52 = vld [vmem:[#allocation8 + $0x17d8] sm:$0xff] }
 0x297   :  { %5640 = vmatprep.subr.bf16.mxu1 %v6719_v14  ;;  %v316_v14 = vld [vmem:[#allocation8 + $0x1b8] sm:$0xff] }
 0x298   :  { %v5287_v21 = vpop.f32.mrf.mxu0  ;;  %5544 = vmatmul.mubr.bf16.vlgmr.msra.gmra.mxu0 %v7267_v61  ;;  %v6215_v27 = vcombine.high %v316_v14, %v328_v16  ;;  %v6214_v34 = vcombine.low %v316_v14, %v328_v16  ;;  %v556_v14 = vld [vmem:[#allocation8 + $0x938] sm:$0xff] }
 0x299   :  { %v5288_v38 = vadd.f32 %v5287_v21, %v1062_v19  ;;  %v5330_v39 = vpop.f32.mrf.mxu1  ;;  %5587 = vmatmul.mubr.bf16.vlgmr.msra.gmra.mxu1 %v7269_v62  ;;  %5598 = vmatpush1.bf16.msra.mxu0 %v6334_v26  ;;  %v6622_v26 = vcombine.low %v724_v6, %v736_v7  ;;  %v592_v6 = vld [vmem:[#allocation8 + $0xa58] sm:$0xff] }
 0x29a   :  { %5629 = vmatprep.mubr.bf16.mxu0 %v7263_v59  ;;  %5641 = vmatpush1.bf16.msra.mxu1 %v6718_v30  ;;  %v5289_v41 = vpop.f32.mrf.mxu0  ;;  %v292_v30 = vld [vmem:[#allocation8 + $0xf8] sm:$0xff] }
 0x29b   :  { %v5331_v44 = vadd.f32 %v5330_v39, %v5288_v38  ;;  %5672 = vmatprep.mubr.bf16.mxu1 %v7265_v60  ;;  %v5290_v45 = vadd.f32 %v5289_v41, %v1066_v31  ;;  %v5332_v46 = vpop.f32.mrf.mxu1  ;;  %5599 = vmatprep.subr.bf16.mxu0 %v6311_v32  ;;  %v676_v32 = vld [vmem:[#allocation8 + $0xcf8] sm:$0xff] }
 0x29c   :  { %v5291_v49 = vpop.f32.mrf.mxu0  ;;  %5642 = vmatprep.subr.bf16.mxu1 %v6695_v35  ;;  %v6598_v35 = vcombine.low %v700_v17, %v712_v18  ;;  %v6575_v37 = vcombine.high %v676_v32, %v688_v33  ;;  %v268_v38 = vld [vmem:[#allocation8 + $0x38] sm:$0xff] }
 0x29d   :  { %6971 = vtanh.f32 %v5331_v44  ;;  %v5333_v53 = vadd.f32 %v5332_v46, %v5290_v45  ;;  %v5292_v54 = vadd.f32 %v5291_v49, %v1062_v19  ;;  %v5334_v55 = vpop.f32.mrf.mxu1  ;;  %5600 = vmatpush1.bf16.msra.mxu0 %v6310_v40  ;;  %v6238_v19 = vcombine.low %v340_v3, %v352_v4  ;;  %v280_v39 = vld [vmem:[#allocation8 + $0x98] sm:$0xff] }
 0x29e   :  { %5643 = vmatpush1.bf16.msra.mxu1 %v6694_v42  ;;  %v5293_v57 = vpop.f32.mrf.mxu0  ;;  %5601 = vmatprep.subr.bf16.mxu0 %v6287_v43  ;;  %v652_v41 = vld [vmem:[#allocation8 + $0xc38] sm:$0xff]  ;;  %v6574_v45 = vcombine.low %v676_v32, %v688_v33  ;;  %v6167_v46 = vcombine.high %v268_v38, %v280_v39 }
 0x29f   :  { %6973 = vtanh.f32 %v5333_v53  ;;  %v5335_v0 = vadd.f32 %v5334_v55, %v5292_v54  ;;  %v5294_v1 = vadd.f32 %v5293_v57, %v1066_v31  ;;  %5644 = vmatprep.subr.bf16.mxu1 %v6671_v47  ;;  %v5336_v5 = vpop.f32.mrf.mxu1  ;;  %v304_v31 = vld [vmem:[#allocation8 + $0x158] sm:$0xff]  ;;  %v6166_v53 = vcombine.low %v268_v38, %v280_v39 }
 0x2a0   :  { %v6191_v36 = vcombine.high %v292_v30, %v304_v31  ;;  %v664_v42 = vld [vmem:[#allocation8 + $0xc98] sm:$0xff]  ;;  %v6190_v43 = vcombine.low %v292_v30, %v304_v31  ;;  %v6527_v55 = vcombine.high %v628_v48, %v640_v51 }
 0x2a1   :  { %6975 = vtanh.f32 %v5335_v0  ;;  %v5337_v8 = vadd.f32 %v5336_v5, %v5294_v1  ;;  %5602 = vmatpush1.bf16.msra.mxu0 %v6286_v56  ;;  %v6551_v47 = vcombine.high %v652_v41, %v664_v42  ;;  %v6550_v54 = vcombine.low %v652_v41, %v664_v42  ;;  %v604_v57 = vld [vmem:[#allocation8 + $0xab8] sm:$0xff] }
 0x2a2   :  { %5645 = vmatpush1.bf16.msra.mxu1 %v6670_v58  ;;  %5603 = vmatprep.subr.bf16.mxu0 %v6263_v63  ;;  %v6911_v56 = vcombine.high %v1012_v50, %v1024_v52  ;;  %v616_v58 = vld [vmem:[#allocation8 + $0xb18] sm:$0xff]  ;;  %v6526_v1 = vcombine.low %v628_v48, %v640_v51 }
 0x2a3   :  { %6977 = vtanh.f32 %v5337_v8  ;;  %5646 = vmatprep.subr.bf16.mxu1 %v6647_v2  ;;  %v988_v63 = vld [vmem:[#allocation8 + $0x16b8] sm:$0xff]  ;;  %v6910_v2 = vcombine.low %v1012_v50, %v1024_v52  ;;  %v6503_v3 = vcombine.high %v604_v57, %v616_v58 }
 0x2a4   :  { %v1000_v0 = vld [vmem:[#allocation8 + $0x1718] sm:$0xff] }
 0x2a5   :  { %5604 = vmatpush1.bf16.msra.mxu0 %v6262_v9  ;;  %v6887_v4 = vcombine.high %v988_v63, %v1000_v0  ;;  %v580_v5 = vld [vmem:[#allocation8 + $0x9f8] sm:$0xff]  ;;  %v6502_v9 = vcombine.low %v604_v57, %v616_v58 }
 0x2a6   :  { %5647 = vmatpush1.bf16.msra.mxu1 %v6646_v10  ;;  %5605 = vmatprep.subr.bf16.mxu0 %v6239_v12  ;;  %v964_v7 = vld [vmem:[#allocation8 + $0x15f8] sm:$0xff]  ;;  %v6886_v10 = vcombine.low %v988_v63, %v1000_v0  ;;  %v6479_v12 = vcombine.high %v580_v5, %v592_v6 }
 0x2a7   :  { %5648 = vmatprep.subr.bf16.mxu1 %v6623_v13  ;;  %v976_v8 = vld [vmem:[#allocation8 + $0x1658] sm:$0xff] }
 0x2a8   :  { %v6863_v13 = vcombine.high %v964_v7, %v976_v8  ;;  %v568_v16 = vld [vmem:[#allocation8 + $0x998] sm:$0xff] }
 0x2a9   :  { %5606 = vmatpush1.bf16.msra.mxu0 %v6238_v19  ;;  %v940_v17 = vld [vmem:[#allocation8 + $0x1538] sm:$0xff]  ;;  %v6478_v19 = vcombine.low %v580_v5, %v592_v6 }
 0x2aa   :  { %v6972_v21 = vpop.eup %6971  ;;  %5649 = vmatpush1.bf16.msra.mxu1 %v6622_v26  ;;  %5607 = vmatprep.subr.bf16.mxu0 %v6215_v27  ;;  %v952_v18 = vld [vmem:[#allocation8 + $0x1598] sm:$0xff]  ;;  %v6862_v26 = vcombine.low %v964_v7, %v976_v8  ;;  %v6455_v27 = vcombine.high %v556_v14, %v568_v16  ;;  %v7329_v7 = vld [vmem:[#allocation10 + $0x8] sm:$0xff] }
 0x2ab   :  { %6081 = vst [vmem:[#allocation11 + $0x30] sm:$0xff] %v6972_v21  ;;  %5650 = vmatprep.subr.bf16.mxu1 %v6599_v28  ;;  %v6839_v28 = vcombine.high %v940_v17, %v952_v18  ;;  %v532_v30 = vld [vmem:[#allocation8 + $0x878] sm:$0xff]  ;;  %v6838_v21 = vcombine.low %v940_v17, %v952_v18  ;;  %v809_v17 = vld [vmem:[#allocation8 + $0x1120] sm:$0xff] }
 0x2ac   :  { %v6974_v40 = vpop.eup %6973  ;;  %v544_v31 = vld [vmem:[#allocation8 + $0x8d8] sm:$0xff] }
 0x2ad   :  { %6082 = vst [vmem:[#allocation11 + $0x38] sm:$0xff] %v6974_v40  ;;  %5608 = vmatpush1.bf16.msra.mxu0 %v6214_v34  ;;  %v916_v32 = vld [vmem:[#allocation8 + $0x1478] sm:$0xff]  ;;  %v6454_v34 = vcombine.low %v556_v14, %v568_v16  ;;  %v6430_v41 = vcombine.low %v532_v30, %v544_v31  ;;  %v797_v16 = vld [vmem:[#allocation8 + $0x10c0] sm:$0xff] }
 0x2ae   :  { %v6976_v44 = vpop.eup %6975  ;;  %5651 = vmatpush1.bf16.msra.mxu1 %v6598_v35  ;;  %5609 = vmatprep.subr.bf16.mxu0 %v6191_v36  ;;  %v928_v33 = vld [vmem:[#allocation8 + $0x14d8] sm:$0xff]  ;;  %v6431_v35 = vcombine.high %v532_v30, %v544_v31  ;;  %v6697_v31 = vcombine.high %v797_v16, %v809_v17 }
 0x2af   :  { %6105 = vst [vmem:[#allocation11 + $0xf0] sm:$0xff] %v6976_v44  ;;  %5652 = vmatprep.subr.bf16.mxu1 %v6575_v37  ;;  %v6815_v36 = vcombine.high %v916_v32, %v928_v33  ;;  %v508_v37 = vld [vmem:[#allocation8 + $0x7b8] sm:$0xff]  ;;  %v6814_v42 = vcombine.low %v916_v32, %v928_v33  ;;  %v773_v32 = vld [vmem:[#allocation8 + $0x1000] sm:$0xff] }
 0x2b0   :  { %v6978_v49 = vpop.eup %6977  ;;  %v520_v38 = vld [vmem:[#allocation8 + $0x818] sm:$0xff]  ;;  %v785_v33 = vld [vmem:[#allocation8 + $0x1060] sm:$0xff] }
 0x2b1   :  { %6106 = vst [vmem:[#allocation11 + $0xf8] sm:$0xff] %v6978_v49  ;;  %5610 = vmatpush1.bf16.msra.mxu0 %v6190_v43  ;;  %v892_v39 = vld [vmem:[#allocation8 + $0x13b8] sm:$0xff]  ;;  %v6407_v43 = vcombine.high %v508_v37, %v520_v38  ;;  %v6406_v51 = vcombine.low %v508_v37, %v520_v38  ;;  %v6696_v37 = vcombine.low %v797_v16, %v809_v17 }
 0x2b2   :  { %5653 = vmatpush1.bf16.msra.mxu1 %v6574_v45  ;;  %5611 = vmatprep.subr.bf16.mxu0 %v6167_v46  ;;  %v904_v40 = vld [vmem:[#allocation8 + $0x1418] sm:$0xff] }
 0x2b3   :  { %5654 = vmatprep.subr.bf16.mxu1 %v6551_v47  ;;  %v6791_v44 = vcombine.high %v892_v39, %v904_v40  ;;  %v484_v45 = vld [vmem:[#allocation8 + $0x6f8] sm:$0xff]  ;;  %v6790_v49 = vcombine.low %v892_v39, %v904_v40 }
 0x2b4   :  { %v496_v46 = vld [vmem:[#allocation8 + $0x758] sm:$0xff] }
 0x2b5   :  { %5612 = vmatpush1.bf16.msra.mxu0 %v6166_v53  ;;  %v868_v47 = vld [vmem:[#allocation8 + $0x12f8] sm:$0xff]  ;;  %v6383_v50 = vcombine.high %v484_v45, %v496_v46  ;;  %v6382_v57 = vcombine.low %v484_v45, %v496_v46  ;;  %v749_v46 = vld [vmem:[#allocation8 + $0xf40] sm:$0xff] }
 0x2b6   :  { %5655 = vmatpush1.bf16.msra.mxu1 %v6550_v54  ;;  %5613 = vmatprep.subr.bf16.mxu0 %v6527_v55  ;;  %v880_v48 = vld [vmem:[#allocation8 + $0x1358] sm:$0xff] }
 0x2b7   :  { %5656 = vmatprep.subr.bf16.mxu1 %v6911_v56  ;;  %v6767_v52 = vcombine.high %v868_v47, %v880_v48  ;;  %v460_v53 = vld [vmem:[#allocation8 + $0x638] sm:$0xff]  ;;  %v6766_v58 = vcombine.low %v868_v47, %v880_v48  ;;  %v761_v47 = vld [vmem:[#allocation8 + $0xfa0] sm:$0xff] }
 0x2b8   :  { %v472_v54 = vld [vmem:[#allocation8 + $0x698] sm:$0xff] }
 0x2b9   :  { %5614 = vmatpush2.bf16.msra.mxu0 %v6526_v1  ;;  %v844_v55 = vld [vmem:[#allocation8 + $0x1238] sm:$0xff]  ;;  %v6359_v63 = vcombine.high %v460_v53, %v472_v54  ;;  %v437_v1 = vld [vmem:[#allocation8 + $0x580] sm:$0xff]  ;;  %v6358_v5 = vcombine.low %v460_v53, %v472_v54  ;;  %v6672_v53 = vcombine.low %v773_v32, %v785_v33 }
 0x2ba   :  { %5657 = vmatpush2.bf16.msra.mxu1 %v6910_v2  ;;  %5615 = vmatprep.subr.bf16.mxu0 %v6503_v3  ;;  %v856_v56 = vld [vmem:[#allocation8 + $0x1298] sm:$0xff]  ;;  %v449_v2 = vld [vmem:[#allocation8 + $0x5e0] sm:$0xff] }
 0x2bb   :  { %5658 = vmatprep.subr.bf16.mxu1 %v6887_v4  ;;  %v6743_v0 = vcombine.high %v844_v55, %v856_v56  ;;  %v821_v3 = vld [vmem:[#allocation8 + $0x1180] sm:$0xff]  ;;  %v6742_v6 = vcombine.low %v844_v55, %v856_v56  ;;  %v6337_v8 = vcombine.high %v437_v1, %v449_v2  ;;  %v6336_v14 = vcombine.low %v437_v1, %v449_v2 }
 0x2bc   :  { %v833_v4 = vld [vmem:[#allocation8 + $0x11e0] sm:$0xff] }
 0x2bd   :  { %5616 = vmatpush2.bf16.msra.mxu0 %v6502_v9  ;;  %v6721_v9 = vcombine.high %v821_v3, %v833_v4  ;;  %v6720_v18 = vcombine.low %v821_v3, %v833_v4  ;;  %v725_v1 = vld [vmem:[#allocation8 + $0xe80] sm:$0xff] }
 0x2be   :  { %5659 = vmatpush2.bf16.msra.mxu1 %v6886_v10  ;;  %5617 = vmatprep.subr.bf16.mxu0 %v6479_v12  ;;  %v413_v10 = vld [vmem:[#allocation8 + $0x4c0] sm:$0xff] }
 0x2bf   :  { %5660 = vmatprep.subr.bf16.mxu1 %v6863_v13  ;;  %v425_v12 = vld [vmem:[#allocation8 + $0x520] sm:$0xff]  ;;  %v1070_v13 = vrot.slane %v7329_v7, %v7254_v24 }
 0x2c0   :  { %v737_v2 = vld [vmem:[#allocation8 + $0xee0] sm:$0xff] }
 0x2c1   :  { %5618 = vmatpush2.bf16.msra.mxu0 %v6478_v19  ;;  %v1074_v19 = vrot.slane %v7329_v7, %v7248_v22  ;;  %v6624_v16 = vcombine.low %v725_v1, %v737_v2 }
 0x2c2   :  { %5661 = vmatpush2.bf16.msra.mxu1 %v6862_v26  ;;  %5619 = vmatprep.subr.bf16.mxu0 %v6455_v27  ;;  %v6313_v26 = vcombine.high %v413_v10, %v425_v12  ;;  %v389_v27 = vld [vmem:[#allocation8 + $0x400] sm:$0xff] }
 0x2c3   :  { %5662 = vmatprep.subr.bf16.mxu1 %v6839_v28  ;;  %v401_v28 = vld [vmem:[#allocation8 + $0x460] sm:$0xff] }
 0x2c4   :  { %v6289_v38 = vcombine.high %v389_v27, %v401_v28 }
 0x2c5   :  { %5620 = vmatpush2.bf16.msra.mxu0 %v6454_v34 }
 0x2c6   :  { %5663 = vmatpush2.bf16.msra.mxu1 %v6838_v21  ;;  %5621 = vmatprep.subr.bf16.mxu0 %v6431_v35  ;;  %v6312_v35 = vcombine.low %v413_v10, %v425_v12  ;;  %v329_v10 = vld [vmem:[#allocation8 + $0x220] sm:$0xff] }
 0x2c7   :  { %5664 = vmatprep.subr.bf16.mxu1 %v6815_v36  ;;  %v701_v12 = vld [vmem:[#allocation8 + $0xdc0] sm:$0xff] }
 0x2c9   :  { %5622 = vmatpush2.bf16.msra.mxu0 %v6430_v41 }
 0x2ca   :  { %5665 = vmatpush2.bf16.msra.mxu1 %v6814_v42  ;;  %5623 = vmatprep.subr.bf16.mxu0 %v6407_v43  ;;  %v6673_v42 = vcombine.high %v773_v32, %v785_v33  ;;  %v365_v43 = vld [vmem:[#allocation8 + $0x340] sm:$0xff] }
 0x2cb   :  { %5666 = vmatprep.subr.bf16.mxu1 %v6791_v44  ;;  %v377_v44 = vld [vmem:[#allocation8 + $0x3a0] sm:$0xff] }
 0x2cc   :  { %v6265_v54 = vcombine.high %v365_v43, %v377_v44  ;;  %v6264_v4 = vcombine.low %v365_v43, %v377_v44  ;;  %v629_v44 = vld [vmem:[#allocation8 + $0xb80] sm:$0xff] }
 0x2cd   :  { %5624 = vmatpush2.bf16.msra.mxu0 %v6406_v51 }
 0x2ce   :  { %5667 = vmatpush2.bf16.msra.mxu1 %v6790_v49  ;;  %5625 = vmatprep.subr.bf16.mxu0 %v6383_v50  ;;  %v6288_v50 = vcombine.low %v389_v27, %v401_v28  ;;  %v677_v27 = vld [vmem:[#allocation8 + $0xd00] sm:$0xff] }
 0x2cf   :  { %5668 = vmatprep.subr.bf16.mxu1 %v6767_v52  ;;  %v689_v28 = vld [vmem:[#allocation8 + $0xd60] sm:$0xff] }
 0x2d1   :  { %5626 = vmatpush2.bf16.msra.mxu0 %v6382_v57  ;;  %v6649_v57 = vcombine.high %v749_v46, %v761_v47 }
 0x2d2   :  { %5669 = vmatpush2.bf16.msra.mxu1 %v6766_v58  ;;  %5627 = vmatprep.subr.bf16.mxu0 %v6359_v63  ;;  %v341_v58 = vld [vmem:[#allocation8 + $0x280] sm:$0xff] }
 0x2d3   :  { %5670 = vmatprep.subr.bf16.mxu1 %v6743_v0  ;;  %v353_v63 = vld [vmem:[#allocation8 + $0x2e0] sm:$0xff] }
 0x2d5   :  { %5628 = vmatpush2.bf16.msra.mxu0 %v6358_v5  ;;  %v6648_v5 = vcombine.low %v749_v46, %v761_v47  ;;  %v1013_v47 = vld [vmem:[#allocation8 + $0x1780] sm:$0xff] }
 0x2d6   :  { %5671 = vmatpush2.bf16.msra.mxu1 %v6742_v6  ;;  %5683 = vmatprep.subr.bf16.mxu0 %v6337_v8  ;;  %v6241_v6 = vcombine.high %v341_v58, %v353_v63  ;;  %v6625_v8 = vcombine.high %v725_v1, %v737_v2  ;;  %v581_v1 = vld [vmem:[#allocation8 + $0xa00] sm:$0xff] }
 0x2d7   :  { %5726 = vmatprep.subr.bf16.mxu1 %v6721_v9  ;;  %v317_v9 = vld [vmem:[#allocation8 + $0x1c0] sm:$0xff] }
 0x2d8   :  { %v5373_v30 = vpop.f32.mrf.mxu0  ;;  %5630 = vmatmul.mubr.bf16.vlgmr.msra.gmra.mxu0 %v7267_v61  ;;  %v6217_v17 = vcombine.high %v317_v9, %v329_v10  ;;  %v593_v2 = vld [vmem:[#allocation8 + $0xa60] sm:$0xff] }
 0x2d9   :  { %v5374_v34 = vadd.f32 %v5373_v30, %v1070_v13  ;;  %v5416_v21 = vpop.f32.mrf.mxu1  ;;  %5673 = vmatmul.mubr.bf16.vlgmr.msra.gmra.mxu1 %v7269_v62  ;;  %5684 = vmatpush1.bf16.msra.mxu0 %v6336_v14  ;;  %v6240_v14 = vcombine.low %v341_v58, %v353_v63  ;;  %v6216_v30 = vcombine.low %v317_v9, %v329_v10  ;;  %v557_v10 = vld [vmem:[#allocation8 + $0x940] sm:$0xff] }
 0x2da   :  { %5715 = vmatprep.mubr.bf16.mxu0 %v7263_v59  ;;  %5727 = vmatpush1.bf16.msra.mxu1 %v6720_v18  ;;  %v5375_v36 = vpop.f32.mrf.mxu0 }
 0x2db   :  { %v5417_v39 = vadd.f32 %v5416_v21, %v5374_v34  ;;  %5758 = vmatprep.mubr.bf16.mxu1 %v7265_v60  ;;  %v5376_v40 = vadd.f32 %v5375_v36, %v1074_v19  ;;  %v5418_v41 = vpop.f32.mrf.mxu1  ;;  %5685 = vmatprep.subr.bf16.mxu0 %v6313_v26  ;;  %v305_v26 = vld [vmem:[#allocation8 + $0x160] sm:$0xff]  ;;  %v6577_v34 = vcombine.high %v677_v27, %v689_v28 }
 0x2dc   :  { %v5377_v45 = vpop.f32.mrf.mxu0  ;;  %5728 = vmatprep.subr.bf16.mxu1 %v6697_v31  ;;  %v269_v21 = vld [vmem:[#allocation8 + $0x40] sm:$0xff] }
 0x2dd   :  { %6979 = vtanh.f32 %v5417_v39  ;;  %v5419_v48 = vadd.f32 %v5418_v41, %v5376_v40  ;;  %v5378_v51 = vadd.f32 %v5377_v45, %v1070_v13  ;;  %v5420_v49 = vpop.f32.mrf.mxu1  ;;  %5686 = vmatpush1.bf16.msra.mxu0 %v6312_v35  ;;  %v713_v13 = vld [vmem:[#allocation8 + $0xe20] sm:$0xff]  ;;  %v6576_v41 = vcombine.low %v677_v27, %v689_v28 }
 0x2de   :  { %5729 = vmatpush1.bf16.msra.mxu1 %v6696_v37  ;;  %v5379_v52 = vpop.f32.mrf.mxu0  ;;  %5687 = vmatprep.subr.bf16.mxu0 %v6289_v38  ;;  %v6601_v18 = vcombine.high %v701_v12, %v713_v13  ;;  %v6600_v32 = vcombine.low %v701_v12, %v713_v13  ;;  %v281_v35 = vld [vmem:[#allocation8 + $0xa0] sm:$0xff] }
 0x2df   :  { %6981 = vtanh.f32 %v5419_v48  ;;  %v5421_v55 = vadd.f32 %v5420_v49, %v5378_v51  ;;  %v5380_v56 = vadd.f32 %v5379_v52, %v1074_v19  ;;  %5730 = vmatprep.subr.bf16.mxu1 %v6673_v42  ;;  %v5422_v0 = vpop.f32.mrf.mxu1  ;;  %v293_v19 = vld [vmem:[#allocation8 + $0x100] sm:$0xff]  ;;  %v6169_v42 = vcombine.high %v269_v21, %v281_v35 }
 0x2e0   :  { %v6193_v33 = vcombine.high %v293_v19, %v305_v26  ;;  %v653_v37 = vld [vmem:[#allocation8 + $0xc40] sm:$0xff]  ;;  %v6192_v39 = vcombine.low %v293_v19, %v305_v26  ;;  %v6168_v51 = vcombine.low %v269_v21, %v281_v35 }
 0x2e1   :  { %6983 = vtanh.f32 %v5421_v55  ;;  %v5423_v3 = vadd.f32 %v5422_v0, %v5380_v56  ;;  %5688 = vmatpush1.bf16.msra.mxu0 %v6288_v50  ;;  %v665_v38 = vld [vmem:[#allocation8 + $0xca0] sm:$0xff] }
 0x2e2   :  { %5731 = vmatpush1.bf16.msra.mxu1 %v6672_v53  ;;  %5689 = vmatprep.subr.bf16.mxu0 %v6265_v54  ;;  %v6553_v43 = vcombine.high %v653_v37, %v665_v38  ;;  %v641_v45 = vld [vmem:[#allocation8 + $0xbe0] sm:$0xff]  ;;  %v6552_v49 = vcombine.low %v653_v37, %v665_v38 }
 0x2e3   :  { %6985 = vtanh.f32 %v5423_v3  ;;  %5732 = vmatprep.subr.bf16.mxu1 %v6649_v57  ;;  %v1025_v48 = vld [vmem:[#allocation8 + $0x17e0] sm:$0xff]  ;;  %v6529_v50 = vcombine.high %v629_v44, %v641_v45  ;;  %v6528_v57 = vcombine.low %v629_v44, %v641_v45 }
 0x2e4   :  { %v6913_v52 = vcombine.high %v1013_v47, %v1025_v48  ;;  %v605_v53 = vld [vmem:[#allocation8 + $0xac0] sm:$0xff]  ;;  %v6912_v58 = vcombine.low %v1013_v47, %v1025_v48 }
 0x2e5   :  { %5690 = vmatpush1.bf16.msra.mxu0 %v6264_v4  ;;  %v617_v54 = vld [vmem:[#allocation8 + $0xb20] sm:$0xff] }
 0x2e6   :  { %5733 = vmatpush1.bf16.msra.mxu1 %v6648_v5  ;;  %5691 = vmatprep.subr.bf16.mxu0 %v6241_v6  ;;  %v989_v55 = vld [vmem:[#allocation8 + $0x16c0] sm:$0xff]  ;;  %v6505_v63 = vcombine.high %v605_v53, %v617_v54  ;;  %v6504_v5 = vcombine.low %v605_v53, %v617_v54 }
 0x2e7   :  { %5734 = vmatprep.subr.bf16.mxu1 %v6625_v8  ;;  %v1001_v56 = vld [vmem:[#allocation8 + $0x1720] sm:$0xff]  ;;  %v6481_v8 = vcombine.high %v581_v1, %v593_v2 }
 0x2e8   :  { %v6889_v0 = vcombine.high %v989_v55, %v1001_v56  ;;  %v965_v3 = vld [vmem:[#allocation8 + $0x1600] sm:$0xff]  ;;  %v6888_v6 = vcombine.low %v989_v55, %v1001_v56 }
 0x2e9   :  { %5692 = vmatpush1.bf16.msra.mxu0 %v6240_v14  ;;  %v977_v4 = vld [vmem:[#allocation8 + $0x1660] sm:$0xff] }
 0x2ea   :  { %v6980_v31 = vpop.eup %6979  ;;  %5735 = vmatpush1.bf16.msra.mxu1 %v6624_v16  ;;  %5693 = vmatprep.subr.bf16.mxu0 %v6217_v17  ;;  %v6865_v9 = vcombine.high %v965_v3, %v977_v4  ;;  %v569_v12 = vld [vmem:[#allocation8 + $0x9a0] sm:$0xff]  ;;  %v6480_v16 = vcombine.low %v581_v1, %v593_v2  ;;  %v6864_v17 = vcombine.low %v965_v3, %v977_v4  ;;  %v834_v1 = vld [vmem:[#allocation8 + $0x11e8] sm:$0xff] }
 0x2eb   :  { %6083 = vst [vmem:[#allocation11 + $0x40] sm:$0xff] %v6980_v31  ;;  %5736 = vmatprep.subr.bf16.mxu1 %v6601_v18  ;;  %v941_v13 = vld [vmem:[#allocation8 + $0x1540] sm:$0xff]  ;;  %v6457_v18 = vcombine.high %v557_v10, %v569_v12  ;;  %v6456_v31 = vcombine.low %v557_v10, %v569_v12  ;;  %v798_v12 = vld [vmem:[#allocation8 + $0x10c8] sm:$0xff] }
 0x2ec   :  { %v6982_v36 = vpop.eup %6981  ;;  %v953_v14 = vld [vmem:[#allocation8 + $0x15a0] sm:$0xff] }
 0x2ed   :  { %6084 = vst [vmem:[#allocation11 + $0x48] sm:$0xff] %v6982_v36  ;;  %5694 = vmatpush1.bf16.msra.mxu0 %v6216_v30  ;;  %v6841_v19 = vcombine.high %v941_v13, %v953_v14  ;;  %v533_v26 = vld [vmem:[#allocation8 + $0x880] sm:$0xff] }
 0x2ee   :  { %v6984_v40 = vpop.eup %6983  ;;  %5737 = vmatpush1.bf16.msra.mxu1 %v6600_v32  ;;  %5695 = vmatprep.subr.bf16.mxu0 %v6193_v33  ;;  %v545_v27 = vld [vmem:[#allocation8 + $0x8e0] sm:$0xff]  ;;  %v6840_v32 = vcombine.low %v941_v13, %v953_v14  ;;  %v810_v13 = vld [vmem:[#allocation8 + $0x1128] sm:$0xff] }
 0x2ef   :  { %6107 = vst [vmem:[#allocation11 + $0x100] sm:$0xff] %v6984_v40  ;;  %5738 = vmatprep.subr.bf16.mxu1 %v6577_v34  ;;  %v917_v28 = vld [vmem:[#allocation8 + $0x1480] sm:$0xff]  ;;  %v6433_v33 = vcombine.high %v533_v26, %v545_v27  ;;  %v6432_v38 = vcombine.low %v533_v26, %v545_v27  ;;  %v6699_v27 = vcombine.high %v798_v12, %v810_v13 }
 0x2f0   :  { %v6986_v46 = vpop.eup %6985  ;;  %v929_v30 = vld [vmem:[#allocation8 + $0x14e0] sm:$0xff] }
 0x2f1   :  { %6108 = vst [vmem:[#allocation11 + $0x108] sm:$0xff] %v6986_v46  ;;  %5696 = vmatpush1.bf16.msra.mxu0 %v6192_v39  ;;  %v6817_v34 = vcombine.high %v917_v28, %v929_v30  ;;  %v509_v21 = vld [vmem:[#allocation8 + $0x7c0] sm:$0xff]  ;;  %v6816_v39 = vcombine.low %v917_v28, %v929_v30  ;;  %v774_v28 = vld [vmem:[#allocation8 + $0x1008] sm:$0xff] }
 0x2f2   :  { %5739 = vmatpush1.bf16.msra.mxu1 %v6576_v41  ;;  %5697 = vmatprep.subr.bf16.mxu0 %v6169_v42  ;;  %v521_v35 = vld [vmem:[#allocation8 + $0x820] sm:$0xff]  ;;  %v786_v30 = vld [vmem:[#allocation8 + $0x1068] sm:$0xff] }
 0x2f3   :  { %5740 = vmatprep.subr.bf16.mxu1 %v6553_v43  ;;  %v893_v36 = vld [vmem:[#allocation8 + $0x13c0] sm:$0xff]  ;;  %v6409_v40 = vcombine.high %v509_v21, %v521_v35  ;;  %v6408_v46 = vcombine.low %v509_v21, %v521_v35  ;;  %v6698_v21 = vcombine.low %v798_v12, %v810_v13 }
 0x2f4   :  { %v905_v37 = vld [vmem:[#allocation8 + $0x1420] sm:$0xff] }
 0x2f5   :  { %5698 = vmatpush1.bf16.msra.mxu0 %v6168_v51  ;;  %v6793_v41 = vcombine.high %v893_v36, %v905_v37  ;;  %v485_v42 = vld [vmem:[#allocation8 + $0x700] sm:$0xff]  ;;  %v6792_v47 = vcombine.low %v893_v36, %v905_v37 }
 0x2f6   :  { %5741 = vmatpush1.bf16.msra.mxu1 %v6552_v49  ;;  %5699 = vmatprep.subr.bf16.mxu0 %v6529_v50  ;;  %v497_v43 = vld [vmem:[#allocation8 + $0x760] sm:$0xff] }
 0x2f7   :  { %5742 = vmatprep.subr.bf16.mxu1 %v6913_v52  ;;  %v869_v44 = vld [vmem:[#allocation8 + $0x1300] sm:$0xff]  ;;  %v6385_v48 = vcombine.high %v485_v42, %v497_v43  ;;  %v6384_v54 = vcombine.low %v485_v42, %v497_v43  ;;  %v750_v43 = vld [vmem:[#allocation8 + $0xf48] sm:$0xff] }
 0x2f8   :  { %v881_v45 = vld [vmem:[#allocation8 + $0x1360] sm:$0xff] }
 0x2f9   :  { %5700 = vmatpush2.bf16.msra.mxu0 %v6528_v57  ;;  %v6769_v51 = vcombine.high %v869_v44, %v881_v45  ;;  %v461_v49 = vld [vmem:[#allocation8 + $0x640] sm:$0xff]  ;;  %v6768_v55 = vcombine.low %v869_v44, %v881_v45  ;;  %v762_v44 = vld [vmem:[#allocation8 + $0xfa8] sm:$0xff] }
 0x2fa   :  { %5743 = vmatpush2.bf16.msra.mxu1 %v6912_v58  ;;  %5701 = vmatprep.subr.bf16.mxu0 %v6505_v63  ;;  %v473_v50 = vld [vmem:[#allocation8 + $0x6a0] sm:$0xff]  ;;  %v438_v58 = vld [vmem:[#allocation8 + $0x588] sm:$0xff] }
 0x2fb   :  { %5744 = vmatprep.subr.bf16.mxu1 %v6889_v0  ;;  %v845_v52 = vld [vmem:[#allocation8 + $0x1240] sm:$0xff]  ;;  %v6361_v56 = vcombine.high %v461_v49, %v473_v50  ;;  %v450_v63 = vld [vmem:[#allocation8 + $0x5e8] sm:$0xff]  ;;  %v6360_v2 = vcombine.low %v461_v49, %v473_v50  ;;  %v6674_v49 = vcombine.low %v774_v28, %v786_v30 }
 0x2fc   :  { %v857_v53 = vld [vmem:[#allocation8 + $0x12a0] sm:$0xff]  ;;  %v822_v0 = vld [vmem:[#allocation8 + $0x1188] sm:$0xff]  ;;  %v6339_v4 = vcombine.high %v438_v58, %v450_v63  ;;  %v6338_v10 = vcombine.low %v438_v58, %v450_v63 }
 0x2fd   :  { %5702 = vmatpush2.bf16.msra.mxu0 %v6504_v5  ;;  %v6745_v57 = vcombine.high %v845_v52, %v857_v53  ;;  %v6744_v3 = vcombine.low %v845_v52, %v857_v53  ;;  %v6723_v5 = vcombine.high %v822_v0, %v834_v1  ;;  %v6722_v14 = vcombine.low %v822_v0, %v834_v1  ;;  %v726_v58 = vld [vmem:[#allocation8 + $0xe88] sm:$0xff] }
 0x2fe   :  { %5745 = vmatpush2.bf16.msra.mxu1 %v6888_v6  ;;  %5703 = vmatprep.subr.bf16.mxu0 %v6481_v8  ;;  %v414_v6 = vld [vmem:[#allocation8 + $0x4c8] sm:$0xff] }
 0x2ff   :  { %5746 = vmatprep.subr.bf16.mxu1 %v6865_v9  ;;  %v426_v8 = vld [vmem:[#allocation8 + $0x528] sm:$0xff]  ;;  %v1078_v9 = vrot.slane %v7329_v7, %v7257_v25 }
 0x300   :  { %v738_v63 = vld [vmem:[#allocation8 + $0xee8] sm:$0xff] }
 0x301   :  { %5704 = vmatpush2.bf16.msra.mxu0 %v6480_v16  ;;  %v1082_v16 = vrot.slane %v7329_v7, %v7251_v23  ;;  %v6626_v12 = vcombine.low %v726_v58, %v738_v63 }
 0x302   :  { %5747 = vmatpush2.bf16.msra.mxu1 %v6864_v17  ;;  %5705 = vmatprep.subr.bf16.mxu0 %v6457_v18  ;;  %v6315_v17 = vcombine.high %v414_v6, %v426_v8  ;;  %v390_v18 = vld [vmem:[#allocation8 + $0x408] sm:$0xff] }
 0x303   :  { %5748 = vmatprep.subr.bf16.mxu1 %v6841_v19  ;;  %v402_v19 = vld [vmem:[#allocation8 + $0x468] sm:$0xff] }
 0x304   :  { %v6291_v35 = vcombine.high %v390_v18, %v402_v19 }
 0x305   :  { %5706 = vmatpush2.bf16.msra.mxu0 %v6456_v31 }
 0x306   :  { %5749 = vmatpush2.bf16.msra.mxu1 %v6840_v32  ;;  %5707 = vmatprep.subr.bf16.mxu0 %v6433_v33  ;;  %v6314_v33 = vcombine.low %v414_v6, %v426_v8  ;;  %v330_v6 = vld [vmem:[#allocation8 + $0x228] sm:$0xff] }
 0x307   :  { %5750 = vmatprep.subr.bf16.mxu1 %v6817_v34  ;;  %v702_v8 = vld [vmem:[#allocation8 + $0xdc8] sm:$0xff] }
 0x309   :  { %5708 = vmatpush2.bf16.msra.mxu0 %v6432_v38 }
 0x30a   :  { %5751 = vmatpush2.bf16.msra.mxu1 %v6816_v39  ;;  %5709 = vmatprep.subr.bf16.mxu0 %v6409_v40  ;;  %v6675_v39 = vcombine.high %v774_v28, %v786_v30  ;;  %v366_v40 = vld [vmem:[#allocation8 + $0x348] sm:$0xff] }
 0x30b   :  { %5752 = vmatprep.subr.bf16.mxu1 %v6793_v41  ;;  %v378_v41 = vld [vmem:[#allocation8 + $0x3a8] sm:$0xff] }
 0x30c   :  { %v6267_v50 = vcombine.high %v366_v40, %v378_v41  ;;  %v6266_v1 = vcombine.low %v366_v40, %v378_v41  ;;  %v630_v41 = vld [vmem:[#allocation8 + $0xb88] sm:$0xff] }
 0x30d   :  { %5710 = vmatpush2.bf16.msra.mxu0 %v6408_v46 }
 0x30e   :  { %5753 = vmatpush2.bf16.msra.mxu1 %v6792_v47  ;;  %5711 = vmatprep.subr.bf16.mxu0 %v6385_v48  ;;  %v6290_v48 = vcombine.low %v390_v18, %v402_v19  ;;  %v678_v18 = vld [vmem:[#allocation8 + $0xd08] sm:$0xff] }
 0x30f   :  { %5754 = vmatprep.subr.bf16.mxu1 %v6769_v51  ;;  %v690_v19 = vld [vmem:[#allocation8 + $0xd68] sm:$0xff] }
 0x311   :  { %5712 = vmatpush2.bf16.msra.mxu0 %v6384_v54  ;;  %v6651_v54 = vcombine.high %v750_v43, %v762_v44 }
 0x312   :  { %5755 = vmatpush2.bf16.msra.mxu1 %v6768_v55  ;;  %5713 = vmatprep.subr.bf16.mxu0 %v6361_v56  ;;  %v342_v55 = vld [vmem:[#allocation8 + $0x288] sm:$0xff] }
 0x313   :  { %5756 = vmatprep.subr.bf16.mxu1 %v6745_v57  ;;  %v354_v56 = vld [vmem:[#allocation8 + $0x2e8] sm:$0xff] }
 0x315   :  { %5714 = vmatpush2.bf16.msra.mxu0 %v6360_v2  ;;  %v6650_v2 = vcombine.low %v750_v43, %v762_v44  ;;  %v1014_v44 = vld [vmem:[#allocation8 + $0x1788] sm:$0xff] }
 0x316   :  { %5757 = vmatpush2.bf16.msra.mxu1 %v6744_v3  ;;  %5769 = vmatprep.subr.bf16.mxu0 %v6339_v4  ;;  %v6243_v3 = vcombine.high %v342_v55, %v354_v56  ;;  %v6627_v4 = vcombine.high %v726_v58, %v738_v63  ;;  %v582_v58 = vld [vmem:[#allocation8 + $0xa08] sm:$0xff] }
 0x317   :  { %5812 = vmatprep.subr.bf16.mxu1 %v6723_v5  ;;  %v318_v5 = vld [vmem:[#allocation8 + $0x1c8] sm:$0xff] }
 0x318   :  { %v5459_v26 = vpop.f32.mrf.mxu0  ;;  %5716 = vmatmul.mubr.bf16.vlgmr.msra.gmra.mxu0 %v7267_v61  ;;  %v6219_v13 = vcombine.high %v318_v5, %v330_v6  ;;  %v594_v63 = vld [vmem:[#allocation8 + $0xa68] sm:$0xff] }
 0x319   :  { %v5460_v31 = vadd.f32 %v5459_v26, %v1078_v9  ;;  %v5502_v32 = vpop.f32.mrf.mxu1  ;;  %5759 = vmatmul.mubr.bf16.vlgmr.msra.gmra.mxu1 %v7269_v62  ;;  %5770 = vmatpush1.bf16.msra.mxu0 %v6338_v10  ;;  %v6242_v10 = vcombine.low %v342_v55, %v354_v56  ;;  %v6218_v26 = vcombine.low %v318_v5, %v330_v6  ;;  %v558_v6 = vld [vmem:[#allocation8 + $0x948] sm:$0xff] }
 0x31a   :  { %5801 = vmatprep.mubr.bf16.mxu0 %v7263_v59  ;;  %5813 = vmatpush1.bf16.msra.mxu1 %v6722_v14  ;;  %v5461_v34 = vpop.f32.mrf.mxu0 }
 0x31b   :  { %v5503_v36 = vadd.f32 %v5502_v32, %v5460_v31  ;;  %5844 = vmatprep.mubr.bf16.mxu1 %v7265_v60  ;;  %v5462_v37 = vadd.f32 %v5461_v34, %v1082_v16  ;;  %v5504_v38 = vpop.f32.mrf.mxu1  ;;  %5771 = vmatprep.subr.bf16.mxu0 %v6315_v17  ;;  %v306_v17 = vld [vmem:[#allocation8 + $0x168] sm:$0xff]  ;;  %v6579_v31 = vcombine.high %v678_v18, %v690_v19 }
 0x31c   :  { %v5463_v42 = vpop.f32.mrf.mxu0  ;;  %5814 = vmatprep.subr.bf16.mxu1 %v6699_v27  ;;  %v270_v32 = vld [vmem:[#allocation8 + $0x48] sm:$0xff] }
 0x31d   :  { %6987 = vtanh.f32 %v5503_v36  ;;  %v5505_v45 = vadd.f32 %v5504_v38, %v5462_v37  ;;  %v5464_v46 = vadd.f32 %v5463_v42, %v1078_v9  ;;  %v5506_v47 = vpop.f32.mrf.mxu1  ;;  %5772 = vmatpush1.bf16.msra.mxu0 %v6314_v33  ;;  %v714_v9 = vld [vmem:[#allocation8 + $0xe28] sm:$0xff]  ;;  %v6578_v38 = vcombine.low %v678_v18, %v690_v19 }
 0x31e   :  { %5815 = vmatpush1.bf16.msra.mxu1 %v6698_v21  ;;  %v5465_v51 = vpop.f32.mrf.mxu0  ;;  %5773 = vmatprep.subr.bf16.mxu0 %v6291_v35  ;;  %v6603_v14 = vcombine.high %v702_v8, %v714_v9  ;;  %v6602_v28 = vcombine.low %v702_v8, %v714_v9  ;;  %v282_v33 = vld [vmem:[#allocation8 + $0xa8] sm:$0xff] }
 0x31f   :  { %6989 = vtanh.f32 %v5505_v45  ;;  %v5507_v52 = vadd.f32 %v5506_v47, %v5464_v46  ;;  %v5466_v53 = vadd.f32 %v5465_v51, %v1082_v16  ;;  %5816 = vmatprep.subr.bf16.mxu1 %v6675_v39  ;;  %v5508_v57 = vpop.f32.mrf.mxu1  ;;  %v294_v16 = vld [vmem:[#allocation8 + $0x108] sm:$0xff]  ;;  %v6171_v39 = vcombine.high %v270_v32, %v282_v33 }
 0x320   :  { %v6195_v30 = vcombine.high %v294_v16, %v306_v17  ;;  %v654_v21 = vld [vmem:[#allocation8 + $0xc48] sm:$0xff]  ;;  %v6194_v36 = vcombine.low %v294_v16, %v306_v17  ;;  %v6170_v46 = vcombine.low %v270_v32, %v282_v33 }
 0x321   :  { %6991 = vtanh.f32 %v5507_v52  ;;  %v5509_v0 = vadd.f32 %v5508_v57, %v5466_v53  ;;  %5774 = vmatpush1.bf16.msra.mxu0 %v6290_v48  ;;  %v666_v35 = vld [vmem:[#allocation8 + $0xca8] sm:$0xff] }
 0x322   :  { %5817 = vmatpush1.bf16.msra.mxu1 %v6674_v49  ;;  %5775 = vmatprep.subr.bf16.mxu0 %v6267_v50  ;;  %v6555_v40 = vcombine.high %v654_v21, %v666_v35  ;;  %v642_v42 = vld [vmem:[#allocation8 + $0xbe8] sm:$0xff]  ;;  %v6554_v47 = vcombine.low %v654_v21, %v666_v35 }
 0x323   :  { %6993 = vtanh.f32 %v5509_v0  ;;  %5818 = vmatprep.subr.bf16.mxu1 %v6651_v54  ;;  %v1026_v45 = vld [vmem:[#allocation8 + $0x17e8] sm:$0xff]  ;;  %v6531_v48 = vcombine.high %v630_v41, %v642_v42  ;;  %v6530_v54 = vcombine.low %v630_v41, %v642_v42 }
 0x324   :  { %v6915_v51 = vcombine.high %v1014_v44, %v1026_v45  ;;  %v606_v49 = vld [vmem:[#allocation8 + $0xac8] sm:$0xff]  ;;  %v6914_v55 = vcombine.low %v1014_v44, %v1026_v45 }
 0x325   :  { %5776 = vmatpush1.bf16.msra.mxu0 %v6266_v1  ;;  %v618_v50 = vld [vmem:[#allocation8 + $0xb28] sm:$0xff] }
 0x326   :  { %5819 = vmatpush1.bf16.msra.mxu1 %v6650_v2  ;;  %5777 = vmatprep.subr.bf16.mxu0 %v6243_v3  ;;  %v990_v52 = vld [vmem:[#allocation8 + $0x16c8] sm:$0xff]  ;;  %v6507_v56 = vcombine.high %v606_v49, %v618_v50  ;;  %v6506_v2 = vcombine.low %v606_v49, %v618_v50 }
 0x327   :  { %5820 = vmatprep.subr.bf16.mxu1 %v6627_v4  ;;  %v1002_v53 = vld [vmem:[#allocation8 + $0x1728] sm:$0xff]  ;;  %v6483_v4 = vcombine.high %v582_v58, %v594_v63 }
 0x328   :  { %v6891_v57 = vcombine.high %v990_v52, %v1002_v53  ;;  %v966_v0 = vld [vmem:[#allocation8 + $0x1608] sm:$0xff]  ;;  %v6890_v3 = vcombine.low %v990_v52, %v1002_v53 }
 0x329   :  { %5778 = vmatpush1.bf16.msra.mxu0 %v6242_v10  ;;  %v978_v1 = vld [vmem:[#allocation8 + $0x1668] sm:$0xff] }
 0x32a   :  { %v6988_v27 = vpop.eup %6987  ;;  %5821 = vmatpush1.bf16.msra.mxu1 %v6626_v12  ;;  %5779 = vmatprep.subr.bf16.mxu0 %v6219_v13  ;;  %v6867_v5 = vcombine.high %v966_v0, %v978_v1  ;;  %v570_v8 = vld [vmem:[#allocation8 + $0x9a8] sm:$0xff]  ;;  %v6482_v12 = vcombine.low %v582_v58, %v594_v63  ;;  %v6866_v13 = vcombine.low %v966_v0, %v978_v1  ;;  %v835_v58 = vld [vmem:[#allocation8 + $0x11f0] sm:$0xff] }
 0x32b   :  { %6085 = vst [vmem:[#allocation11 + $0x50] sm:$0xff] %v6988_v27  ;;  %5822 = vmatprep.subr.bf16.mxu1 %v6603_v14  ;;  %v942_v9 = vld [vmem:[#allocation8 + $0x1548] sm:$0xff]  ;;  %v6459_v14 = vcombine.high %v558_v6, %v570_v8  ;;  %v6458_v27 = vcombine.low %v558_v6, %v570_v8  ;;  %v799_v8 = vld [vmem:[#allocation8 + $0x10d0] sm:$0xff] }
 0x32c   :  { %v6990_v34 = vpop.eup %6989  ;;  %v954_v10 = vld [vmem:[#allocation8 + $0x15a8] sm:$0xff] }
 0x32d   :  { %6086 = vst [vmem:[#allocation11 + $0x58] sm:$0xff] %v6990_v34  ;;  %5780 = vmatpush1.bf16.msra.mxu0 %v6218_v26  ;;  %v6843_v16 = vcombine.high %v942_v9, %v954_v10  ;;  %v534_v17 = vld [vmem:[#allocation8 + $0x888] sm:$0xff] }
 0x32e   :  { %v6992_v37 = vpop.eup %6991  ;;  %5823 = vmatpush1.bf16.msra.mxu1 %v6602_v28  ;;  %5781 = vmatprep.subr.bf16.mxu0 %v6195_v30  ;;  %v546_v18 = vld [vmem:[#allocation8 + $0x8e8] sm:$0xff]  ;;  %v6842_v28 = vcombine.low %v942_v9, %v954_v10  ;;  %v811_v9 = vld [vmem:[#allocation8 + $0x1130] sm:$0xff] }
 0x32f   :  { %6109 = vst [vmem:[#allocation11 + $0x110] sm:$0xff] %v6992_v37  ;;  %5824 = vmatprep.subr.bf16.mxu1 %v6579_v31  ;;  %v918_v19 = vld [vmem:[#allocation8 + $0x1488] sm:$0xff]  ;;  %v6435_v30 = vcombine.high %v534_v17, %v546_v18  ;;  %v6434_v35 = vcombine.low %v534_v17, %v546_v18  ;;  %v6701_v18 = vcombine.high %v799_v8, %v811_v9 }
 0x330   :  { %v6994_v43 = vpop.eup %6993  ;;  %v930_v26 = vld [vmem:[#allocation8 + $0x14e8] sm:$0xff] }
 0x331   :  { %6110 = vst [vmem:[#allocation11 + $0x118] sm:$0xff] %v6994_v43  ;;  %5782 = vmatpush1.bf16.msra.mxu0 %v6194_v36  ;;  %v6819_v31 = vcombine.high %v918_v19, %v930_v26  ;;  %v510_v32 = vld [vmem:[#allocation8 + $0x7c8] sm:$0xff]  ;;  %v6818_v36 = vcombine.low %v918_v19, %v930_v26  ;;  %v775_v19 = vld [vmem:[#allocation8 + $0x1010] sm:$0xff] }
 0x332   :  { %5825 = vmatpush1.bf16.msra.mxu1 %v6578_v38  ;;  %5783 = vmatprep.subr.bf16.mxu0 %v6171_v39  ;;  %v522_v33 = vld [vmem:[#allocation8 + $0x828] sm:$0xff]  ;;  %v787_v26 = vld [vmem:[#allocation8 + $0x1070] sm:$0xff] }
 0x333   :  { %5826 = vmatprep.subr.bf16.mxu1 %v6555_v40  ;;  %v894_v34 = vld [vmem:[#allocation8 + $0x13c8] sm:$0xff]  ;;  %v6411_v37 = vcombine.high %v510_v32, %v522_v33  ;;  %v6410_v43 = vcombine.low %v510_v32, %v522_v33 }
 0x334   :  { %v906_v21 = vld [vmem:[#allocation8 + $0x1428] sm:$0xff] }
 0x335   :  { %5784 = vmatpush1.bf16.msra.mxu0 %v6170_v46  ;;  %v6795_v38 = vcombine.high %v894_v34, %v906_v21  ;;  %v486_v39 = vld [vmem:[#allocation8 + $0x708] sm:$0xff]  ;;  %v6794_v44 = vcombine.low %v894_v34, %v906_v21 }
 0x336   :  { %5827 = vmatpush1.bf16.msra.mxu1 %v6554_v47  ;;  %5785 = vmatprep.subr.bf16.mxu0 %v6531_v48  ;;  %v498_v40 = vld [vmem:[#allocation8 + $0x768] sm:$0xff] }
 0x337   :  { %5828 = vmatprep.subr.bf16.mxu1 %v6915_v51  ;;  %v870_v41 = vld [vmem:[#allocation8 + $0x1308] sm:$0xff]  ;;  %v6387_v45 = vcombine.high %v486_v39, %v498_v40  ;;  %v6386_v50 = vcombine.low %v486_v39, %v498_v40  ;;  %v751_v39 = vld [vmem:[#allocation8 + $0xf50] sm:$0xff] }
 0x338   :  { %v882_v42 = vld [vmem:[#allocation8 + $0x1368] sm:$0xff]  ;;  %v763_v40 = vld [vmem:[#allocation8 + $0xfb0] sm:$0xff] }
 0x339   :  { %5786 = vmatpush2.bf16.msra.mxu0 %v6530_v54  ;;  %v6771_v46 = vcombine.high %v870_v41, %v882_v42  ;;  %v462_v47 = vld [vmem:[#allocation8 + $0x648] sm:$0xff]  ;;  %v6770_v52 = vcombine.low %v870_v41, %v882_v42 }
 0x33a   :  { %5829 = vmatpush2.bf16.msra.mxu1 %v6914_v55  ;;  %5787 = vmatprep.subr.bf16.mxu0 %v6507_v56  ;;  %v474_v48 = vld [vmem:[#allocation8 + $0x6a8] sm:$0xff]  ;;  %v439_v55 = vld [vmem:[#allocation8 + $0x590] sm:$0xff] }
 0x33b   :  { %5830 = vmatprep.subr.bf16.mxu1 %v6891_v57  ;;  %v846_v51 = vld [vmem:[#allocation8 + $0x1248] sm:$0xff]  ;;  %v6363_v53 = vcombine.high %v462_v47, %v474_v48  ;;  %v451_v56 = vld [vmem:[#allocation8 + $0x5f0] sm:$0xff]  ;;  %v6362_v63 = vcombine.low %v462_v47, %v474_v48 }
 0x33c   :  { %v858_v49 = vld [vmem:[#allocation8 + $0x12a8] sm:$0xff]  ;;  %v823_v57 = vld [vmem:[#allocation8 + $0x1190] sm:$0xff]  ;;  %v6341_v1 = vcombine.high %v439_v55, %v451_v56  ;;  %v6340_v6 = vcombine.low %v439_v55, %v451_v56 }
 0x33d   :  { %5788 = vmatpush2.bf16.msra.mxu0 %v6506_v2  ;;  %v6747_v54 = vcombine.high %v846_v51, %v858_v49  ;;  %v6746_v0 = vcombine.low %v846_v51, %v858_v49  ;;  %v6725_v2 = vcombine.high %v823_v57, %v835_v58  ;;  %v6724_v10 = vcombine.low %v823_v57, %v835_v58  ;;  %v739_v55 = vld [vmem:[#allocation8 + $0xef0] sm:$0xff] }
 0x33e   :  { %5831 = vmatpush2.bf16.msra.mxu1 %v6890_v3  ;;  %5789 = vmatprep.subr.bf16.mxu0 %v6483_v4  ;;  %v415_v3 = vld [vmem:[#allocation8 + $0x4d0] sm:$0xff]  ;;  %v6653_v49 = vcombine.high %v751_v39, %v763_v40  ;;  %v6652_v58 = vcombine.low %v751_v39, %v763_v40 }
 0x33f   :  { %5832 = vmatprep.subr.bf16.mxu1 %v6867_v5  ;;  %v427_v4 = vld [vmem:[#allocation8 + $0x530] sm:$0xff]  ;;  %v1086_v5 = vrot.slane %v7329_v7, %v7304_v20 }
 0x340   :  { %v1015_v39 = vld [vmem:[#allocation8 + $0x1790] sm:$0xff] }
 0x341   :  { %5790 = vmatpush2.bf16.msra.mxu0 %v6482_v12  ;;  %v1090_v12 = vrot.slane %v7329_v7, %v7307_v29  ;;  %v6700_v7 = vcombine.low %v799_v8, %v811_v9  ;;  %v1027_v40 = vld [vmem:[#allocation8 + $0x17f0] sm:$0xff] }
 0x342   :  { %5833 = vmatpush2.bf16.msra.mxu1 %v6866_v13  ;;  %5791 = vmatprep.subr.bf16.mxu0 %v6459_v14  ;;  %v6317_v13 = vcombine.high %v415_v3, %v427_v4  ;;  %v391_v14 = vld [vmem:[#allocation8 + $0x410] sm:$0xff] }
 0x343   :  { %5834 = vmatprep.subr.bf16.mxu1 %v6843_v16  ;;  %v403_v16 = vld [vmem:[#allocation8 + $0x470] sm:$0xff] }
 0x344   :  { %v6293_v32 = vcombine.high %v391_v14, %v403_v16 }
 0x345   :  { %5792 = vmatpush2.bf16.msra.mxu0 %v6458_v27 }
 0x346   :  { %5835 = vmatpush2.bf16.msra.mxu1 %v6842_v28  ;;  %5793 = vmatprep.subr.bf16.mxu0 %v6435_v30  ;;  %v6316_v30 = vcombine.low %v415_v3, %v427_v4  ;;  %v703_v3 = vld [vmem:[#allocation8 + $0xdd0] sm:$0xff] }
 0x347   :  { %5836 = vmatprep.subr.bf16.mxu1 %v6819_v31  ;;  %v715_v4 = vld [vmem:[#allocation8 + $0xe30] sm:$0xff] }
 0x348   :  { %v6605_v9 = vcombine.high %v703_v3, %v715_v4 }
 0x349   :  { %5794 = vmatpush2.bf16.msra.mxu0 %v6434_v35  ;;  %v6677_v35 = vcombine.high %v775_v19, %v787_v26 }
 0x34a   :  { %5837 = vmatpush2.bf16.msra.mxu1 %v6818_v36  ;;  %5795 = vmatprep.subr.bf16.mxu0 %v6411_v37  ;;  %v367_v36 = vld [vmem:[#allocation8 + $0x350] sm:$0xff] }
 0x34b   :  { %5838 = vmatprep.subr.bf16.mxu1 %v6795_v38  ;;  %v379_v37 = vld [vmem:[#allocation8 + $0x3b0] sm:$0xff] }
 0x34c   :  { %v6269_v47 = vcombine.high %v367_v36, %v379_v37  ;;  %v6268_v57 = vcombine.low %v367_v36, %v379_v37  ;;  %v631_v36 = vld [vmem:[#allocation8 + $0xb90] sm:$0xff] }
 0x34d   :  { %5796 = vmatpush2.bf16.msra.mxu0 %v6410_v43  ;;  %v643_v37 = vld [vmem:[#allocation8 + $0xbf0] sm:$0xff] }
 0x34e   :  { %5839 = vmatpush2.bf16.msra.mxu1 %v6794_v44  ;;  %5797 = vmatprep.subr.bf16.mxu0 %v6387_v45  ;;  %v6292_v44 = vcombine.low %v391_v14, %v403_v16  ;;  %v691_v14 = vld [vmem:[#allocation8 + $0xd70] sm:$0xff] }
 0x34f   :  { %5840 = vmatprep.subr.bf16.mxu1 %v6771_v46  ;;  %v6676_v46 = vcombine.low %v775_v19, %v787_v26 }
 0x351   :  { %5798 = vmatpush2.bf16.msra.mxu0 %v6386_v50  ;;  %v343_v50 = vld [vmem:[#allocation8 + $0x290] sm:$0xff] }
 0x352   :  { %5841 = vmatpush2.bf16.msra.mxu1 %v6770_v52  ;;  %5799 = vmatprep.subr.bf16.mxu0 %v6363_v53  ;;  %v355_v52 = vld [vmem:[#allocation8 + $0x2f0] sm:$0xff] }
 0x353   :  { %5842 = vmatprep.subr.bf16.mxu1 %v6747_v54  ;;  %v727_v54 = vld [vmem:[#allocation8 + $0xe90] sm:$0xff] }
 0x355   :  { %5800 = vmatpush2.bf16.msra.mxu0 %v6362_v63  ;;  %v6245_v63 = vcombine.high %v343_v50, %v355_v52 }
 0x356   :  { %5843 = vmatpush2.bf16.msra.mxu1 %v6746_v0  ;;  %5855 = vmatprep.subr.bf16.mxu0 %v6341_v1  ;;  %v6629_v0 = vcombine.high %v727_v54, %v739_v55  ;;  %v319_v1 = vld [vmem:[#allocation8 + $0x1d0] sm:$0xff] }
 0x357   :  { %5898 = vmatprep.subr.bf16.mxu1 %v6725_v2  ;;  %v331_v2 = vld [vmem:[#allocation8 + $0x230] sm:$0xff] }
 0x358   :  { %v5545_v17 = vpop.f32.mrf.mxu0  ;;  %5802 = vmatmul.mubr.bf16.vlgmr.msra.gmra.mxu0 %v7267_v61  ;;  %v6221_v8 = vcombine.high %v319_v1, %v331_v2  ;;  %v6220_v16 = vcombine.low %v319_v1, %v331_v2  ;;  %v559_v1 = vld [vmem:[#allocation8 + $0x950] sm:$0xff] }
 0x359   :  { %v5546_v27 = vadd.f32 %v5545_v17, %v1086_v5  ;;  %v5588_v28 = vpop.f32.mrf.mxu1  ;;  %5845 = vmatmul.mubr.bf16.vlgmr.msra.gmra.mxu1 %v7269_v62  ;;  %5856 = vmatpush1.bf16.msra.mxu0 %v6340_v6  ;;  %v6628_v6 = vcombine.low %v727_v54, %v739_v55  ;;  %v595_v54 = vld [vmem:[#allocation8 + $0xa70] sm:$0xff] }
 0x35a   :  { %5887 = vmatprep.mubr.bf16.mxu0 %v7263_v59  ;;  %5899 = vmatpush1.bf16.msra.mxu1 %v6724_v10  ;;  %v5547_v31 = vpop.f32.mrf.mxu0  ;;  %v295_v10 = vld [vmem:[#allocation8 + $0x110] sm:$0xff] }
 0x35b   :  { %v5589_v33 = vadd.f32 %v5588_v28, %v5546_v27  ;;  %5930 = vmatprep.mubr.bf16.mxu1 %v7265_v60  ;;  %v5548_v34 = vadd.f32 %v5547_v31, %v1090_v12  ;;  %v5590_v21 = vpop.f32.mrf.mxu1  ;;  %5857 = vmatprep.subr.bf16.mxu0 %v6317_v13  ;;  %v679_v13 = vld [vmem:[#allocation8 + $0xd10] sm:$0xff] }
 0x35c   :  { %v5549_v38 = vpop.f32.mrf.mxu0  ;;  %5900 = vmatprep.subr.bf16.mxu1 %v6701_v18  ;;  %v6604_v18 = vcombine.low %v703_v3, %v715_v4  ;;  %v6581_v26 = vcombine.high %v679_v13, %v691_v14  ;;  %v271_v27 = vld [vmem:[#allocation8 + $0x50] sm:$0xff] }
 0x35d   :  { %6995 = vtanh.f32 %v5589_v33  ;;  %v5591_v41 = vadd.f32 %v5590_v21, %v5548_v34  ;;  %v5550_v42 = vadd.f32 %v5549_v38, %v1086_v5  ;;  %v5592_v43 = vpop.f32.mrf.mxu1  ;;  %5858 = vmatpush1.bf16.msra.mxu0 %v6316_v30  ;;  %v6244_v5 = vcombine.low %v343_v50, %v355_v52  ;;  %v283_v28 = vld [vmem:[#allocation8 + $0xb0] sm:$0xff] }
 0x35e   :  { %5901 = vmatpush1.bf16.msra.mxu1 %v6700_v7  ;;  %v5551_v45 = vpop.f32.mrf.mxu0  ;;  %5859 = vmatprep.subr.bf16.mxu0 %v6293_v32  ;;  %v655_v31 = vld [vmem:[#allocation8 + $0xc50] sm:$0xff]  ;;  %v6580_v34 = vcombine.low %v679_v13, %v691_v14  ;;  %v6173_v21 = vcombine.high %v271_v27, %v283_v28 }
 0x35f   :  { %6997 = vtanh.f32 %v5591_v41  ;;  %v5593_v48 = vadd.f32 %v5592_v43, %v5550_v42  ;;  %v5552_v51 = vadd.f32 %v5551_v45, %v1090_v12  ;;  %5902 = vmatprep.subr.bf16.mxu1 %v6677_v35  ;;  %v5594_v53 = vpop.f32.mrf.mxu1  ;;  %v307_v12 = vld [vmem:[#allocation8 + $0x170] sm:$0xff]  ;;  %v6172_v41 = vcombine.low %v271_v27, %v283_v28 }
 0x360   :  { %v6197_v19 = vcombine.high %v295_v10, %v307_v12  ;;  %v667_v7 = vld [vmem:[#allocation8 + $0xcb0] sm:$0xff]  ;;  %v6196_v32 = vcombine.low %v295_v10, %v307_v12  ;;  %v6533_v43 = vcombine.high %v631_v36, %v643_v37 }
 0x361   :  { %6999 = vtanh.f32 %v5593_v48  ;;  %v5595_v56 = vadd.f32 %v5594_v53, %v5552_v51  ;;  %5860 = vmatpush1.bf16.msra.mxu0 %v6292_v44  ;;  %v6557_v35 = vcombine.high %v655_v31, %v667_v7  ;;  %v6556_v42 = vcombine.low %v655_v31, %v667_v7  ;;  %v607_v45 = vld [vmem:[#allocation8 + $0xad0] sm:$0xff] }
 0x362   :  { %5903 = vmatpush1.bf16.msra.mxu1 %v6676_v46  ;;  %5861 = vmatprep.subr.bf16.mxu0 %v6269_v47  ;;  %v6917_v44 = vcombine.high %v1015_v39, %v1027_v40  ;;  %v619_v46 = vld [vmem:[#allocation8 + $0xb30] sm:$0xff]  ;;  %v6532_v51 = vcombine.low %v631_v36, %v643_v37 }
 0x363   :  { %7001 = vtanh.f32 %v5595_v56  ;;  %5904 = vmatprep.subr.bf16.mxu1 %v6653_v49  ;;  %v991_v47 = vld [vmem:[#allocation8 + $0x16d0] sm:$0xff]  ;;  %v6916_v49 = vcombine.low %v1015_v39, %v1027_v40  ;;  %v6509_v50 = vcombine.high %v607_v45, %v619_v46 }
 0x364   :  { %v1003_v48 = vld [vmem:[#allocation8 + $0x1730] sm:$0xff] }
 0x365   :  { %5862 = vmatpush1.bf16.msra.mxu0 %v6268_v57  ;;  %v6893_v52 = vcombine.high %v991_v47, %v1003_v48  ;;  %v583_v53 = vld [vmem:[#allocation8 + $0xa10] sm:$0xff]  ;;  %v6508_v57 = vcombine.low %v607_v45, %v619_v46 }
 0x366   :  { %5905 = vmatpush1.bf16.msra.mxu1 %v6652_v58  ;;  %5863 = vmatprep.subr.bf16.mxu0 %v6245_v63  ;;  %v967_v55 = vld [vmem:[#allocation8 + $0x1610] sm:$0xff]  ;;  %v6892_v58 = vcombine.low %v991_v47, %v1003_v48  ;;  %v6485_v63 = vcombine.high %v583_v53, %v595_v54 }
 0x367   :  { %5906 = vmatprep.subr.bf16.mxu1 %v6629_v0  ;;  %v979_v56 = vld [vmem:[#allocation8 + $0x1670] sm:$0xff] }
 0x368   :  { %v6869_v0 = vcombine.high %v967_v55, %v979_v56  ;;  %v571_v2 = vld [vmem:[#allocation8 + $0x9b0] sm:$0xff] }
 0x369   :  { %5864 = vmatpush1.bf16.msra.mxu0 %v6244_v5  ;;  %v943_v3 = vld [vmem:[#allocation8 + $0x1550] sm:$0xff]  ;;  %v6484_v5 = vcombine.low %v583_v53, %v595_v54 }
 0x36a   :  { %v6996_v17 = vpop.eup %6995  ;;  %5907 = vmatpush1.bf16.msra.mxu1 %v6628_v6  ;;  %5865 = vmatprep.subr.bf16.mxu0 %v6221_v8  ;;  %v955_v4 = vld [vmem:[#allocation8 + $0x15b0] sm:$0xff]  ;;  %v6868_v6 = vcombine.low %v967_v55, %v979_v56  ;;  %v6461_v8 = vcombine.high %v559_v1, %v571_v2 }
 0x36b   :  { %6087 = vst [vmem:[#allocation11 + $0x60] sm:$0xff] %v6996_v17  ;;  %5908 = vmatprep.subr.bf16.mxu1 %v6605_v9  ;;  %v6845_v9 = vcombine.high %v943_v3, %v955_v4  ;;  %v535_v10 = vld [vmem:[#allocation8 + $0x890] sm:$0xff]  ;;  %v6844_v17 = vcombine.low %v943_v3, %v955_v4  ;;  %v812_v3 = vld [vmem:[#allocation8 + $0x1138] sm:$0xff] }
 0x36c   :  { %v6998_v30 = vpop.eup %6997  ;;  %v547_v12 = vld [vmem:[#allocation8 + $0x8f0] sm:$0xff] }
 0x36d   :  { %6088 = vst [vmem:[#allocation11 + $0x68] sm:$0xff] %v6998_v30  ;;  %5866 = vmatpush1.bf16.msra.mxu0 %v6220_v16  ;;  %v919_v13 = vld [vmem:[#allocation8 + $0x1490] sm:$0xff]  ;;  %v6460_v16 = vcombine.low %v559_v1, %v571_v2  ;;  %v6436_v31 = vcombine.low %v535_v10, %v547_v12  ;;  %v800_v2 = vld [vmem:[#allocation8 + $0x10d8] sm:$0xff] }
 0x36e   :  { %v7000_v33 = vpop.eup %6999  ;;  %5909 = vmatpush1.bf16.msra.mxu1 %v6604_v18  ;;  %5867 = vmatprep.subr.bf16.mxu0 %v6197_v19  ;;  %v931_v14 = vld [vmem:[#allocation8 + $0x14f0] sm:$0xff]  ;;  %v6437_v18 = vcombine.high %v535_v10, %v547_v12  ;;  %v6703_v12 = vcombine.high %v800_v2, %v812_v3 }
 0x36f   :  { %6111 = vst [vmem:[#allocation11 + $0x120] sm:$0xff] %v7000_v33  ;;  %5910 = vmatprep.subr.bf16.mxu1 %v6581_v26  ;;  %v6821_v19 = vcombine.high %v919_v13, %v931_v14  ;;  %v511_v26 = vld [vmem:[#allocation8 + $0x7d0] sm:$0xff]  ;;  %v6820_v7 = vcombine.low %v919_v13, %v931_v14  ;;  %v776_v13 = vld [vmem:[#allocation8 + $0x1018] sm:$0xff] }
 0x370   :  { %v7002_v38 = vpop.eup %7001  ;;  %v523_v27 = vld [vmem:[#allocation8 + $0x830] sm:$0xff]  ;;  %v788_v14 = vld [vmem:[#allocation8 + $0x1078] sm:$0xff] }
 0x371   :  { %6112 = vst [vmem:[#allocation11 + $0x128] sm:$0xff] %v7002_v38  ;;  %5868 = vmatpush1.bf16.msra.mxu0 %v6196_v32  ;;  %v895_v28 = vld [vmem:[#allocation8 + $0x13d0] sm:$0xff]  ;;  %v6413_v32 = vcombine.high %v511_v26, %v523_v27  ;;  %v6412_v37 = vcombine.low %v511_v26, %v523_v27  ;;  %v6702_v26 = vcombine.low %v800_v2, %v812_v3  ;;  %v296_v2 = vld [vmem:[#allocation8 + $0x118] sm:$0xff] }
 0x372   :  { %5911 = vmatpush1.bf16.msra.mxu1 %v6580_v34  ;;  %5869 = vmatprep.subr.bf16.mxu0 %v6173_v21  ;;  %v907_v30 = vld [vmem:[#allocation8 + $0x1430] sm:$0xff]  ;;  %v308_v3 = vld [vmem:[#allocation8 + $0x178] sm:$0xff] }
 0x373   :  { %5912 = vmatprep.subr.bf16.mxu1 %v6557_v35  ;;  %v6797_v33 = vcombine.high %v895_v28, %v907_v30  ;;  %v487_v34 = vld [vmem:[#allocation8 + $0x710] sm:$0xff]  ;;  %v6796_v38 = vcombine.low %v895_v28, %v907_v30 }
 0x374   :  { %v499_v21 = vld [vmem:[#allocation8 + $0x770] sm:$0xff] }
 0x375   :  { %5870 = vmatpush1.bf16.msra.mxu0 %v6172_v41  ;;  %v871_v35 = vld [vmem:[#allocation8 + $0x1310] sm:$0xff]  ;;  %v6389_v39 = vcombine.high %v487_v34, %v499_v21  ;;  %v6388_v45 = vcombine.low %v487_v34, %v499_v21  ;;  %v752_v21 = vld [vmem:[#allocation8 + $0xf58] sm:$0xff] }
 0x376   :  { %5913 = vmatpush1.bf16.msra.mxu1 %v6556_v42  ;;  %5871 = vmatprep.subr.bf16.mxu0 %v6533_v43  ;;  %v883_v36 = vld [vmem:[#allocation8 + $0x1370] sm:$0xff] }
 0x377   :  { %5914 = vmatprep.subr.bf16.mxu1 %v6917_v44  ;;  %v6773_v40 = vcombine.high %v871_v35, %v883_v36  ;;  %v463_v41 = vld [vmem:[#allocation8 + $0x650] sm:$0xff]  ;;  %v6772_v46 = vcombine.low %v871_v35, %v883_v36  ;;  %v764_v35 = vld [vmem:[#allocation8 + $0xfb8] sm:$0xff] }
 0x378   :  { %v475_v42 = vld [vmem:[#allocation8 + $0x6b0] sm:$0xff] }
 0x379   :  { %5872 = vmatpush2.bf16.msra.mxu0 %v6532_v51  ;;  %v847_v43 = vld [vmem:[#allocation8 + $0x1250] sm:$0xff]  ;;  %v6365_v47 = vcombine.high %v463_v41, %v475_v42  ;;  %v440_v51 = vld [vmem:[#allocation8 + $0x598] sm:$0xff]  ;;  %v6364_v53 = vcombine.low %v463_v41, %v475_v42 }
 0x37a   :  { %5915 = vmatpush2.bf16.msra.mxu1 %v6916_v49  ;;  %5873 = vmatprep.subr.bf16.mxu0 %v6509_v50  ;;  %v859_v44 = vld [vmem:[#allocation8 + $0x12b0] sm:$0xff]  ;;  %v452_v49 = vld [vmem:[#allocation8 + $0x5f8] sm:$0xff] }
 0x37b   :  { %5916 = vmatprep.subr.bf16.mxu1 %v6893_v52  ;;  %v6749_v48 = vcombine.high %v847_v43, %v859_v44  ;;  %v824_v50 = vld [vmem:[#allocation8 + $0x1198] sm:$0xff]  ;;  %v6748_v54 = vcombine.low %v847_v43, %v859_v44  ;;  %v6343_v55 = vcombine.high %v440_v51, %v452_v49  ;;  %v6342_v1 = vcombine.low %v440_v51, %v452_v49 }
 0x37c   :  { %v836_v52 = vld [vmem:[#allocation8 + $0x11f8] sm:$0xff]  ;;  %v6655_v43 = vcombine.high %v752_v21, %v764_v35 }
 0x37d   :  { %5874 = vmatpush2.bf16.msra.mxu0 %v6508_v57  ;;  %v6727_v56 = vcombine.high %v824_v50, %v836_v52  ;;  %v416_v57 = vld [vmem:[#allocation8 + $0x4d8] sm:$0xff]  ;;  %v6726_v4 = vcombine.low %v824_v50, %v836_v52  ;;  %v6654_v50 = vcombine.low %v752_v21, %v764_v35 }
 0x37e   :  { %5917 = vmatpush2.bf16.msra.mxu1 %v6892_v58  ;;  %5875 = vmatprep.subr.bf16.mxu0 %v6485_v63  ;;  %v428_v58 = vld [vmem:[#allocation8 + $0x538] sm:$0xff]  ;;  %v7044_v63 = vld [vmem:[#allocation10 + $0x8] sm:$0xff] }
 0x37f   :  { %5918 = vmatprep.subr.bf16.mxu1 %v6869_v0  ;;  %v1094_v0 = vrot.slane %v7044_v63, %v7318_v11  ;;  %v344_v44 = vld [vmem:[#allocation8 + $0x298] sm:$0xff] }
 0x381   :  { %5876 = vmatpush2.bf16.msra.mxu0 %v6484_v5  ;;  %v1098_v5 = vrot.slane %v7044_v63, %v7321_v15 }
 0x382   :  { %5919 = vmatpush2.bf16.msra.mxu1 %v6868_v6  ;;  %5877 = vmatprep.subr.bf16.mxu0 %v6461_v8  ;;  %v6319_v6 = vcombine.high %v416_v57, %v428_v58  ;;  %v392_v8 = vld [vmem:[#allocation8 + $0x418] sm:$0xff] }
 0x383   :  { %5920 = vmatprep.subr.bf16.mxu1 %v6845_v9  ;;  %v404_v9 = vld [vmem:[#allocation8 + $0x478] sm:$0xff] }
 0x384   :  { %v6295_v27 = vcombine.high %v392_v8, %v404_v9 }
 0x385   :  { %5878 = vmatpush2.bf16.msra.mxu0 %v6460_v16 }
 0x386   :  { %5921 = vmatpush2.bf16.msra.mxu1 %v6844_v17  ;;  %5879 = vmatprep.subr.bf16.mxu0 %v6437_v18  ;;  %v6318_v18 = vcombine.low %v416_v57, %v428_v58  ;;  %v716_v57 = vld [vmem:[#allocation8 + $0xe38] sm:$0xff] }
 0x387   :  { %5922 = vmatprep.subr.bf16.mxu1 %v6821_v19 }
 0x389   :  { %5880 = vmatpush2.bf16.msra.mxu0 %v6436_v31 }
 0x38a   :  { %5923 = vmatpush2.bf16.msra.mxu1 %v6820_v7  ;;  %5881 = vmatprep.subr.bf16.mxu0 %v6413_v32  ;;  %v6679_v7 = vcombine.high %v776_v13, %v788_v14  ;;  %v368_v32 = vld [vmem:[#allocation8 + $0x358] sm:$0xff] }
 0x38b   :  { %5924 = vmatprep.subr.bf16.mxu1 %v6797_v33  ;;  %v380_v33 = vld [vmem:[#allocation8 + $0x3b8] sm:$0xff] }
 0x38c   :  { %v6270_v49 = vcombine.low %v368_v32, %v380_v33 }
 0x38d   :  { %5882 = vmatpush2.bf16.msra.mxu0 %v6412_v37 }
 0x38e   :  { %5925 = vmatpush2.bf16.msra.mxu1 %v6796_v38  ;;  %5883 = vmatprep.subr.bf16.mxu0 %v6389_v39  ;;  %v6294_v38 = vcombine.low %v392_v8, %v404_v9 }
 0x38f   :  { %5926 = vmatprep.subr.bf16.mxu1 %v6773_v40  ;;  %v6271_v40 = vcombine.high %v368_v32, %v380_v33  ;;  %v1016_v33 = vld [vmem:[#allocation8 + $0x1798] sm:$0xff] }
 0x391   :  { %5884 = vmatpush2.bf16.msra.mxu0 %v6388_v45  ;;  %v356_v45 = vld [vmem:[#allocation8 + $0x2f8] sm:$0xff] }
 0x392   :  { %5927 = vmatpush2.bf16.msra.mxu1 %v6772_v46  ;;  %5885 = vmatprep.subr.bf16.mxu0 %v6365_v47  ;;  %v728_v47 = vld [vmem:[#allocation8 + $0xe98] sm:$0xff]  ;;  %v6247_v52 = vcombine.high %v344_v44, %v356_v45  ;;  %v6246_v58 = vcombine.low %v344_v44, %v356_v45 }
 0x393   :  { %5928 = vmatprep.subr.bf16.mxu1 %v6749_v48  ;;  %v740_v48 = vld [vmem:[#allocation8 + $0xef8] sm:$0xff] }
 0x394   :  { %v6630_v63 = vcombine.low %v728_v47, %v740_v48  ;;  %v584_v44 = vld [vmem:[#allocation8 + $0xa18] sm:$0xff] }
 0x395   :  { %5886 = vmatpush2.bf16.msra.mxu0 %v6364_v53  ;;  %v6631_v53 = vcombine.high %v728_v47, %v740_v48  ;;  %v596_v45 = vld [vmem:[#allocation8 + $0xa78] sm:$0xff] }
 0x396   :  { %5929 = vmatpush2.bf16.msra.mxu1 %v6748_v54  ;;  %5941 = vmatprep.subr.bf16.mxu0 %v6343_v55  ;;  %v320_v54 = vld [vmem:[#allocation8 + $0x1d8] sm:$0xff] }
 0x397   :  { %5984 = vmatprep.subr.bf16.mxu1 %v6727_v56  ;;  %v332_v55 = vld [vmem:[#allocation8 + $0x238] sm:$0xff] }
 0x398   :  { %v5631_v10 = vpop.f32.mrf.mxu0  ;;  %5888 = vmatmul.mubr.bf16.vlgmr.msra.gmra.mxu0 %v7267_v61  ;;  %v704_v56 = vld [vmem:[#allocation8 + $0xdd8] sm:$0xff] }
 0x399   :  { %v5632_v16 = vadd.f32 %v5631_v10, %v1094_v0  ;;  %v5674_v17 = vpop.f32.mrf.mxu1  ;;  %5931 = vmatmul.mubr.bf16.vlgmr.msra.gmra.mxu1 %v7269_v62  ;;  %5942 = vmatpush1.bf16.msra.mxu0 %v6342_v1  ;;  %v6607_v1 = vcombine.high %v704_v56, %v716_v57  ;;  %v6606_v9 = vcombine.low %v704_v56, %v716_v57  ;;  %v980_v47 = vld [vmem:[#allocation8 + $0x1678] sm:$0xff] }
 0x39a   :  { %5973 = vmatprep.mubr.bf16.mxu0 %v7263_v59  ;;  %5985 = vmatpush1.bf16.msra.mxu1 %v6726_v4  ;;  %v5633_v19 = vpop.f32.mrf.mxu0  ;;  %v680_v4 = vld [vmem:[#allocation8 + $0xd18] sm:$0xff]  ;;  %v6199_v10 = vcombine.high %v296_v2, %v308_v3  ;;  %v6486_v56 = vcombine.low %v584_v44, %v596_v45 }
 0x39b   :  { %v5675_v28 = vadd.f32 %v5674_v17, %v5632_v16  ;;  %6016 = vmatprep.mubr.bf16.mxu1 %v7265_v60  ;;  %v5634_v30 = vadd.f32 %v5633_v19, %v1098_v5  ;;  %v5676_v31 = vpop.f32.mrf.mxu1  ;;  %5943 = vmatprep.subr.bf16.mxu0 %v6319_v6  ;;  %v6678_v60 = vcombine.low %v776_v13, %v788_v14  ;;  %v272_v13 = vld [vmem:[#allocation8 + $0x58] sm:$0xff] }
 0x39c   :  { %v5635_v34 = vpop.f32.mrf.mxu0  ;;  %5986 = vmatprep.subr.bf16.mxu1 %v6703_v12  ;;  %v6222_v6 = vcombine.low %v320_v54, %v332_v55  ;;  %v284_v14 = vld [vmem:[#allocation8 + $0xb8] sm:$0xff]  ;;  %v6198_v19 = vcombine.low %v296_v2, %v308_v3 }
 0x39d   :  { %7003 = vtanh.f32 %v5675_v28  ;;  %v5677_v36 = vadd.f32 %v5676_v31, %v5634_v30  ;;  %v5636_v59 = vadd.f32 %v5635_v34, %v1094_v0  ;;  %v5678_v37 = vpop.f32.mrf.mxu1  ;;  %5944 = vmatpush1.bf16.msra.mxu0 %v6318_v18  ;;  %v6223_v0 = vcombine.high %v320_v54, %v332_v55  ;;  %v656_v17 = vld [vmem:[#allocation8 + $0xc58] sm:$0xff] }
 0x39e   :  { %5987 = vmatpush1.bf16.msra.mxu1 %v6702_v26  ;;  %v5637_v39 = vpop.f32.mrf.mxu0  ;;  %5945 = vmatprep.subr.bf16.mxu0 %v6295_v27  ;;  %v668_v18 = vld [vmem:[#allocation8 + $0xcb8] sm:$0xff]  ;;  %v6175_v28 = vcombine.high %v272_v13, %v284_v14  ;;  %v6174_v21 = vcombine.low %v272_v13, %v284_v14 }
 0x39f   :  { %7005 = vtanh.f32 %v5677_v36  ;;  %v5679_v41 = vadd.f32 %v5678_v37, %v5636_v59  ;;  %v5638_v42 = vadd.f32 %v5637_v39, %v1098_v5  ;;  %5988 = vmatprep.subr.bf16.mxu1 %v6679_v7  ;;  %v5680_v46 = vpop.f32.mrf.mxu1  ;;  %v692_v5 = vld [vmem:[#allocation8 + $0xd78] sm:$0xff]  ;;  %v6559_v30 = vcombine.high %v656_v17, %v668_v18 }
 0x3a0   :  { %v6583_v12 = vcombine.high %v680_v4, %v692_v5  ;;  %v6582_v27 = vcombine.low %v680_v4, %v692_v5  ;;  %v632_v31 = vld [vmem:[#allocation8 + $0xb98] sm:$0xff]  ;;  %v6558_v35 = vcombine.low %v656_v17, %v668_v18 }
 0x3a1   :  { %7007 = vtanh.f32 %v5679_v41  ;;  %v5681_v51 = vadd.f32 %v5680_v46, %v5638_v42  ;;  %5946 = vmatpush1.bf16.msra.mxu0 %v6294_v38  ;;  %v644_v7 = vld [vmem:[#allocation8 + $0xbf8] sm:$0xff] }
 0x3a2   :  { %5989 = vmatpush1.bf16.msra.mxu1 %v6678_v60  ;;  %5947 = vmatprep.subr.bf16.mxu0 %v6271_v40  ;;  %v1028_v34 = vld [vmem:[#allocation8 + $0x17f8] sm:$0xff]  ;;  %v6535_v36 = vcombine.high %v632_v31, %v644_v7  ;;  %v6534_v40 = vcombine.low %v632_v31, %v644_v7 }
 0x3a3   :  { %7009 = vtanh.f32 %v5681_v51  ;;  %5990 = vmatprep.subr.bf16.mxu1 %v6655_v43  ;;  %v6919_v59 = vcombine.high %v1016_v33, %v1028_v34  ;;  %v608_v37 = vld [vmem:[#allocation8 + $0xad8] sm:$0xff]  ;;  %v6918_v41 = vcombine.low %v1016_v33, %v1028_v34 }
 0x3a4   :  { %v620_v38 = vld [vmem:[#allocation8 + $0xb38] sm:$0xff] }
 0x3a5   :  { %5948 = vmatpush1.bf16.msra.mxu0 %v6270_v49  ;;  %v992_v39 = vld [vmem:[#allocation8 + $0x16d8] sm:$0xff]  ;;  %v6511_v42 = vcombine.high %v608_v37, %v620_v38  ;;  %v6510_v48 = vcombine.low %v608_v37, %v620_v38  ;;  %v6487_v49 = vcombine.high %v584_v44, %v596_v45 }
 0x3a6   :  { %5991 = vmatpush1.bf16.msra.mxu1 %v6654_v50  ;;  %5949 = vmatprep.subr.bf16.mxu0 %v6247_v52  ;;  %v1004_v60 = vld [vmem:[#allocation8 + $0x1738] sm:$0xff] }
 0x3a7   :  { %5992 = vmatprep.subr.bf16.mxu1 %v6631_v53  ;;  %v6895_v43 = vcombine.high %v992_v39, %v1004_v60  ;;  %v968_v46 = vld [vmem:[#allocation8 + $0x1618] sm:$0xff]  ;;  %v6894_v51 = vcombine.low %v992_v39, %v1004_v60 }
 0x3a8   :  { %v6871_v50 = vcombine.high %v968_v46, %v980_v47  ;;  %v560_v52 = vld [vmem:[#allocation8 + $0x958] sm:$0xff]  ;;  %v6870_v57 = vcombine.low %v968_v46, %v980_v47 }
 0x3a9   :  { %5950 = vmatpush1.bf16.msra.mxu0 %v6246_v58  ;;  %v572_v53 = vld [vmem:[#allocation8 + $0x9b8] sm:$0xff] }
 0x3aa   :  { %v7004_v8 = vpop.eup %7003  ;;  %5993 = vmatpush1.bf16.msra.mxu1 %v6630_v63  ;;  %5951 = vmatprep.subr.bf16.mxu0 %v6223_v0  ;;  %v944_v54 = vld [vmem:[#allocation8 + $0x1558] sm:$0xff]  ;;  %v6463_v58 = vcombine.high %v560_v52, %v572_v53  ;;  %v6462_v4 = vcombine.low %v560_v52, %v572_v53 }
 0x3ab   :  { %6089 = vst [vmem:[#allocation11 + $0x70] sm:$0xff] %v7004_v8  ;;  %5994 = vmatprep.subr.bf16.mxu1 %v6607_v1  ;;  %v956_v55 = vld [vmem:[#allocation8 + $0x15b8] sm:$0xff] }
 0x3ac   :  { %v7006_v16 = vpop.eup %7005  ;;  %v6847_v63 = vcombine.high %v944_v54, %v956_v55  ;;  %v536_v0 = vld [vmem:[#allocation8 + $0x898] sm:$0xff]  ;;  %v6846_v5 = vcombine.low %v944_v54, %v956_v55 }
 0x3ad   :  { %6090 = vst [vmem:[#allocation11 + $0x78] sm:$0xff] %v7006_v16  ;;  %5952 = vmatpush1.bf16.msra.mxu0 %v6222_v6  ;;  %v548_v1 = vld [vmem:[#allocation8 + $0x8f8] sm:$0xff] }
 0x3ae   :  { %v7008_v26 = vpop.eup %7007  ;;  %5995 = vmatpush1.bf16.msra.mxu1 %v6606_v9  ;;  %5953 = vmatprep.subr.bf16.mxu0 %v6199_v10  ;;  %v920_v2 = vld [vmem:[#allocation8 + $0x1498] sm:$0xff]  ;;  %v6439_v6 = vcombine.high %v536_v0, %v548_v1  ;;  %v6438_v14 = vcombine.low %v536_v0, %v548_v1 }
 0x3af   :  { %6113 = vst [vmem:[#allocation11 + $0x130] sm:$0xff] %v7008_v26  ;;  %5996 = vmatprep.subr.bf16.mxu1 %v6583_v12  ;;  %v932_v3 = vld [vmem:[#allocation8 + $0x14f8] sm:$0xff] }
 0x3b0   :  { %v7010_v32 = vpop.eup %7009  ;;  %v6823_v8 = vcombine.high %v920_v2, %v932_v3  ;;  %v512_v9 = vld [vmem:[#allocation8 + $0x7d8] sm:$0xff]  ;;  %v6822_v16 = vcombine.low %v920_v2, %v932_v3 }
 0x3b1   :  { %6114 = vst [vmem:[#allocation11 + $0x138] sm:$0xff] %v7010_v32  ;;  %5954 = vmatpush1.bf16.msra.mxu0 %v6198_v19  ;;  %v524_v10 = vld [vmem:[#allocation8 + $0x838] sm:$0xff] }
 0x3b2   :  { %5997 = vmatpush1.bf16.msra.mxu1 %v6582_v27  ;;  %5955 = vmatprep.subr.bf16.mxu0 %v6175_v28  ;;  %v896_v12 = vld [vmem:[#allocation8 + $0x13d8] sm:$0xff]  ;;  %v6415_v17 = vcombine.high %v512_v9, %v524_v10 }
 0x3b3   :  { %5998 = vmatprep.subr.bf16.mxu1 %v6559_v30  ;;  %v908_v13 = vld [vmem:[#allocation8 + $0x1438] sm:$0xff]  ;;  %v6414_v30 = vcombine.low %v512_v9, %v524_v10 }
 0x3b4   :  { %v6799_v18 = vcombine.high %v896_v12, %v908_v13  ;;  %v488_v19 = vld [vmem:[#allocation8 + $0x718] sm:$0xff]  ;;  %v6798_v31 = vcombine.low %v896_v12, %v908_v13 }
 0x3b5   :  { %5956 = vmatpush1.bf16.msra.mxu0 %v6174_v21  ;;  %v500_v26 = vld [vmem:[#allocation8 + $0x778] sm:$0xff] }
 0x3b6   :  { %5999 = vmatpush1.bf16.msra.mxu1 %v6558_v35  ;;  %5957 = vmatprep.subr.bf16.mxu0 %v6535_v36  ;;  %v872_v27 = vld [vmem:[#allocation8 + $0x1318] sm:$0xff]  ;;  %v6391_v7 = vcombine.high %v488_v19, %v500_v26  ;;  %v6390_v36 = vcombine.low %v488_v19, %v500_v26 }
 0x3b7   :  { %6000 = vmatprep.subr.bf16.mxu1 %v6919_v59  ;;  %v884_v28 = vld [vmem:[#allocation8 + $0x1378] sm:$0xff] }
 0x3b8   :  { %v6775_v32 = vcombine.high %v872_v27, %v884_v28  ;;  %v464_v33 = vld [vmem:[#allocation8 + $0x658] sm:$0xff]  ;;  %v6774_v59 = vcombine.low %v872_v27, %v884_v28 }
 0x3b9   :  { %5958 = vmatpush2.bf16.msra.mxu0 %v6534_v40  ;;  %v476_v34 = vld [vmem:[#allocation8 + $0x6b8] sm:$0xff]  ;;  %v7361_v40 = vld [vmem:[#allocation10 + $0x10] sm:$0xff] }
 0x3ba   :  { %6001 = vmatpush2.bf16.msra.mxu1 %v6918_v41  ;;  %5959 = vmatprep.subr.bf16.mxu0 %v6511_v42  ;;  %v848_v21 = vld [vmem:[#allocation8 + $0x1258] sm:$0xff]  ;;  %v6367_v37 = vcombine.high %v464_v33, %v476_v34  ;;  %v6366_v39 = vcombine.low %v464_v33, %v476_v34  ;;  %v1102_v41 = vrot.slane %v7361_v40, %v7254_v24 }
 0x3bb   :  { %6002 = vmatprep.subr.bf16.mxu1 %v6895_v43  ;;  %v860_v35 = vld [vmem:[#allocation8 + $0x12b8] sm:$0xff]  ;;  %v1106_v42 = vrot.slane %v7361_v40, %v7248_v22  ;;  %v1114_v0 = vrot.slane %v7361_v40, %v7251_v23  ;;  %v1118_v28 = vrot.slane %v7361_v40, %v7304_v20 }
 0x3bc   :  { %v6751_v38 = vcombine.high %v848_v21, %v860_v35  ;;  %v6750_v60 = vcombine.low %v848_v21, %v860_v35 }
 0x3bd   :  { %5960 = vmatpush2.bf16.msra.mxu0 %v6510_v48 }
 0x3be   :  { %6003 = vmatpush2.bf16.msra.mxu1 %v6894_v51  ;;  %5961 = vmatprep.subr.bf16.mxu0 %v6487_v49 }
 0x3bf   :  { %6004 = vmatprep.subr.bf16.mxu1 %v6871_v50 }
 0x3c1   :  { %5962 = vmatpush2.bf16.msra.mxu0 %v6486_v56 }
 0x3c2   :  { %6005 = vmatpush2.bf16.msra.mxu1 %v6870_v57  ;;  %5963 = vmatprep.subr.bf16.mxu0 %v6463_v58 }
 0x3c3   :  { %6006 = vmatprep.subr.bf16.mxu1 %v6847_v63  ;;  %v1110_v63 = vrot.slane %v7361_v40, %v7257_v25 }
 0x3c5   :  { %5964 = vmatpush2.bf16.msra.mxu0 %v6462_v4 }
 0x3c6   :  { %6007 = vmatpush2.bf16.msra.mxu1 %v6846_v5  ;;  %5965 = vmatprep.subr.bf16.mxu0 %v6439_v6 }
 0x3c7   :  { %6008 = vmatprep.subr.bf16.mxu1 %v6823_v8 }
 0x3c9   :  { %5966 = vmatpush2.bf16.msra.mxu0 %v6438_v14 }
 0x3ca   :  { %6009 = vmatpush2.bf16.msra.mxu1 %v6822_v16  ;;  %5967 = vmatprep.subr.bf16.mxu0 %v6415_v17 }
 0x3cb   :  { %6010 = vmatprep.subr.bf16.mxu1 %v6799_v18 }
 0x3cd   :  { %5968 = vmatpush2.bf16.msra.mxu0 %v6414_v30  ;;  %v1122_v30 = vrot.slane %v7361_v40, %v7307_v29 }
 0x3ce   :  { %6011 = vmatpush2.bf16.msra.mxu1 %v6798_v31  ;;  %5969 = vmatprep.subr.bf16.mxu0 %v6391_v7 }
 0x3cf   :  { %6012 = vmatprep.subr.bf16.mxu1 %v6775_v32 }
 0x3d1   :  { %5970 = vmatpush2.bf16.msra.mxu0 %v6390_v36 }
 0x3d2   :  { %6013 = vmatpush2.bf16.msra.mxu1 %v6774_v59  ;;  %5971 = vmatprep.subr.bf16.mxu0 %v6367_v37 }
 0x3d3   :  { %6014 = vmatprep.subr.bf16.mxu1 %v6751_v38 }
 0x3d5   :  { %5972 = vmatpush2.bf16.msra.mxu0 %v6366_v39 }
 0x3d6   :  { %6015 = vmatpush2.bf16.msra.mxu1 %v6750_v60 }
 0x3d8   :  { %v5717_v43 = vpop.f32.mrf.mxu0  ;;  %5974 = vmatmul.mubr.bf16.vlgmr.msra.gmra.mxu0 %v7267_v61 }
 0x3d9   :  { %v5718_v44 = vadd.f32 %v5717_v43, %v1102_v41  ;;  %v5760_v45 = vpop.f32.mrf.mxu1  ;;  %6017 = vmatmul.mubr.bf16.vlgmr.msra.gmra.mxu1 %v7269_v62 }
 0x3da   :  { %v5719_v46 = vpop.f32.mrf.mxu0 }
 0x3db   :  { %v5761_v47 = vadd.f32 %v5760_v45, %v5718_v44  ;;  %v5720_v48 = vadd.f32 %v5719_v46, %v1106_v42  ;;  %v5762_v51 = vpop.f32.mrf.mxu1  ;;  %v1126_v46 = vrot.slane %v7361_v40, %v7318_v11 }
 0x3dc   :  { %v5721_v49 = vpop.f32.mrf.mxu0 }
 0x3dd   :  { %7011 = vtanh.f32 %v5761_v47  ;;  %v5763_v50 = vadd.f32 %v5762_v51, %v5720_v48  ;;  %v5722_v52 = vadd.f32 %v5721_v49, %v1102_v41  ;;  %v5764_v24 = vpop.f32.mrf.mxu1  ;;  %v1130_v47 = vrot.slane %v7361_v40, %v7321_v15 }
 0x3de   :  { %v5723_v53 = vpop.f32.mrf.mxu0 }
 0x3df   :  { %7013 = vtanh.f32 %v5763_v50  ;;  %v5765_v54 = vadd.f32 %v5764_v24, %v5722_v52  ;;  %v5724_v22 = vadd.f32 %v5723_v53, %v1106_v42  ;;  %v5766_v55 = vpop.f32.mrf.mxu1 }
 0x3e1   :  { %7015 = vtanh.f32 %v5765_v54  ;;  %v5767_v61 = vadd.f32 %v5766_v55, %v5724_v22 }
 0x3e3   :  { %7017 = vtanh.f32 %v5767_v61 }
 0x3ea   :  { %v7012_v56 = vpop.eup %7011 }
 0x3eb   :  { %6091 = vst [vmem:[#allocation11 + $0x80] sm:$0xff] %v7012_v56 }
 0x3ec   :  { %v7014_v62 = vpop.eup %7013 }
 0x3ed   :  { %6092 = vst [vmem:[#allocation11 + $0x88] sm:$0xff] %v7014_v62 }
 0x3ee   :  { %v7016_v57 = vpop.eup %7015 }
 0x3ef   :  { %6115 = vst [vmem:[#allocation11 + $0x140] sm:$0xff] %v7016_v57 }
 0x3f0   :  { %v7018_v58 = vpop.eup %7017 }
 0x3f1   :  { %6116 = vst [vmem:[#allocation11 + $0x148] sm:$0xff] %v7018_v58 }
 0x418   :  { %v5803_v1 = vpop.f32.mrf.mxu0 }
 0x419   :  { %v5804_v2 = vadd.f32 %v5803_v1, %v1110_v63  ;;  %v5846_v3 = vpop.f32.mrf.mxu1 }
 0x41a   :  { %v5805_v4 = vpop.f32.mrf.mxu0 }
 0x41b   :  { %v5847_v5 = vadd.f32 %v5846_v3, %v5804_v2  ;;  %v5806_v6 = vadd.f32 %v5805_v4, %v1114_v0  ;;  %v5848_v8 = vpop.f32.mrf.mxu1 }
 0x41c   :  { %v5807_v9 = vpop.f32.mrf.mxu0 }
 0x41d   :  { %7019 = vtanh.f32 %v5847_v5  ;;  %v5849_v10 = vadd.f32 %v5848_v8, %v5806_v6  ;;  %v5808_v12 = vadd.f32 %v5807_v9, %v1110_v63  ;;  %v5850_v13 = vpop.f32.mrf.mxu1 }
 0x41e   :  { %v5809_v14 = vpop.f32.mrf.mxu0 }
 0x41f   :  { %7021 = vtanh.f32 %v5849_v10  ;;  %v5851_v16 = vadd.f32 %v5850_v13, %v5808_v12  ;;  %v5810_v17 = vadd.f32 %v5809_v14, %v1114_v0  ;;  %v5852_v25 = vpop.f32.mrf.mxu1 }
 0x421   :  { %7023 = vtanh.f32 %v5851_v16  ;;  %v5853_v18 = vadd.f32 %v5852_v25, %v5810_v17 }
 0x423   :  { %7025 = vtanh.f32 %v5853_v18 }
 0x42a   :  { %v7020_v23 = vpop.eup %7019 }
 0x42b   :  { %6093 = vst [vmem:[#allocation11 + $0x90] sm:$0xff] %v7020_v23 }
 0x42c   :  { %v7022_v19 = vpop.eup %7021 }
 0x42d   :  { %6094 = vst [vmem:[#allocation11 + $0x98] sm:$0xff] %v7022_v19 }
 0x42e   :  { %v7024_v26 = vpop.eup %7023 }
 0x42f   :  { %6117 = vst [vmem:[#allocation11 + $0x150] sm:$0xff] %v7024_v26 }
 0x430   :  { %v7026_v27 = vpop.eup %7025 }
 0x431   :  { %6118 = vst [vmem:[#allocation11 + $0x158] sm:$0xff] %v7026_v27 }
 0x458   :  { %v5889_v31 = vpop.f32.mrf.mxu0 }
 0x459   :  { %v5890_v7 = vadd.f32 %v5889_v31, %v1118_v28  ;;  %v5932_v32 = vpop.f32.mrf.mxu1 }
 0x45a   :  { %v5891_v33 = vpop.f32.mrf.mxu0 }
 0x45b   :  { %v5933_v34 = vadd.f32 %v5932_v32, %v5890_v7  ;;  %v5892_v21 = vadd.f32 %v5891_v33, %v1122_v30  ;;  %v5934_v35 = vpop.f32.mrf.mxu1 }
 0x45c   :  { %v5893_v36 = vpop.f32.mrf.mxu0 }
 0x45d   :  { %7027 = vtanh.f32 %v5933_v34  ;;  %v5935_v59 = vadd.f32 %v5934_v35, %v5892_v21  ;;  %v5894_v37 = vadd.f32 %v5893_v36, %v1118_v28  ;;  %v5936_v38 = vpop.f32.mrf.mxu1 }
 0x45e   :  { %v5895_v39 = vpop.f32.mrf.mxu0 }
 0x45f   :  { %7029 = vtanh.f32 %v5935_v59  ;;  %v5937_v60 = vadd.f32 %v5936_v38, %v5894_v37  ;;  %v5896_v41 = vadd.f32 %v5895_v39, %v1122_v30  ;;  %v5938_v20 = vpop.f32.mrf.mxu1 }
 0x461   :  { %7031 = vtanh.f32 %v5937_v60  ;;  %v5939_v42 = vadd.f32 %v5938_v20, %v5896_v41 }
 0x463   :  { %7033 = vtanh.f32 %v5939_v42 }
 0x46a   :  { %v7028_v29 = vpop.eup %7027 }
 0x46b   :  { %6095 = vst [vmem:[#allocation11 + $0xa0] sm:$0xff] %v7028_v29 }
 0x46c   :  { %v7030_v43 = vpop.eup %7029 }
 0x46d   :  { %6096 = vst [vmem:[#allocation11 + $0xa8] sm:$0xff] %v7030_v43 }
 0x46e   :  { %v7032_v44 = vpop.eup %7031 }
 0x46f   :  { %6119 = vst [vmem:[#allocation11 + $0x160] sm:$0xff] %v7032_v44 }
 0x470   :  { %v7034_v45 = vpop.eup %7033 }
 0x471   :  { %6120 = vst [vmem:[#allocation11 + $0x168] sm:$0xff] %v7034_v45 }
 0x498   :  { %v5975_v48 = vpop.f32.mrf.mxu0 }
 0x499   :  { %v5976_v51 = vadd.f32 %v5975_v48, %v1126_v46  ;;  %v6018_v49 = vpop.f32.mrf.mxu1 }
 0x49a   :  { %v5977_v50 = vpop.f32.mrf.mxu0 }
 0x49b   :  { %v6019_v52 = vadd.f32 %v6018_v49, %v5976_v51  ;;  %v5978_v24 = vadd.f32 %v5977_v50, %v1130_v47  ;;  %v6020_v53 = vpop.f32.mrf.mxu1 }
 0x49c   :  { %v5979_v54 = vpop.f32.mrf.mxu0 }
 0x49d   :  { %7035 = vtanh.f32 %v6019_v52  ;;  %v6021_v22 = vadd.f32 %v6020_v53, %v5978_v24  ;;  %v5980_v55 = vadd.f32 %v5979_v54, %v1126_v46  ;;  %v6022_v61 = vpop.f32.mrf.mxu1 }
 0x49e   :  { %v5981_v56 = vpop.f32.mrf.mxu0 }
 0x49f   :  { %7037 = vtanh.f32 %v6021_v22  ;;  %v6023_v62 = vadd.f32 %v6022_v61, %v5980_v55  ;;  %v5982_v57 = vadd.f32 %v5981_v56, %v1130_v47  ;;  %v6024_v11 = vpop.f32.mrf.mxu1 }
 0x4a1   :  { %7039 = vtanh.f32 %v6023_v62  ;;  %v6025_v58 = vadd.f32 %v6024_v11, %v5982_v57 }
 0x4a3   :  { %7041 = vtanh.f32 %v6025_v58 }
 0x4aa   :  { %v7036_v15 = vpop.eup %7035 }
 0x4ab   :  { %6097 = vst [vmem:[#allocation11 + $0xb0] sm:$0xff] %v7036_v15 }
 0x4ac   :  { %v7038_v40 = vpop.eup %7037 }
 0x4ad   :  { %6098 = vst [vmem:[#allocation11 + $0xb8] sm:$0xff] %v7038_v40 }
 0x4ae   :  { %v7040_v63 = vpop.eup %7039 }
 0x4af   :  { %6121 = vst [vmem:[#allocation11 + $0x170] sm:$0xff] %v7040_v63 }
 0x4b0   :  { %v7042_v0 = vpop.eup %7041 }
 0x4b1   :  { %6122 = vst [vmem:[#allocation11 + $0x178] sm:$0xff] %v7042_v0 }
 0x4b2   :  { %7156 = shalt.err (!%p7153_p1)
}
 0x4b3   :  { %s7186_s22 = smov 3072   ;;  %s7187_s23 = smov 192  }
 0x4b4   :  { %6134 = dma.vmem_to_hbm [thread:$0]  %s6129_s4, 6144, %s7389_s5, [#allocation4], %s7186_s22, %s7186_s22, %s7187_s23  }
 0x4b5   :  { %7171 = dma.done.wait [#allocation4], 6144  }
 0x4b6   :  { %7172 = vsyncadd [#allocation4], 4294961152 }
 0x4b7   :  { %6138 = vsyncpa [#allocation3], 1 }
 0x4b8   :  { %6139 = vsyncpa [#allocation6], 1 }
 0x4b9   :  { %6140 = vsyncpa [#allocation9], 1 }
 0x4ba   :  { %6141 = vsyncpa [#allocation4], 1 }

</bundles_post_ra>
